<compile_context>
chip_gen: v7x
topology: tpu7x:2x2x1
jax: 0.10.0
libtpu: 0.0.40
codegen_flags: <defaults>
</compile_context>

<pallas_src>
import functools

import jax
import jax.numpy as jnp
import numpy as np
from jax.experimental import pallas as pl
from jax.experimental.pallas import tpu as pltpu


# --------------------------------------------------------------------------- #
# Fused kernel                                                                 #
# --------------------------------------------------------------------------- #

def _stereo_kernel(left_ref, right_ref, maskx_ref, m3_ref, m4_ref,
                   w1a_ref, w1b_ref, b1_ref, pw0_ref, pw1_ref,
                   out_ref, *, c, D, h, w, HWP):
    """One batch element of the fused StereoDecoder forward.

    left_ref / right_ref : (1, c, HWP)       VMEM  flattened + lane-padded h*w
    maskx_ref            : (D, HWP)          VMEM  cost-volume x-shift masks
    m3_ref               : (27, 2*D*HWP)     VMEM  layer3 tap validity masks
    m4_ref               : (8, D*HWP)        VMEM  layer4 shift validity masks
    w1a_ref / w1b_ref    : (27, c, c)        VMEM  layer3 weights (BN folded),
                                                   split by cost-volume half
    b1_ref               : (c, 1)            VMEM  folded BN bias
    pw0_ref / pw1_ref    : (8, 4, c)         VMEM  negated layer4 polyphase
                                                   weights for pz = 0 / 1
    out_ref              : (1, 2, 4, D*HWP)  VMEM  softmax probabilities,
                                                   [pz, py*2+px, d*HWP + y*w + x]
    """
    f32 = jnp.float32
    DHWP = D * HWP
    L2 = 2 * DHWP

    left = left_ref[0]                       # (c, HWP)
    right = right_ref[0]                     # (c, HWP)
    inv_c = f32(1.0 / c)
    left_sq = left * left

    # ---- cost volume ('bem'), lane-dense: [ squared half | product half ] ----
    top_blocks, bot_blocks = [], []
    for d in range(D):                       # D is small & static
        s = D // 2 - d                       # shifted_right[x] = right[x + s]
        r = right if s == 0 else pltpu.roll(right, (-s) % HWP, 1)
        r = r * maskx_ref[pl.ds(d, 1), :]
        rs = r * inv_c
        top_blocks.append(left_sq + r * rs)  # left^2 + right^2 / c
        bot_blocks.append(left * rs)         # left * right / c
    cv = jnp.concatenate(top_blocks + bot_blocks, axis=1)       # (c, 2*D*HWP)

    # ---- layer3: Conv3d(2c->c, k3, p1) + folded BN + ReLU --------------------
    # 27-tap stencil: each tap = one XLU roll + mask + MXU channel contraction.
    acc = jnp.broadcast_to(b1_ref[...], (c, DHWP))               # hoisted once
    t = 0
    for dz in (-1, 0, 1):
        for dy in (-1, 0, 1):
            for dx in (-1, 0, 1):
                s = dz * HWP + dy * w + dx
                sh = cv if s == 0 else pltpu.roll(cv, (-s) % L2, 1)
                sh = sh * m3_ref[pl.ds(t, 1), :]
                acc = acc + jnp.dot(w1a_ref[t], sh[:, :DHWP],
                                    preferred_element_type=f32)
                acc = acc + jnp.dot(w1b_ref[t], sh[:, DHWP:],
                                    preferred_element_type=f32)
                t += 1
    y3 = jnp.maximum(acc, 0.0)                                   # (c, D*HWP)

    # ---- layer4: ConvTranspose3d(c->1, k3, s2, p1, op1), polyphase -----------
    # 8 output phases (pz, py, px); each reads y3 shifted by (sz,sy,sx) in {0,1}^3.
    ph0 = jnp.zeros((4, DHWP), f32)          # pz == 0 phases, rows = py*2 + px
    ph1 = jnp.zeros((4, DHWP), f32)          # pz == 1 phases
    si = 0
    for sz in (0, 1):
        for sy in (0, 1):
            for sx in (0, 1):
                s = sz * HWP + sy * w + sx
                sh = y3 if s == 0 else pltpu.roll(y3, (-s) % DHWP, 1)
                sh = sh * m4_ref[pl.ds(si, 1), :]
                if sz == 0:                  # pz==0 phases never use sz==1 taps
                    ph0 = ph0 + jnp.dot(pw0_ref[si], sh,
                                        preferred_element_type=f32)
                ph1 = ph1 + jnp.dot(pw1_ref[si], sh,
                                    preferred_element_type=f32)
                si += 1

    # ---- softmax over the 2*D disparity bins (negation already folded) -------
    rm = jnp.maximum(ph0[:, 0:HWP], ph1[:, 0:HWP])
    for d in range(1, D):
        blk = slice(d * HWP, (d + 1) * HWP)               # lane-aligned slices
        rm = jnp.maximum(rm, jnp.maximum(ph0[:, blk], ph1[:, blk]))
    rmf = jnp.concatenate([rm] * D, axis=1)
    e0 = jnp.exp(ph0 - rmf)
    e1 = jnp.exp(ph1 - rmf)
    den = e0[:, 0:HWP] + e1[:, 0:HWP]
    for d in range(1, D):
        blk = slice(d * HWP, (d + 1) * HWP)
        den = den + e0[:, blk] + e1[:, blk]
    inv = pl.reciprocal(den, approx=True)                 # EUP slot
    inv = inv * (2.0 - den * inv)                         # one Newton step
    invf = jnp.concatenate([inv] * D, axis=1)
    out_ref[0, 0, :, :] = e0 * invf
    out_ref[0, 1, :, :] = e1 * invf


# --------------------------------------------------------------------------- #
# Host-side helpers                                                            #
# --------------------------------------------------------------------------- #

def _build_masks(D, h, w, HWP):
    """Precompute the 0/1 validity masks for all roll-based shifts."""
    hw = h * w
    DHWP = D * HWP
    j = np.arange(DHWP)
    d = j // HWP
    rem = j % HWP
    y = rem // w
    x = rem % w
    valid_pos = rem < hw

    # Cost-volume x-shift masks: (D, HWP).
    i2 = np.arange(HWP)
    x2 = i2 % w
    vp2 = i2 < hw
    maskx = np.zeros((D, HWP), np.float32)
    for dd in range(D):
        s = D // 2 - dd
        maskx[dd] = (vp2 & (x2 + s >= 0) & (x2 + s < w)).astype(np.float32)

    # layer3 3x3x3 tap masks: (27, 2*D*HWP)  (same mask for both cv halves).
    m3 = np.zeros((27, DHWP), np.float32)
    t = 0
    for dz in (-1, 0, 1):
        for dy in (-1, 0, 1):
            for dx in (-1, 0, 1):
                ok = (valid_pos
                      & (d + dz >= 0) & (d + dz < D)
                      & (y + dy >= 0) & (y + dy < h)
                      & (x + dx >= 0) & (x + dx < w))
                m3[t] = ok.astype(np.float32)
                t += 1
    m3 = np.tile(m3, (1, 2))

    # layer4 polyphase shift masks: (8, D*HWP).
    m4 = np.zeros((8, DHWP), np.float32)
    for sz in (0, 1):
        for sy in (0, 1):
            for sx in (0, 1):
                si = sz * 4 + sy * 2 + sx
                ok = valid_pos & (d + sz < D) & (y + sy < h) & (x + sx < w)
                m4[si] = ok.astype(np.float32)

    return jnp.asarray(maskx), jnp.asarray(m3), jnp.asarray(m4)


def _flatten_pad_hw(x, HWP):
    b, c, h, w = x.shape
    xf = x.reshape(b, c, h * w)
    pad = HWP - h * w
    if pad:
        xf = jnp.pad(xf, ((0, 0), (0, 0), (0, pad)))
    return xf


def stereo_decoder_forward(feat_left, feat_right, params, max_disp_cfg):
    b, c, h, w = feat_left.shape
    D = max_disp_cfg // 2                    # cost-volume depth (== self.max_disp)
    hw = h * w
    HWP = ((hw + 127) // 128) * 128          # lane-dense padded spatial extent
    DHWP = D * HWP

    # ---- host-side parameter folding (done once) -----------------------------
    eps = 1e-5
    scale = params["gamma"] * jax.lax.rsqrt(params["var"] + eps)            # (c,)
    w1f = params["W1"] * scale[:, None, None, None, None]                   # (c,2c,3,3,3)
    w1a = jnp.transpose(w1f[:, :c].reshape(c, c, 27), (2, 0, 1))            # (27,c,c)
    w1b = jnp.transpose(w1f[:, c:].reshape(c, c, 27), (2, 0, 1))            # (27,c,c)
    b1 = (params["beta"] - params["mean"] * scale).reshape(c, 1)            # (c,1)

    # layer4 polyphase weights with the softmax(-x) negation folded in.  The
    # ConvTranspose bias is dropped: softmax is invariant to a constant shift.
    W2 = params["W2"][:, 0]                                                 # (c,3,3,3)

    def _k_of(p, s):      # kernel tap used by output parity p at input shift s
        if p == 0:
            return 1 if s == 0 else None
        return 2 if s == 0 else 0

    pws = [jnp.zeros((8, 4, c), jnp.float32), jnp.zeros((8, 4, c), jnp.float32)]
    for pz in (0, 1):
        for py in (0, 1):
            for px in (0, 1):
                r = py * 2 + px
                for sz in (0, 1):
                    kz = _k_of(pz, sz)
                    if kz is None:
                        continue
                    for sy in (0, 1):
                        ky = _k_of(py, sy)
                        if ky is None:
                            continue
                        for sx in (0, 1):
                            kx = _k_of(px, sx)
                            if kx is None:
                                continue
                            si = sz * 4 + sy * 2 + sx
                            pws[pz] = pws[pz].at[si, r, :].set(-W2[:, kz, ky, kx])
    pw0, pw1 = pws

    maskx, m3, m4 = _build_masks(D, h, w, HWP)
    left_f = _flatten_pad_hw(feat_left, HWP)
    right_f = _flatten_pad_hw(feat_right, HWP)

    kernel = functools.partial(_stereo_kernel, c=c, D=D, h=h, w=w, HWP=HWP)
    # TODO(synk): for production shapes add an h-tile grid axis (also marked
    # "parallel" so both v7x TensorCores stay busy for any batch), re-derive the
    # per-tile working set against v7x's 64 MiB VMEM, and optionally hold the
    # cost volume / layer3 activation in bf16 on v6e/v7x.
    phases = pl.pallas_call(
        kernel,
        grid=(b,),
        in_specs=[
            pl.BlockSpec((1, c, HWP), lambda i: (i, 0, 0)),
            pl.BlockSpec((1, c, HWP), lambda i: (i, 0, 0)),
            pl.BlockSpec((D, HWP), lambda i: (0, 0)),
            pl.BlockSpec((27, 2 * DHWP), lambda i: (0, 0)),
            pl.BlockSpec((8, DHWP), lambda i: (0, 0)),
            pl.BlockSpec((27, c, c), lambda i: (0, 0, 0)),
            pl.BlockSpec((27, c, c), lambda i: (0, 0, 0)),
            pl.BlockSpec((c, 1), lambda i: (0, 0)),
            pl.BlockSpec((8, 4, c), lambda i: (0, 0, 0)),
            pl.BlockSpec((8, 4, c), lambda i: (0, 0, 0)),
        ],
        out_specs=pl.BlockSpec((1, 2, 4, DHWP), lambda i: (i, 0, 0, 0)),
        out_shape=jax.ShapeDtypeStruct((b, 2, 4, DHWP), jnp.float32),
        compiler_params=pltpu.CompilerParams(
            dimension_semantics=("parallel",),     # batch across cores
            vmem_limit_bytes=32 * 1024 * 1024,
        ),
    )(left_f, right_f, maskx, m3, m4, w1a, w1b, b1, pw0, pw1)

    # ---- host-side layout glue: un-pad + interleave the 8 ConvT phases ------
    out = phases.reshape(b, 2, 2, 2, D, HWP)[..., :hw]
    out = out.reshape(b, 2, 2, 2, D, h, w)
    out = out.transpose(0, 4, 1, 5, 2, 6, 3).reshape(b, 2 * D, 2 * h, 2 * w)
    return out


# --------------------------------------------------------------------------- #
# Deterministic parameters                                                     #
# --------------------------------------------------------------------------- #

def init_params(key, base_channels):
    c = base_channels
    ks = jax.random.split(key, 7)
    return dict(
        W1=0.1 * jax.random.normal(ks[0], (c, 2 * c, 3, 3, 3), jnp.float32),
        gamma=1.0 + 0.1 * jax.random.normal(ks[1], (c,), jnp.float32),
        beta=0.1 * jax.random.normal(ks[2], (c,), jnp.float32),
        mean=0.1 * jax.random.normal(ks[3], (c,), jnp.float32),
        var=jax.random.uniform(ks[4], (c,), jnp.float32, 0.5, 1.5),
        W2=0.1 * jax.random.normal(ks[5], (c, 1, 3, 3, 3), jnp.float32),
        b2=0.1 * jax.random.normal(ks[6], (1,), jnp.float32),
    )


# --------------------------------------------------------------------------- #
# Plain-JAX reference (eval-mode BatchNorm)                                    #
# --------------------------------------------------------------------------- #

def reference_forward(feat_left, feat_right, params, max_disp_cfg):
    D = max_disp_cfg // 2
    b, c, h, w = feat_left.shape
    padded_left = jnp.pad(feat_left, ((0, 0), (0, 0), (0, 0), (D // 2, D // 2)))
    costs = []
    for d in range(D):
        padded_right = jnp.pad(feat_right, ((0, 0), (0, 0), (0, 0), (d, D - d)))
        cost = jnp.concatenate(
            [padded_left ** 2 + padded_right ** 2 / c,
             padded_left * padded_right / c], axis=1)
        costs.append(cost)
    cv = jnp.concatenate(costs, axis=1)
    cv = cv.reshape(b, D, 2 * c, h, w + D).transpose(0, 2, 1, 3, 4)
    cv = cv[:, :, :, :, D // 2:w + D // 2]

    y = jax.lax.conv_general_dilated(
        cv, params["W1"], window_strides=(1, 1, 1),
        padding=((1, 1), (1, 1), (1, 1)),
        dimension_numbers=("NCDHW", "OIDHW", "NCDHW"),
        precision=jax.lax.Precision.HIGHEST)
    eps = 1e-5
    sc = (params["gamma"] / jnp.sqrt(params["var"] + eps))[None, :, None, None, None]
    y = (y - params["mean"][None, :, None, None, None]) * sc \
        + params["beta"][None, :, None, None, None]
    y = jnp.maximum(y, 0.0)

    w2 = jnp.flip(params["W2"], axis=(2, 3, 4)).transpose(1, 0, 2, 3, 4)  # (1,c,3,3,3)
    out = jax.lax.conv_general_dilated(
        y, w2, window_strides=(1, 1, 1),
        padding=((1, 2), (1, 2), (1, 2)), lhs_dilation=(2, 2, 2),
        dimension_numbers=("NCDHW", "OIDHW", "NCDHW"),
        precision=jax.lax.Precision.HIGHEST)
    out = out + params["b2"][None, :, None, None, None]
    out = out[:, 0]                                   # torch .squeeze() (b > 1)
    return jax.nn.softmax(-out, axis=1)


# --------------------------------------------------------------------------- #
# Main                                                                         #
# --------------------------------------------------------------------------- #

if __name__ == "__main__":
    base_channels = 4
    max_disp_cfg = 8          # config.max_disp -> self.max_disp = 4 -> 8 output bins
    b, h, w = 2, 8, 8

    key = jax.random.PRNGKey(0)
    k_l, k_r, k_p = jax.random.split(key, 3)
    feat_left = jax.random.normal(k_l, (b, base_channels, h, w), jnp.float32)
    feat_right = jax.random.normal(k_r, (b, base_channels, h, w), jnp.float32)
    params = init_params(k_p, base_channels)

    logits = jax.block_until_ready(
        stereo_decoder_forward(feat_left, feat_right, params, max_disp_cfg))
    assert logits.shape == (b, max_disp_cfg, 2 * h, 2 * w), logits.shape

    ref = jax.block_until_ready(
        reference_forward(feat_left, feat_right, params, max_disp_cfg))
    max_err = float(jnp.max(jnp.abs(logits - ref)))
    assert max_err < 1e-3, f"mismatch vs reference: {max_err}"

    print("KERNEL_OK")
</pallas_src>

<mosaic_0001>
module attributes {stable_mosaic.version = 11 : i64} {
  func.func @_stereo_kernel(%arg0: i32, %arg1: memref<1x4x128xf32, #tpu.memory_space<vmem>>, %arg2: memref<1x4x128xf32, #tpu.memory_space<vmem>>, %arg3: memref<4x128xf32, #tpu.memory_space<vmem>>, %arg4: memref<27x1024xf32, #tpu.memory_space<vmem>>, %arg5: memref<8x512xf32, #tpu.memory_space<vmem>>, %arg6: memref<27x4x4xf32, #tpu.memory_space<vmem>>, %arg7: memref<27x4x4xf32, #tpu.memory_space<vmem>>, %arg8: memref<4x1xf32, #tpu.memory_space<vmem>>, %arg9: memref<8x4x4xf32, #tpu.memory_space<vmem>>, %arg10: memref<8x4x4xf32, #tpu.memory_space<vmem>>, %arg11: memref<1x2x4x512xf32, #tpu.memory_space<vmem>>) attributes {dimension_semantics = [#tpu.dimension_semantics<parallel>], iteration_bounds = array<i64: 2>, scalar_prefetch = 0 : i64, scratch_operands = 0 : i64, tpu.core_type = #tpu.core_type<tc>, window_params = [{transform_indices = @transform_0, window_bounds = array<i64: 1, 4, 128>}, {transform_indices = @transform_1, window_bounds = array<i64: 1, 4, 128>}, {pipeline_mode = #tpu.pipeline_mode<synchronous>, transform_indices = @transform_2, window_bounds = array<i64: 4, 128>}, {pipeline_mode = #tpu.pipeline_mode<synchronous>, transform_indices = @transform_3, window_bounds = array<i64: 27, 1024>}, {pipeline_mode = #tpu.pipeline_mode<synchronous>, transform_indices = @transform_4, window_bounds = array<i64: 8, 512>}, {pipeline_mode = #tpu.pipeline_mode<synchronous>, transform_indices = @transform_5, window_bounds = array<i64: 27, 4, 4>}, {pipeline_mode = #tpu.pipeline_mode<synchronous>, transform_indices = @transform_6, window_bounds = array<i64: 27, 4, 4>}, {pipeline_mode = #tpu.pipeline_mode<synchronous>, transform_indices = @transform_7, window_bounds = array<i64: 4, 1>}, {pipeline_mode = #tpu.pipeline_mode<synchronous>, transform_indices = @transform_8, window_bounds = array<i64: 8, 4, 4>}, {pipeline_mode = #tpu.pipeline_mode<synchronous>, transform_indices = @transform_9, window_bounds = array<i64: 8, 4, 4>}, {transform_indices = @transform_10, window_bounds = array<i64: 1, 2, 4, 512>}]} {
    %c0 = arith.constant 0 : index
    %c0_0 = arith.constant 0 : index
    %c0_1 = arith.constant 0 : index
    %0 = vector.load %arg1[%c0, %c0_0, %c0_1] : memref<1x4x128xf32, #tpu.memory_space<vmem>>, vector<1x4x128xf32>
    %1 = vector.shape_cast %0 : vector<1x4x128xf32> to vector<4x128xf32>
    %c0_2 = arith.constant 0 : index
    %c0_3 = arith.constant 0 : index
    %c0_4 = arith.constant 0 : index
    %2 = vector.load %arg2[%c0_2, %c0_3, %c0_4] : memref<1x4x128xf32, #tpu.memory_space<vmem>>, vector<1x4x128xf32>
    %3 = vector.shape_cast %2 : vector<1x4x128xf32> to vector<4x128xf32>
    %4 = arith.mulf %1, %1 : vector<4x128xf32>
    %c126_i32 = arith.constant 126 : i32
    %5 = tpu.dynamic_rotate %3 by %c126_i32 dim 1 : vector<4x128xf32>, i32 -> vector<4x128xf32>
    %c0_5 = arith.constant 0 : index
    %c0_6 = arith.constant 0 : index
    %6 = vector.load %arg3[%c0_5, %c0_6] : memref<4x128xf32, #tpu.memory_space<vmem>>, vector<1x128xf32>
    %7 = vector.broadcast %6 : vector<1x128xf32> to vector<4x128xf32>
    %8 = arith.mulf %5, %7 : vector<4x128xf32>
    %cst = arith.constant 2.500000e-01 : f32
    %9 = vector.broadcast %cst : f32 to vector<4x128xf32>
    %10 = arith.mulf %8, %9 : vector<4x128xf32>
    %11 = arith.mulf %8, %10 : vector<4x128xf32>
    %12 = arith.addf %4, %11 : vector<4x128xf32>
    %13 = arith.mulf %1, %10 : vector<4x128xf32>
    %c127_i32 = arith.constant 127 : i32
    %14 = tpu.dynamic_rotate %3 by %c127_i32 dim 1 : vector<4x128xf32>, i32 -> vector<4x128xf32>
    %c1 = arith.constant 1 : index
    %c0_7 = arith.constant 0 : index
    %15 = vector.load %arg3[%c1, %c0_7] : memref<4x128xf32, #tpu.memory_space<vmem>>, vector<1x128xf32>
    %16 = vector.broadcast %15 : vector<1x128xf32> to vector<4x128xf32>
    %17 = arith.mulf %14, %16 : vector<4x128xf32>
    %cst_8 = arith.constant 2.500000e-01 : f32
    %18 = vector.broadcast %cst_8 : f32 to vector<4x128xf32>
    %19 = arith.mulf %17, %18 : vector<4x128xf32>
    %20 = arith.mulf %17, %19 : vector<4x128xf32>
    %21 = arith.addf %4, %20 : vector<4x128xf32>
    %22 = arith.mulf %1, %19 : vector<4x128xf32>
    %c2 = arith.constant 2 : index
    %c0_9 = arith.constant 0 : index
    %23 = vector.load %arg3[%c2, %c0_9] : memref<4x128xf32, #tpu.memory_space<vmem>>, vector<1x128xf32>
    %24 = vector.broadcast %23 : vector<1x128xf32> to vector<4x128xf32>
    %25 = arith.mulf %3, %24 : vector<4x128xf32>
    %cst_10 = arith.constant 2.500000e-01 : f32
    %26 = vector.broadcast %cst_10 : f32 to vector<4x128xf32>
    %27 = arith.mulf %25, %26 : vector<4x128xf32>
    %28 = arith.mulf %25, %27 : vector<4x128xf32>
    %29 = arith.addf %4, %28 : vector<4x128xf32>
    %30 = arith.mulf %1, %27 : vector<4x128xf32>
    %c1_i32 = arith.constant 1 : i32
    %31 = tpu.dynamic_rotate %3 by %c1_i32 dim 1 : vector<4x128xf32>, i32 -> vector<4x128xf32>
    %c3 = arith.constant 3 : index
    %c0_11 = arith.constant 0 : index
    %32 = vector.load %arg3[%c3, %c0_11] : memref<4x128xf32, #tpu.memory_space<vmem>>, vector<1x128xf32>
    %33 = vector.broadcast %32 : vector<1x128xf32> to vector<4x128xf32>
    %34 = arith.mulf %31, %33 : vector<4x128xf32>
    %cst_12 = arith.constant 2.500000e-01 : f32
    %35 = vector.broadcast %cst_12 : f32 to vector<4x128xf32>
    %36 = arith.mulf %34, %35 : vector<4x128xf32>
    %37 = arith.mulf %34, %36 : vector<4x128xf32>
    %38 = arith.addf %4, %37 : vector<4x128xf32>
    %39 = arith.mulf %1, %36 : vector<4x128xf32>
    %40 = tpu.concatenate %12, %21, %29, %38, %13, %22, %30, %39 in 1 : vector<4x128xf32>, vector<4x128xf32>, vector<4x128xf32>, vector<4x128xf32>, vector<4x128xf32>, vector<4x128xf32>, vector<4x128xf32>, vector<4x128xf32> -> vector<4x1024xf32>
    %c0_13 = arith.constant 0 : index
    %c0_14 = arith.constant 0 : index
    %41 = vector.load %arg8[%c0_13, %c0_14] : memref<4x1xf32, #tpu.memory_space<vmem>>, vector<4x1xf32>
    %42 = vector.shape_cast %41 : vector<4x1xf32> to vector<4x1xf32>
    %43 = vector.broadcast %42 : vector<4x1xf32> to vector<4x512xf32>
    %c137_i32 = arith.constant 137 : i32
    %44 = tpu.dynamic_rotate %40 by %c137_i32 dim 1 : vector<4x1024xf32>, i32 -> vector<4x1024xf32>
    %c0_15 = arith.constant 0 : index
    %c0_16 = arith.constant 0 : index
    %45 = vector.load %arg4[%c0_15, %c0_16] : memref<27x1024xf32, #tpu.memory_space<vmem>>, vector<1x1024xf32>
    %46 = vector.broadcast %45 : vector<1x1024xf32> to vector<4x1024xf32>
    %47 = arith.mulf %44, %46 : vector<4x1024xf32>
    %c0_17 = arith.constant 0 : index
    %c0_18 = arith.constant 0 : index
    %c0_19 = arith.constant 0 : index
    %48 = vector.load %arg6[%c0_17, %c0_18, %c0_19] : memref<27x4x4xf32, #tpu.memory_space<vmem>>, vector<1x4x4xf32>
    %49 = vector.shape_cast %48 : vector<1x4x4xf32> to vector<4x4xf32>
    %50 = vector.extract_strided_slice %47 {offsets = [0, 0], sizes = [4, 512], strides = [1, 1]} : vector<4x1024xf32> to vector<4x512xf32>
    %cst_20 = arith.constant dense<0.000000e+00> : vector<4x512xf32>
    %51 = tpu.matmul %49, %50, %cst_20 {dimension_numbers = #tpu.dot_dimension_numbers<[1], [0], [0], [1], [0, 0, 1, 1], [], []>} : vector<4x4xf32>, vector<4x512xf32>, vector<4x512xf32> -> vector<4x512xf32>
    %52 = arith.addf %43, %51 : vector<4x512xf32>
    %c0_21 = arith.constant 0 : index
    %c0_22 = arith.constant 0 : index
    %c0_23 = arith.constant 0 : index
    %53 = vector.load %arg7[%c0_21, %c0_22, %c0_23] : memref<27x4x4xf32, #tpu.memory_space<vmem>>, vector<1x4x4xf32>
    %54 = vector.shape_cast %53 : vector<1x4x4xf32> to vector<4x4xf32>
    %55 = vector.extract_strided_slice %47 {offsets = [0, 512], sizes = [4, 512], strides = [1, 1]} : vector<4x1024xf32> to vector<4x512xf32>
    %cst_24 = arith.constant dense<0.000000e+00> : vector<4x512xf32>
    %56 = tpu.matmul %54, %55, %cst_24 {dimension_numbers = #tpu.dot_dimension_numbers<[1], [0], [0], [1], [0, 0, 1, 1], [], []>} : vector<4x4xf32>, vector<4x512xf32>, vector<4x512xf32> -> vector<4x512xf32>
    %57 = arith.addf %52, %56 : vector<4x512xf32>
    %c136_i32 = arith.constant 136 : i32
    %58 = tpu.dynamic_rotate %40 by %c136_i32 dim 1 : vector<4x1024xf32>, i32 -> vector<4x1024xf32>
    %c1_25 = arith.constant 1 : index
    %c0_26 = arith.constant 0 : index
    %59 = vector.load %arg4[%c1_25, %c0_26] : memref<27x1024xf32, #tpu.memory_space<vmem>>, vector<1x1024xf32>
    %60 = vector.broadcast %59 : vector<1x1024xf32> to vector<4x1024xf32>
    %61 = arith.mulf %58, %60 : vector<4x1024xf32>
    %c1_27 = arith.constant 1 : index
    %c0_28 = arith.constant 0 : index
    %c0_29 = arith.constant 0 : index
    %62 = vector.load %arg6[%c1_27, %c0_28, %c0_29] : memref<27x4x4xf32, #tpu.memory_space<vmem>>, vector<1x4x4xf32>
    %63 = vector.shape_cast %62 : vector<1x4x4xf32> to vector<4x4xf32>
    %64 = vector.extract_strided_slice %61 {offsets = [0, 0], sizes = [4, 512], strides = [1, 1]} : vector<4x1024xf32> to vector<4x512xf32>
    %cst_30 = arith.constant dense<0.000000e+00> : vector<4x512xf32>
    %65 = tpu.matmul %63, %64, %cst_30 {dimension_numbers = #tpu.dot_dimension_numbers<[1], [0], [0], [1], [0, 0, 1, 1], [], []>} : vector<4x4xf32>, vector<4x512xf32>, vector<4x512xf32> -> vector<4x512xf32>
    %66 = arith.addf %57, %65 : vector<4x512xf32>
    %c1_31 = arith.constant 1 : index
    %c0_32 = arith.constant 0 : index
    %c0_33 = arith.constant 0 : index
    %67 = vector.load %arg7[%c1_31, %c0_32, %c0_33] : memref<27x4x4xf32, #tpu.memory_space<vmem>>, vector<1x4x4xf32>
    %68 = vector.shape_cast %67 : vector<1x4x4xf32> to vector<4x4xf32>
    %69 = vector.extract_strided_slice %61 {offsets = [0, 512], sizes = [4, 512], strides = [1, 1]} : vector<4x1024xf32> to vector<4x512xf32>
    %cst_34 = arith.constant dense<0.000000e+00> : vector<4x512xf32>
    %70 = tpu.matmul %68, %69, %cst_34 {dimension_numbers = #tpu.dot_dimension_numbers<[1], [0], [0], [1], [0, 0, 1, 1], [], []>} : vector<4x4xf32>, vector<4x512xf32>, vector<4x512xf32> -> vector<4x512xf32>
    %71 = arith.addf %66, %70 : vector<4x512xf32>
    %c135_i32 = arith.constant 135 : i32
    %72 = tpu.dynamic_rotate %40 by %c135_i32 dim 1 : vector<4x1024xf32>, i32 -> vector<4x1024xf32>
    %c2_35 = arith.constant 2 : index
    %c0_36 = arith.constant 0 : index
    %73 = vector.load %arg4[%c2_35, %c0_36] : memref<27x1024xf32, #tpu.memory_space<vmem>>, vector<1x1024xf32>
    %74 = vector.broadcast %73 : vector<1x1024xf32> to vector<4x1024xf32>
    %75 = arith.mulf %72, %74 : vector<4x1024xf32>
    %c2_37 = arith.constant 2 : index
    %c0_38 = arith.constant 0 : index
    %c0_39 = arith.constant 0 : index
    %76 = vector.load %arg6[%c2_37, %c0_38, %c0_39] : memref<27x4x4xf32, #tpu.memory_space<vmem>>, vector<1x4x4xf32>
    %77 = vector.shape_cast %76 : vector<1x4x4xf32> to vector<4x4xf32>
    %78 = vector.extract_strided_slice %75 {offsets = [0, 0], sizes = [4, 512], strides = [1, 1]} : vector<4x1024xf32> to vector<4x512xf32>
    %cst_40 = arith.constant dense<0.000000e+00> : vector<4x512xf32>
    %79 = tpu.matmul %77, %78, %cst_40 {dimension_numbers = #tpu.dot_dimension_numbers<[1], [0], [0], [1], [0, 0, 1, 1], [], []>} : vector<4x4xf32>, vector<4x512xf32>, vector<4x512xf32> -> vector<4x512xf32>
    %80 = arith.addf %71, %79 : vector<4x512xf32>
    %c2_41 = arith.constant 2 : index
    %c0_42 = arith.constant 0 : index
    %c0_43 = arith.constant 0 : index
    %81 = vector.load %arg7[%c2_41, %c0_42, %c0_43] : memref<27x4x4xf32, #tpu.memory_space<vmem>>, vector<1x4x4xf32>
    %82 = vector.shape_cast %81 : vector<1x4x4xf32> to vector<4x4xf32>
    %83 = vector.extract_strided_slice %75 {offsets = [0, 512], sizes = [4, 512], strides = [1, 1]} : vector<4x1024xf32> to vector<4x512xf32>
    %cst_44 = arith.constant dense<0.000000e+00> : vector<4x512xf32>
    %84 = tpu.matmul %82, %83, %cst_44 {dimension_numbers = #tpu.dot_dimension_numbers<[1], [0], [0], [1], [0, 0, 1, 1], [], []>} : vector<4x4xf32>, vector<4x512xf32>, vector<4x512xf32> -> vector<4x512xf32>
    %85 = arith.addf %80, %84 : vector<4x512xf32>
    %c129_i32 = arith.constant 129 : i32
    %86 = tpu.dynamic_rotate %40 by %c129_i32 dim 1 : vector<4x1024xf32>, i32 -> vector<4x1024xf32>
    %c3_45 = arith.constant 3 : index
    %c0_46 = arith.constant 0 : index
    %87 = vector.load %arg4[%c3_45, %c0_46] : memref<27x1024xf32, #tpu.memory_space<vmem>>, vector<1x1024xf32>
    %88 = vector.broadcast %87 : vector<1x1024xf32> to vector<4x1024xf32>
    %89 = arith.mulf %86, %88 : vector<4x1024xf32>
    %c3_47 = arith.constant 3 : index
    %c0_48 = arith.constant 0 : index
    %c0_49 = arith.constant 0 : index
    %90 = vector.load %arg6[%c3_47, %c0_48, %c0_49] : memref<27x4x4xf32, #tpu.memory_space<vmem>>, vector<1x4x4xf32>
    %91 = vector.shape_cast %90 : vector<1x4x4xf32> to vector<4x4xf32>
    %92 = vector.extract_strided_slice %89 {offsets = [0, 0], sizes = [4, 512], strides = [1, 1]} : vector<4x1024xf32> to vector<4x512xf32>
    %cst_50 = arith.constant dense<0.000000e+00> : vector<4x512xf32>
    %93 = tpu.matmul %91, %92, %cst_50 {dimension_numbers = #tpu.dot_dimension_numbers<[1], [0], [0], [1], [0, 0, 1, 1], [], []>} : vector<4x4xf32>, vector<4x512xf32>, vector<4x512xf32> -> vector<4x512xf32>
    %94 = arith.addf %85, %93 : vector<4x512xf32>
    %c3_51 = arith.constant 3 : index
    %c0_52 = arith.constant 0 : index
    %c0_53 = arith.constant 0 : index
    %95 = vector.load %arg7[%c3_51, %c0_52, %c0_53] : memref<27x4x4xf32, #tpu.memory_space<vmem>>, vector<1x4x4xf32>
    %96 = vector.shape_cast %95 : vector<1x4x4xf32> to vector<4x4xf32>
    %97 = vector.extract_strided_slice %89 {offsets = [0, 512], sizes = [4, 512], strides = [1, 1]} : vector<4x1024xf32> to vector<4x512xf32>
    %cst_54 = arith.constant dense<0.000000e+00> : vector<4x512xf32>
    %98 = tpu.matmul %96, %97, %cst_54 {dimension_numbers = #tpu.dot_dimension_numbers<[1], [0], [0], [1], [0, 0, 1, 1], [], []>} : vector<4x4xf32>, vector<4x512xf32>, vector<4x512xf32> -> vector<4x512xf32>
    %99 = arith.addf %94, %98 : vector<4x512xf32>
    %c128_i32 = arith.constant 128 : i32
    %100 = tpu.dynamic_rotate %40 by %c128_i32 dim 1 : vector<4x1024xf32>, i32 -> vector<4x1024xf32>
    %c4 = arith.constant 4 : index
    %c0_55 = arith.constant 0 : index
    %101 = vector.load %arg4[%c4, %c0_55] : memref<27x1024xf32, #tpu.memory_space<vmem>>, vector<1x1024xf32>
    %102 = vector.broadcast %101 : vector<1x1024xf32> to vector<4x1024xf32>
    %103 = arith.mulf %100, %102 : vector<4x1024xf32>
    %c4_56 = arith.constant 4 : index
    %c0_57 = arith.constant 0 : index
    %c0_58 = arith.constant 0 : index
    %104 = vector.load %arg6[%c4_56, %c0_57, %c0_58] : memref<27x4x4xf32, #tpu.memory_space<vmem>>, vector<1x4x4xf32>
    %105 = vector.shape_cast %104 : vector<1x4x4xf32> to vector<4x4xf32>
    %106 = vector.extract_strided_slice %103 {offsets = [0, 0], sizes = [4, 512], strides = [1, 1]} : vector<4x1024xf32> to vector<4x512xf32>
    %cst_59 = arith.constant dense<0.000000e+00> : vector<4x512xf32>
    %107 = tpu.matmul %105, %106, %cst_59 {dimension_numbers = #tpu.dot_dimension_numbers<[1], [0], [0], [1], [0, 0, 1, 1], [], []>} : vector<4x4xf32>, vector<4x512xf32>, vector<4x512xf32> -> vector<4x512xf32>
    %108 = arith.addf %99, %107 : vector<4x512xf32>
    %c4_60 = arith.constant 4 : index
    %c0_61 = arith.constant 0 : index
    %c0_62 = arith.constant 0 : index
    %109 = vector.load %arg7[%c4_60, %c0_61, %c0_62] : memref<27x4x4xf32, #tpu.memory_space<vmem>>, vector<1x4x4xf32>
    %110 = vector.shape_cast %109 : vector<1x4x4xf32> to vector<4x4xf32>
    %111 = vector.extract_strided_slice %103 {offsets = [0, 512], sizes = [4, 512], strides = [1, 1]} : vector<4x1024xf32> to vector<4x512xf32>
    %cst_63 = arith.constant dense<0.000000e+00> : vector<4x512xf32>
    %112 = tpu.matmul %110, %111, %cst_63 {dimension_numbers = #tpu.dot_dimension_numbers<[1], [0], [0], [1], [0, 0, 1, 1], [], []>} : vector<4x4xf32>, vector<4x512xf32>, vector<4x512xf32> -> vector<4x512xf32>
    %113 = arith.addf %108, %112 : vector<4x512xf32>
    %c127_i32_64 = arith.constant 127 : i32
    %114 = tpu.dynamic_rotate %40 by %c127_i32_64 dim 1 : vector<4x1024xf32>, i32 -> vector<4x1024xf32>
    %c5 = arith.constant 5 : index
    %c0_65 = arith.constant 0 : index
    %115 = vector.load %arg4[%c5, %c0_65] : memref<27x1024xf32, #tpu.memory_space<vmem>>, vector<1x1024xf32>
    %116 = vector.broadcast %115 : vector<1x1024xf32> to vector<4x1024xf32>
    %117 = arith.mulf %114, %116 : vector<4x1024xf32>
    %c5_66 = arith.constant 5 : index
    %c0_67 = arith.constant 0 : index
    %c0_68 = arith.constant 0 : index
    %118 = vector.load %arg6[%c5_66, %c0_67, %c0_68] : memref<27x4x4xf32, #tpu.memory_space<vmem>>, vector<1x4x4xf32>
    %119 = vector.shape_cast %118 : vector<1x4x4xf32> to vector<4x4xf32>
    %120 = vector.extract_strided_slice %117 {offsets = [0, 0], sizes = [4, 512], strides = [1, 1]} : vector<4x1024xf32> to vector<4x512xf32>
    %cst_69 = arith.constant dense<0.000000e+00> : vector<4x512xf32>
    %121 = tpu.matmul %119, %120, %cst_69 {dimension_numbers = #tpu.dot_dimension_numbers<[1], [0], [0], [1], [0, 0, 1, 1], [], []>} : vector<4x4xf32>, vector<4x512xf32>, vector<4x512xf32> -> vector<4x512xf32>
    %122 = arith.addf %113, %121 : vector<4x512xf32>
    %c5_70 = arith.constant 5 : index
    %c0_71 = arith.constant 0 : index
    %c0_72 = arith.constant 0 : index
    %123 = vector.load %arg7[%c5_70, %c0_71, %c0_72] : memref<27x4x4xf32, #tpu.memory_space<vmem>>, vector<1x4x4xf32>
    %124 = vector.shape_cast %123 : vector<1x4x4xf32> to vector<4x4xf32>
    %125 = vector.extract_strided_slice %117 {offsets = [0, 512], sizes = [4, 512], strides = [1, 1]} : vector<4x1024xf32> to vector<4x512xf32>
    %cst_73 = arith.constant dense<0.000000e+00> : vector<4x512xf32>
    %126 = tpu.matmul %124, %125, %cst_73 {dimension_numbers = #tpu.dot_dimension_numbers<[1], [0], [0], [1], [0, 0, 1, 1], [], []>} : vector<4x4xf32>, vector<4x512xf32>, vector<4x512xf32> -> vector<4x512xf32>
    %127 = arith.addf %122, %126 : vector<4x512xf32>
    %c121_i32 = arith.constant 121 : i32
    %128 = tpu.dynamic_rotate %40 by %c121_i32 dim 1 : vector<4x1024xf32>, i32 -> vector<4x1024xf32>
    %c6 = arith.constant 6 : index
    %c0_74 = arith.constant 0 : index
    %129 = vector.load %arg4[%c6, %c0_74] : memref<27x1024xf32, #tpu.memory_space<vmem>>, vector<1x1024xf32>
    %130 = vector.broadcast %129 : vector<1x1024xf32> to vector<4x1024xf32>
    %131 = arith.mulf %128, %130 : vector<4x1024xf32>
    %c6_75 = arith.constant 6 : index
    %c0_76 = arith.constant 0 : index
    %c0_77 = arith.constant 0 : index
    %132 = vector.load %arg6[%c6_75, %c0_76, %c0_77] : memref<27x4x4xf32, #tpu.memory_space<vmem>>, vector<1x4x4xf32>
    %133 = vector.shape_cast %132 : vector<1x4x4xf32> to vector<4x4xf32>
    %134 = vector.extract_strided_slice %131 {offsets = [0, 0], sizes = [4, 512], strides = [1, 1]} : vector<4x1024xf32> to vector<4x512xf32>
    %cst_78 = arith.constant dense<0.000000e+00> : vector<4x512xf32>
    %135 = tpu.matmul %133, %134, %cst_78 {dimension_numbers = #tpu.dot_dimension_numbers<[1], [0], [0], [1], [0, 0, 1, 1], [], []>} : vector<4x4xf32>, vector<4x512xf32>, vector<4x512xf32> -> vector<4x512xf32>
    %136 = arith.addf %127, %135 : vector<4x512xf32>
    %c6_79 = arith.constant 6 : index
    %c0_80 = arith.constant 0 : index
    %c0_81 = arith.constant 0 : index
    %137 = vector.load %arg7[%c6_79, %c0_80, %c0_81] : memref<27x4x4xf32, #tpu.memory_space<vmem>>, vector<1x4x4xf32>
    %138 = vector.shape_cast %137 : vector<1x4x4xf32> to vector<4x4xf32>
    %139 = vector.extract_strided_slice %131 {offsets = [0, 512], sizes = [4, 512], strides = [1, 1]} : vector<4x1024xf32> to vector<4x512xf32>
    %cst_82 = arith.constant dense<0.000000e+00> : vector<4x512xf32>
    %140 = tpu.matmul %138, %139, %cst_82 {dimension_numbers = #tpu.dot_dimension_numbers<[1], [0], [0], [1], [0, 0, 1, 1], [], []>} : vector<4x4xf32>, vector<4x512xf32>, vector<4x512xf32> -> vector<4x512xf32>
    %141 = arith.addf %136, %140 : vector<4x512xf32>
    %c120_i32 = arith.constant 120 : i32
    %142 = tpu.dynamic_rotate %40 by %c120_i32 dim 1 : vector<4x1024xf32>, i32 -> vector<4x1024xf32>
    %c7 = arith.constant 7 : index
    %c0_83 = arith.constant 0 : index
    %143 = vector.load %arg4[%c7, %c0_83] : memref<27x1024xf32, #tpu.memory_space<vmem>>, vector<1x1024xf32>
    %144 = vector.broadcast %143 : vector<1x1024xf32> to vector<4x1024xf32>
    %145 = arith.mulf %142, %144 : vector<4x1024xf32>
    %c7_84 = arith.constant 7 : index
    %c0_85 = arith.constant 0 : index
    %c0_86 = arith.constant 0 : index
    %146 = vector.load %arg6[%c7_84, %c0_85, %c0_86] : memref<27x4x4xf32, #tpu.memory_space<vmem>>, vector<1x4x4xf32>
    %147 = vector.shape_cast %146 : vector<1x4x4xf32> to vector<4x4xf32>
    %148 = vector.extract_strided_slice %145 {offsets = [0, 0], sizes = [4, 512], strides = [1, 1]} : vector<4x1024xf32> to vector<4x512xf32>
    %cst_87 = arith.constant dense<0.000000e+00> : vector<4x512xf32>
    %149 = tpu.matmul %147, %148, %cst_87 {dimension_numbers = #tpu.dot_dimension_numbers<[1], [0], [0], [1], [0, 0, 1, 1], [], []>} : vector<4x4xf32>, vector<4x512xf32>, vector<4x512xf32> -> vector<4x512xf32>
    %150 = arith.addf %141, %149 : vector<4x512xf32>
    %c7_88 = arith.constant 7 : index
    %c0_89 = arith.constant 0 : index
    %c0_90 = arith.constant 0 : index
    %151 = vector.load %arg7[%c7_88, %c0_89, %c0_90] : memref<27x4x4xf32, #tpu.memory_space<vmem>>, vector<1x4x4xf32>
    %152 = vector.shape_cast %151 : vector<1x4x4xf32> to vector<4x4xf32>
    %153 = vector.extract_strided_slice %145 {offsets = [0, 512], sizes = [4, 512], strides = [1, 1]} : vector<4x1024xf32> to vector<4x512xf32>
    %cst_91 = arith.constant dense<0.000000e+00> : vector<4x512xf32>
    %154 = tpu.matmul %152, %153, %cst_91 {dimension_numbers = #tpu.dot_dimension_numbers<[1], [0], [0], [1], [0, 0, 1, 1], [], []>} : vector<4x4xf32>, vector<4x512xf32>, vector<4x512xf32> -> vector<4x512xf32>
    %155 = arith.addf %150, %154 : vector<4x512xf32>
    %c119_i32 = arith.constant 119 : i32
    %156 = tpu.dynamic_rotate %40 by %c119_i32 dim 1 : vector<4x1024xf32>, i32 -> vector<4x1024xf32>
    %c8 = arith.constant 8 : index
    %c0_92 = arith.constant 0 : index
    %157 = vector.load %arg4[%c8, %c0_92] : memref<27x1024xf32, #tpu.memory_space<vmem>>, vector<1x1024xf32>
    %158 = vector.broadcast %157 : vector<1x1024xf32> to vector<4x1024xf32>
    %159 = arith.mulf %156, %158 : vector<4x1024xf32>
    %c8_93 = arith.constant 8 : index
    %c0_94 = arith.constant 0 : index
    %c0_95 = arith.constant 0 : index
    %160 = vector.load %arg6[%c8_93, %c0_94, %c0_95] : memref<27x4x4xf32, #tpu.memory_space<vmem>>, vector<1x4x4xf32>
    %161 = vector.shape_cast %160 : vector<1x4x4xf32> to vector<4x4xf32>
    %162 = vector.extract_strided_slice %159 {offsets = [0, 0], sizes = [4, 512], strides = [1, 1]} : vector<4x1024xf32> to vector<4x512xf32>
    %cst_96 = arith.constant dense<0.000000e+00> : vector<4x512xf32>
    %163 = tpu.matmul %161, %162, %cst_96 {dimension_numbers = #tpu.dot_dimension_numbers<[1], [0], [0], [1], [0, 0, 1, 1], [], []>} : vector<4x4xf32>, vector<4x512xf32>, vector<4x512xf32> -> vector<4x512xf32>
    %164 = arith.addf %155, %163 : vector<4x512xf32>
    %c8_97 = arith.constant 8 : index
    %c0_98 = arith.constant 0 : index
    %c0_99 = arith.constant 0 : index
    %165 = vector.load %arg7[%c8_97, %c0_98, %c0_99] : memref<27x4x4xf32, #tpu.memory_space<vmem>>, vector<1x4x4xf32>
    %166 = vector.shape_cast %165 : vector<1x4x4xf32> to vector<4x4xf32>
    %167 = vector.extract_strided_slice %159 {offsets = [0, 512], sizes = [4, 512], strides = [1, 1]} : vector<4x1024xf32> to vector<4x512xf32>
    %cst_100 = arith.constant dense<0.000000e+00> : vector<4x512xf32>
    %168 = tpu.matmul %166, %167, %cst_100 {dimension_numbers = #tpu.dot_dimension_numbers<[1], [0], [0], [1], [0, 0, 1, 1], [], []>} : vector<4x4xf32>, vector<4x512xf32>, vector<4x512xf32> -> vector<4x512xf32>
    %169 = arith.addf %164, %168 : vector<4x512xf32>
    %c9_i32 = arith.constant 9 : i32
    %170 = tpu.dynamic_rotate %40 by %c9_i32 dim 1 : vector<4x1024xf32>, i32 -> vector<4x1024xf32>
    %c9 = arith.constant 9 : index
    %c0_101 = arith.constant 0 : index
    %171 = vector.load %arg4[%c9, %c0_101] : memref<27x1024xf32, #tpu.memory_space<vmem>>, vector<1x1024xf32>
    %172 = vector.broadcast %171 : vector<1x1024xf32> to vector<4x1024xf32>
    %173 = arith.mulf %170, %172 : vector<4x1024xf32>
    %c9_102 = arith.constant 9 : index
    %c0_103 = arith.constant 0 : index
    %c0_104 = arith.constant 0 : index
    %174 = vector.load %arg6[%c9_102, %c0_103, %c0_104] : memref<27x4x4xf32, #tpu.memory_space<vmem>>, vector<1x4x4xf32>
    %175 = vector.shape_cast %174 : vector<1x4x4xf32> to vector<4x4xf32>
    %176 = vector.extract_strided_slice %173 {offsets = [0, 0], sizes = [4, 512], strides = [1, 1]} : vector<4x1024xf32> to vector<4x512xf32>
    %cst_105 = arith.constant dense<0.000000e+00> : vector<4x512xf32>
    %177 = tpu.matmul %175, %176, %cst_105 {dimension_numbers = #tpu.dot_dimension_numbers<[1], [0], [0], [1], [0, 0, 1, 1], [], []>} : vector<4x4xf32>, vector<4x512xf32>, vector<4x512xf32> -> vector<4x512xf32>
    %178 = arith.addf %169, %177 : vector<4x512xf32>
    %c9_106 = arith.constant 9 : index
    %c0_107 = arith.constant 0 : index
    %c0_108 = arith.constant 0 : index
    %179 = vector.load %arg7[%c9_106, %c0_107, %c0_108] : memref<27x4x4xf32, #tpu.memory_space<vmem>>, vector<1x4x4xf32>
    %180 = vector.shape_cast %179 : vector<1x4x4xf32> to vector<4x4xf32>
    %181 = vector.extract_strided_slice %173 {offsets = [0, 512], sizes = [4, 512], strides = [1, 1]} : vector<4x1024xf32> to vector<4x512xf32>
    %cst_109 = arith.constant dense<0.000000e+00> : vector<4x512xf32>
    %182 = tpu.matmul %180, %181, %cst_109 {dimension_numbers = #tpu.dot_dimension_numbers<[1], [0], [0], [1], [0, 0, 1, 1], [], []>} : vector<4x4xf32>, vector<4x512xf32>, vector<4x512xf32> -> vector<4x512xf32>
    %183 = arith.addf %178, %182 : vector<4x512xf32>
    %c8_i32 = arith.constant 8 : i32
    %184 = tpu.dynamic_rotate %40 by %c8_i32 dim 1 : vector<4x1024xf32>, i32 -> vector<4x1024xf32>
    %c10 = arith.constant 10 : index
    %c0_110 = arith.constant 0 : index
    %185 = vector.load %arg4[%c10, %c0_110] : memref<27x1024xf32, #tpu.memory_space<vmem>>, vector<1x1024xf32>
    %186 = vector.broadcast %185 : vector<1x1024xf32> to vector<4x1024xf32>
    %187 = arith.mulf %184, %186 : vector<4x1024xf32>
    %c10_111 = arith.constant 10 : index
    %c0_112 = arith.constant 0 : index
    %c0_113 = arith.constant 0 : index
    %188 = vector.load %arg6[%c10_111, %c0_112, %c0_113] : memref<27x4x4xf32, #tpu.memory_space<vmem>>, vector<1x4x4xf32>
    %189 = vector.shape_cast %188 : vector<1x4x4xf32> to vector<4x4xf32>
    %190 = vector.extract_strided_slice %187 {offsets = [0, 0], sizes = [4, 512], strides = [1, 1]} : vector<4x1024xf32> to vector<4x512xf32>
    %cst_114 = arith.constant dense<0.000000e+00> : vector<4x512xf32>
    %191 = tpu.matmul %189, %190, %cst_114 {dimension_numbers = #tpu.dot_dimension_numbers<[1], [0], [0], [1], [0, 0, 1, 1], [], []>} : vector<4x4xf32>, vector<4x512xf32>, vector<4x512xf32> -> vector<4x512xf32>
    %192 = arith.addf %183, %191 : vector<4x512xf32>
    %c10_115 = arith.constant 10 : index
    %c0_116 = arith.constant 0 : index
    %c0_117 = arith.constant 0 : index
    %193 = vector.load %arg7[%c10_115, %c0_116, %c0_117] : memref<27x4x4xf32, #tpu.memory_space<vmem>>, vector<1x4x4xf32>
    %194 = vector.shape_cast %193 : vector<1x4x4xf32> to vector<4x4xf32>
    %195 = vector.extract_strided_slice %187 {offsets = [0, 512], sizes = [4, 512], strides = [1, 1]} : vector<4x1024xf32> to vector<4x512xf32>
    %cst_118 = arith.constant dense<0.000000e+00> : vector<4x512xf32>
    %196 = tpu.matmul %194, %195, %cst_118 {dimension_numbers = #tpu.dot_dimension_numbers<[1], [0], [0], [1], [0, 0, 1, 1], [], []>} : vector<4x4xf32>, vector<4x512xf32>, vector<4x512xf32> -> vector<4x512xf32>
    %197 = arith.addf %192, %196 : vector<4x512xf32>
    %c7_i32 = arith.constant 7 : i32
    %198 = tpu.dynamic_rotate %40 by %c7_i32 dim 1 : vector<4x1024xf32>, i32 -> vector<4x1024xf32>
    %c11 = arith.constant 11 : index
    %c0_119 = arith.constant 0 : index
    %199 = vector.load %arg4[%c11, %c0_119] : memref<27x1024xf32, #tpu.memory_space<vmem>>, vector<1x1024xf32>
    %200 = vector.broadcast %199 : vector<1x1024xf32> to vector<4x1024xf32>
    %201 = arith.mulf %198, %200 : vector<4x1024xf32>
    %c11_120 = arith.constant 11 : index
    %c0_121 = arith.constant 0 : index
    %c0_122 = arith.constant 0 : index
    %202 = vector.load %arg6[%c11_120, %c0_121, %c0_122] : memref<27x4x4xf32, #tpu.memory_space<vmem>>, vector<1x4x4xf32>
    %203 = vector.shape_cast %202 : vector<1x4x4xf32> to vector<4x4xf32>
    %204 = vector.extract_strided_slice %201 {offsets = [0, 0], sizes = [4, 512], strides = [1, 1]} : vector<4x1024xf32> to vector<4x512xf32>
    %cst_123 = arith.constant dense<0.000000e+00> : vector<4x512xf32>
    %205 = tpu.matmul %203, %204, %cst_123 {dimension_numbers = #tpu.dot_dimension_numbers<[1], [0], [0], [1], [0, 0, 1, 1], [], []>} : vector<4x4xf32>, vector<4x512xf32>, vector<4x512xf32> -> vector<4x512xf32>
    %206 = arith.addf %197, %205 : vector<4x512xf32>
    %c11_124 = arith.constant 11 : index
    %c0_125 = arith.constant 0 : index
    %c0_126 = arith.constant 0 : index
    %207 = vector.load %arg7[%c11_124, %c0_125, %c0_126] : memref<27x4x4xf32, #tpu.memory_space<vmem>>, vector<1x4x4xf32>
    %208 = vector.shape_cast %207 : vector<1x4x4xf32> to vector<4x4xf32>
    %209 = vector.extract_strided_slice %201 {offsets = [0, 512], sizes = [4, 512], strides = [1, 1]} : vector<4x1024xf32> to vector<4x512xf32>
    %cst_127 = arith.constant dense<0.000000e+00> : vector<4x512xf32>
    %210 = tpu.matmul %208, %209, %cst_127 {dimension_numbers = #tpu.dot_dimension_numbers<[1], [0], [0], [1], [0, 0, 1, 1], [], []>} : vector<4x4xf32>, vector<4x512xf32>, vector<4x512xf32> -> vector<4x512xf32>
    %211 = arith.addf %206, %210 : vector<4x512xf32>
    %c1_i32_128 = arith.constant 1 : i32
    %212 = tpu.dynamic_rotate %40 by %c1_i32_128 dim 1 : vector<4x1024xf32>, i32 -> vector<4x1024xf32>
    %c12 = arith.constant 12 : index
    %c0_129 = arith.constant 0 : index
    %213 = vector.load %arg4[%c12, %c0_129] : memref<27x1024xf32, #tpu.memory_space<vmem>>, vector<1x1024xf32>
    %214 = vector.broadcast %213 : vector<1x1024xf32> to vector<4x1024xf32>
    %215 = arith.mulf %212, %214 : vector<4x1024xf32>
    %c12_130 = arith.constant 12 : index
    %c0_131 = arith.constant 0 : index
    %c0_132 = arith.constant 0 : index
    %216 = vector.load %arg6[%c12_130, %c0_131, %c0_132] : memref<27x4x4xf32, #tpu.memory_space<vmem>>, vector<1x4x4xf32>
    %217 = vector.shape_cast %216 : vector<1x4x4xf32> to vector<4x4xf32>
    %218 = vector.extract_strided_slice %215 {offsets = [0, 0], sizes = [4, 512], strides = [1, 1]} : vector<4x1024xf32> to vector<4x512xf32>
    %cst_133 = arith.constant dense<0.000000e+00> : vector<4x512xf32>
    %219 = tpu.matmul %217, %218, %cst_133 {dimension_numbers = #tpu.dot_dimension_numbers<[1], [0], [0], [1], [0, 0, 1, 1], [], []>} : vector<4x4xf32>, vector<4x512xf32>, vector<4x512xf32> -> vector<4x512xf32>
    %220 = arith.addf %211, %219 : vector<4x512xf32>
    %c12_134 = arith.constant 12 : index
    %c0_135 = arith.constant 0 : index
    %c0_136 = arith.constant 0 : index
    %221 = vector.load %arg7[%c12_134, %c0_135, %c0_136] : memref<27x4x4xf32, #tpu.memory_space<vmem>>, vector<1x4x4xf32>
    %222 = vector.shape_cast %221 : vector<1x4x4xf32> to vector<4x4xf32>
    %223 = vector.extract_strided_slice %215 {offsets = [0, 512], sizes = [4, 512], strides = [1, 1]} : vector<4x1024xf32> to vector<4x512xf32>
    %cst_137 = arith.constant dense<0.000000e+00> : vector<4x512xf32>
    %224 = tpu.matmul %222, %223, %cst_137 {dimension_numbers = #tpu.dot_dimension_numbers<[1], [0], [0], [1], [0, 0, 1, 1], [], []>} : vector<4x4xf32>, vector<4x512xf32>, vector<4x512xf32> -> vector<4x512xf32>
    %225 = arith.addf %220, %224 : vector<4x512xf32>
    %c13 = arith.constant 13 : index
    %c0_138 = arith.constant 0 : index
    %226 = vector.load %arg4[%c13, %c0_138] : memref<27x1024xf32, #tpu.memory_space<vmem>>, vector<1x1024xf32>
    %227 = vector.broadcast %226 : vector<1x1024xf32> to vector<4x1024xf32>
    %228 = arith.mulf %40, %227 : vector<4x1024xf32>
    %c13_139 = arith.constant 13 : index
    %c0_140 = arith.constant 0 : index
    %c0_141 = arith.constant 0 : index
    %229 = vector.load %arg6[%c13_139, %c0_140, %c0_141] : memref<27x4x4xf32, #tpu.memory_space<vmem>>, vector<1x4x4xf32>
    %230 = vector.shape_cast %229 : vector<1x4x4xf32> to vector<4x4xf32>
    %231 = vector.extract_strided_slice %228 {offsets = [0, 0], sizes = [4, 512], strides = [1, 1]} : vector<4x1024xf32> to vector<4x512xf32>
    %cst_142 = arith.constant dense<0.000000e+00> : vector<4x512xf32>
    %232 = tpu.matmul %230, %231, %cst_142 {dimension_numbers = #tpu.dot_dimension_numbers<[1], [0], [0], [1], [0, 0, 1, 1], [], []>} : vector<4x4xf32>, vector<4x512xf32>, vector<4x512xf32> -> vector<4x512xf32>
    %233 = arith.addf %225, %232 : vector<4x512xf32>
    %c13_143 = arith.constant 13 : index
    %c0_144 = arith.constant 0 : index
    %c0_145 = arith.constant 0 : index
    %234 = vector.load %arg7[%c13_143, %c0_144, %c0_145] : memref<27x4x4xf32, #tpu.memory_space<vmem>>, vector<1x4x4xf32>
    %235 = vector.shape_cast %234 : vector<1x4x4xf32> to vector<4x4xf32>
    %236 = vector.extract_strided_slice %228 {offsets = [0, 512], sizes = [4, 512], strides = [1, 1]} : vector<4x1024xf32> to vector<4x512xf32>
    %cst_146 = arith.constant dense<0.000000e+00> : vector<4x512xf32>
    %237 = tpu.matmul %235, %236, %cst_146 {dimension_numbers = #tpu.dot_dimension_numbers<[1], [0], [0], [1], [0, 0, 1, 1], [], []>} : vector<4x4xf32>, vector<4x512xf32>, vector<4x512xf32> -> vector<4x512xf32>
    %238 = arith.addf %233, %237 : vector<4x512xf32>
    %c1023_i32 = arith.constant 1023 : i32
    %239 = tpu.dynamic_rotate %40 by %c1023_i32 dim 1 : vector<4x1024xf32>, i32 -> vector<4x1024xf32>
    %c14 = arith.constant 14 : index
    %c0_147 = arith.constant 0 : index
    %240 = vector.load %arg4[%c14, %c0_147] : memref<27x1024xf32, #tpu.memory_space<vmem>>, vector<1x1024xf32>
    %241 = vector.broadcast %240 : vector<1x1024xf32> to vector<4x1024xf32>
    %242 = arith.mulf %239, %241 : vector<4x1024xf32>
    %c14_148 = arith.constant 14 : index
    %c0_149 = arith.constant 0 : index
    %c0_150 = arith.constant 0 : index
    %243 = vector.load %arg6[%c14_148, %c0_149, %c0_150] : memref<27x4x4xf32, #tpu.memory_space<vmem>>, vector<1x4x4xf32>
    %244 = vector.shape_cast %243 : vector<1x4x4xf32> to vector<4x4xf32>
    %245 = vector.extract_strided_slice %242 {offsets = [0, 0], sizes = [4, 512], strides = [1, 1]} : vector<4x1024xf32> to vector<4x512xf32>
    %cst_151 = arith.constant dense<0.000000e+00> : vector<4x512xf32>
    %246 = tpu.matmul %244, %245, %cst_151 {dimension_numbers = #tpu.dot_dimension_numbers<[1], [0], [0], [1], [0, 0, 1, 1], [], []>} : vector<4x4xf32>, vector<4x512xf32>, vector<4x512xf32> -> vector<4x512xf32>
    %247 = arith.addf %238, %246 : vector<4x512xf32>
    %c14_152 = arith.constant 14 : index
    %c0_153 = arith.constant 0 : index
    %c0_154 = arith.constant 0 : index
    %248 = vector.load %arg7[%c14_152, %c0_153, %c0_154] : memref<27x4x4xf32, #tpu.memory_space<vmem>>, vector<1x4x4xf32>
    %249 = vector.shape_cast %248 : vector<1x4x4xf32> to vector<4x4xf32>
    %250 = vector.extract_strided_slice %242 {offsets = [0, 512], sizes = [4, 512], strides = [1, 1]} : vector<4x1024xf32> to vector<4x512xf32>
    %cst_155 = arith.constant dense<0.000000e+00> : vector<4x512xf32>
    %251 = tpu.matmul %249, %250, %cst_155 {dimension_numbers = #tpu.dot_dimension_numbers<[1], [0], [0], [1], [0, 0, 1, 1], [], []>} : vector<4x4xf32>, vector<4x512xf32>, vector<4x512xf32> -> vector<4x512xf32>
    %252 = arith.addf %247, %251 : vector<4x512xf32>
    %c1017_i32 = arith.constant 1017 : i32
    %253 = tpu.dynamic_rotate %40 by %c1017_i32 dim 1 : vector<4x1024xf32>, i32 -> vector<4x1024xf32>
    %c15 = arith.constant 15 : index
    %c0_156 = arith.constant 0 : index
    %254 = vector.load %arg4[%c15, %c0_156] : memref<27x1024xf32, #tpu.memory_space<vmem>>, vector<1x1024xf32>
    %255 = vector.broadcast %254 : vector<1x1024xf32> to vector<4x1024xf32>
    %256 = arith.mulf %253, %255 : vector<4x1024xf32>
    %c15_157 = arith.constant 15 : index
    %c0_158 = arith.constant 0 : index
    %c0_159 = arith.constant 0 : index
    %257 = vector.load %arg6[%c15_157, %c0_158, %c0_159] : memref<27x4x4xf32, #tpu.memory_space<vmem>>, vector<1x4x4xf32>
    %258 = vector.shape_cast %257 : vector<1x4x4xf32> to vector<4x4xf32>
    %259 = vector.extract_strided_slice %256 {offsets = [0, 0], sizes = [4, 512], strides = [1, 1]} : vector<4x1024xf32> to vector<4x512xf32>
    %cst_160 = arith.constant dense<0.000000e+00> : vector<4x512xf32>
    %260 = tpu.matmul %258, %259, %cst_160 {dimension_numbers = #tpu.dot_dimension_numbers<[1], [0], [0], [1], [0, 0, 1, 1], [], []>} : vector<4x4xf32>, vector<4x512xf32>, vector<4x512xf32> -> vector<4x512xf32>
    %261 = arith.addf %252, %260 : vector<4x512xf32>
    %c15_161 = arith.constant 15 : index
    %c0_162 = arith.constant 0 : index
    %c0_163 = arith.constant 0 : index
    %262 = vector.load %arg7[%c15_161, %c0_162, %c0_163] : memref<27x4x4xf32, #tpu.memory_space<vmem>>, vector<1x4x4xf32>
    %263 = vector.shape_cast %262 : vector<1x4x4xf32> to vector<4x4xf32>
    %264 = vector.extract_strided_slice %256 {offsets = [0, 512], sizes = [4, 512], strides = [1, 1]} : vector<4x1024xf32> to vector<4x512xf32>
    %cst_164 = arith.constant dense<0.000000e+00> : vector<4x512xf32>
    %265 = tpu.matmul %263, %264, %cst_164 {dimension_numbers = #tpu.dot_dimension_numbers<[1], [0], [0], [1], [0, 0, 1, 1], [], []>} : vector<4x4xf32>, vector<4x512xf32>, vector<4x512xf32> -> vector<4x512xf32>
    %266 = arith.addf %261, %265 : vector<4x512xf32>
    %c1016_i32 = arith.constant 1016 : i32
    %267 = tpu.dynamic_rotate %40 by %c1016_i32 dim 1 : vector<4x1024xf32>, i32 -> vector<4x1024xf32>
    %c16 = arith.constant 16 : index
    %c0_165 = arith.constant 0 : index
    %268 = vector.load %arg4[%c16, %c0_165] : memref<27x1024xf32, #tpu.memory_space<vmem>>, vector<1x1024xf32>
    %269 = vector.broadcast %268 : vector<1x1024xf32> to vector<4x1024xf32>
    %270 = arith.mulf %267, %269 : vector<4x1024xf32>
    %c16_166 = arith.constant 16 : index
    %c0_167 = arith.constant 0 : index
    %c0_168 = arith.constant 0 : index
    %271 = vector.load %arg6[%c16_166, %c0_167, %c0_168] : memref<27x4x4xf32, #tpu.memory_space<vmem>>, vector<1x4x4xf32>
    %272 = vector.shape_cast %271 : vector<1x4x4xf32> to vector<4x4xf32>
    %273 = vector.extract_strided_slice %270 {offsets = [0, 0], sizes = [4, 512], strides = [1, 1]} : vector<4x1024xf32> to vector<4x512xf32>
    %cst_169 = arith.constant dense<0.000000e+00> : vector<4x512xf32>
    %274 = tpu.matmul %272, %273, %cst_169 {dimension_numbers = #tpu.dot_dimension_numbers<[1], [0], [0], [1], [0, 0, 1, 1], [], []>} : vector<4x4xf32>, vector<4x512xf32>, vector<4x512xf32> -> vector<4x512xf32>
    %275 = arith.addf %266, %274 : vector<4x512xf32>
    %c16_170 = arith.constant 16 : index
    %c0_171 = arith.constant 0 : index
    %c0_172 = arith.constant 0 : index
    %276 = vector.load %arg7[%c16_170, %c0_171, %c0_172] : memref<27x4x4xf32, #tpu.memory_space<vmem>>, vector<1x4x4xf32>
    %277 = vector.shape_cast %276 : vector<1x4x4xf32> to vector<4x4xf32>
    %278 = vector.extract_strided_slice %270 {offsets = [0, 512], sizes = [4, 512], strides = [1, 1]} : vector<4x1024xf32> to vector<4x512xf32>
    %cst_173 = arith.constant dense<0.000000e+00> : vector<4x512xf32>
    %279 = tpu.matmul %277, %278, %cst_173 {dimension_numbers = #tpu.dot_dimension_numbers<[1], [0], [0], [1], [0, 0, 1, 1], [], []>} : vector<4x4xf32>, vector<4x512xf32>, vector<4x512xf32> -> vector<4x512xf32>
    %280 = arith.addf %275, %279 : vector<4x512xf32>
    %c1015_i32 = arith.constant 1015 : i32
    %281 = tpu.dynamic_rotate %40 by %c1015_i32 dim 1 : vector<4x1024xf32>, i32 -> vector<4x1024xf32>
    %c17 = arith.constant 17 : index
    %c0_174 = arith.constant 0 : index
    %282 = vector.load %arg4[%c17, %c0_174] : memref<27x1024xf32, #tpu.memory_space<vmem>>, vector<1x1024xf32>
    %283 = vector.broadcast %282 : vector<1x1024xf32> to vector<4x1024xf32>
    %284 = arith.mulf %281, %283 : vector<4x1024xf32>
    %c17_175 = arith.constant 17 : index
    %c0_176 = arith.constant 0 : index
    %c0_177 = arith.constant 0 : index
    %285 = vector.load %arg6[%c17_175, %c0_176, %c0_177] : memref<27x4x4xf32, #tpu.memory_space<vmem>>, vector<1x4x4xf32>
    %286 = vector.shape_cast %285 : vector<1x4x4xf32> to vector<4x4xf32>
    %287 = vector.extract_strided_slice %284 {offsets = [0, 0], sizes = [4, 512], strides = [1, 1]} : vector<4x1024xf32> to vector<4x512xf32>
    %cst_178 = arith.constant dense<0.000000e+00> : vector<4x512xf32>
    %288 = tpu.matmul %286, %287, %cst_178 {dimension_numbers = #tpu.dot_dimension_numbers<[1], [0], [0], [1], [0, 0, 1, 1], [], []>} : vector<4x4xf32>, vector<4x512xf32>, vector<4x512xf32> -> vector<4x512xf32>
    %289 = arith.addf %280, %288 : vector<4x512xf32>
    %c17_179 = arith.constant 17 : index
    %c0_180 = arith.constant 0 : index
    %c0_181 = arith.constant 0 : index
    %290 = vector.load %arg7[%c17_179, %c0_180, %c0_181] : memref<27x4x4xf32, #tpu.memory_space<vmem>>, vector<1x4x4xf32>
    %291 = vector.shape_cast %290 : vector<1x4x4xf32> to vector<4x4xf32>
    %292 = vector.extract_strided_slice %284 {offsets = [0, 512], sizes = [4, 512], strides = [1, 1]} : vector<4x1024xf32> to vector<4x512xf32>
    %cst_182 = arith.constant dense<0.000000e+00> : vector<4x512xf32>
    %293 = tpu.matmul %291, %292, %cst_182 {dimension_numbers = #tpu.dot_dimension_numbers<[1], [0], [0], [1], [0, 0, 1, 1], [], []>} : vector<4x4xf32>, vector<4x512xf32>, vector<4x512xf32> -> vector<4x512xf32>
    %294 = arith.addf %289, %293 : vector<4x512xf32>
    %c905_i32 = arith.constant 905 : i32
    %295 = tpu.dynamic_rotate %40 by %c905_i32 dim 1 : vector<4x1024xf32>, i32 -> vector<4x1024xf32>
    %c18 = arith.constant 18 : index
    %c0_183 = arith.constant 0 : index
    %296 = vector.load %arg4[%c18, %c0_183] : memref<27x1024xf32, #tpu.memory_space<vmem>>, vector<1x1024xf32>
    %297 = vector.broadcast %296 : vector<1x1024xf32> to vector<4x1024xf32>
    %298 = arith.mulf %295, %297 : vector<4x1024xf32>
    %c18_184 = arith.constant 18 : index
    %c0_185 = arith.constant 0 : index
    %c0_186 = arith.constant 0 : index
    %299 = vector.load %arg6[%c18_184, %c0_185, %c0_186] : memref<27x4x4xf32, #tpu.memory_space<vmem>>, vector<1x4x4xf32>
    %300 = vector.shape_cast %299 : vector<1x4x4xf32> to vector<4x4xf32>
    %301 = vector.extract_strided_slice %298 {offsets = [0, 0], sizes = [4, 512], strides = [1, 1]} : vector<4x1024xf32> to vector<4x512xf32>
    %cst_187 = arith.constant dense<0.000000e+00> : vector<4x512xf32>
    %302 = tpu.matmul %300, %301, %cst_187 {dimension_numbers = #tpu.dot_dimension_numbers<[1], [0], [0], [1], [0, 0, 1, 1], [], []>} : vector<4x4xf32>, vector<4x512xf32>, vector<4x512xf32> -> vector<4x512xf32>
    %303 = arith.addf %294, %302 : vector<4x512xf32>
    %c18_188 = arith.constant 18 : index
    %c0_189 = arith.constant 0 : index
    %c0_190 = arith.constant 0 : index
    %304 = vector.load %arg7[%c18_188, %c0_189, %c0_190] : memref<27x4x4xf32, #tpu.memory_space<vmem>>, vector<1x4x4xf32>
    %305 = vector.shape_cast %304 : vector<1x4x4xf32> to vector<4x4xf32>
    %306 = vector.extract_strided_slice %298 {offsets = [0, 512], sizes = [4, 512], strides = [1, 1]} : vector<4x1024xf32> to vector<4x512xf32>
    %cst_191 = arith.constant dense<0.000000e+00> : vector<4x512xf32>
    %307 = tpu.matmul %305, %306, %cst_191 {dimension_numbers = #tpu.dot_dimension_numbers<[1], [0], [0], [1], [0, 0, 1, 1], [], []>} : vector<4x4xf32>, vector<4x512xf32>, vector<4x512xf32> -> vector<4x512xf32>
    %308 = arith.addf %303, %307 : vector<4x512xf32>
    %c904_i32 = arith.constant 904 : i32
    %309 = tpu.dynamic_rotate %40 by %c904_i32 dim 1 : vector<4x1024xf32>, i32 -> vector<4x1024xf32>
    %c19 = arith.constant 19 : index
    %c0_192 = arith.constant 0 : index
    %310 = vector.load %arg4[%c19, %c0_192] : memref<27x1024xf32, #tpu.memory_space<vmem>>, vector<1x1024xf32>
    %311 = vector.broadcast %310 : vector<1x1024xf32> to vector<4x1024xf32>
    %312 = arith.mulf %309, %311 : vector<4x1024xf32>
    %c19_193 = arith.constant 19 : index
    %c0_194 = arith.constant 0 : index
    %c0_195 = arith.constant 0 : index
    %313 = vector.load %arg6[%c19_193, %c0_194, %c0_195] : memref<27x4x4xf32, #tpu.memory_space<vmem>>, vector<1x4x4xf32>
    %314 = vector.shape_cast %313 : vector<1x4x4xf32> to vector<4x4xf32>
    %315 = vector.extract_strided_slice %312 {offsets = [0, 0], sizes = [4, 512], strides = [1, 1]} : vector<4x1024xf32> to vector<4x512xf32>
    %cst_196 = arith.constant dense<0.000000e+00> : vector<4x512xf32>
    %316 = tpu.matmul %314, %315, %cst_196 {dimension_numbers = #tpu.dot_dimension_numbers<[1], [0], [0], [1], [0, 0, 1, 1], [], []>} : vector<4x4xf32>, vector<4x512xf32>, vector<4x512xf32> -> vector<4x512xf32>
    %317 = arith.addf %308, %316 : vector<4x512xf32>
    %c19_197 = arith.constant 19 : index
    %c0_198 = arith.constant 0 : index
    %c0_199 = arith.constant 0 : index
    %318 = vector.load %arg7[%c19_197, %c0_198, %c0_199] : memref<27x4x4xf32, #tpu.memory_space<vmem>>, vector<1x4x4xf32>
    %319 = vector.shape_cast %318 : vector<1x4x4xf32> to vector<4x4xf32>
    %320 = vector.extract_strided_slice %312 {offsets = [0, 512], sizes = [4, 512], strides = [1, 1]} : vector<4x1024xf32> to vector<4x512xf32>
    %cst_200 = arith.constant dense<0.000000e+00> : vector<4x512xf32>
    %321 = tpu.matmul %319, %320, %cst_200 {dimension_numbers = #tpu.dot_dimension_numbers<[1], [0], [0], [1], [0, 0, 1, 1], [], []>} : vector<4x4xf32>, vector<4x512xf32>, vector<4x512xf32> -> vector<4x512xf32>
    %322 = arith.addf %317, %321 : vector<4x512xf32>
    %c903_i32 = arith.constant 903 : i32
    %323 = tpu.dynamic_rotate %40 by %c903_i32 dim 1 : vector<4x1024xf32>, i32 -> vector<4x1024xf32>
    %c20 = arith.constant 20 : index
    %c0_201 = arith.constant 0 : index
    %324 = vector.load %arg4[%c20, %c0_201] : memref<27x1024xf32, #tpu.memory_space<vmem>>, vector<1x1024xf32>
    %325 = vector.broadcast %324 : vector<1x1024xf32> to vector<4x1024xf32>
    %326 = arith.mulf %323, %325 : vector<4x1024xf32>
    %c20_202 = arith.constant 20 : index
    %c0_203 = arith.constant 0 : index
    %c0_204 = arith.constant 0 : index
    %327 = vector.load %arg6[%c20_202, %c0_203, %c0_204] : memref<27x4x4xf32, #tpu.memory_space<vmem>>, vector<1x4x4xf32>
    %328 = vector.shape_cast %327 : vector<1x4x4xf32> to vector<4x4xf32>
    %329 = vector.extract_strided_slice %326 {offsets = [0, 0], sizes = [4, 512], strides = [1, 1]} : vector<4x1024xf32> to vector<4x512xf32>
    %cst_205 = arith.constant dense<0.000000e+00> : vector<4x512xf32>
    %330 = tpu.matmul %328, %329, %cst_205 {dimension_numbers = #tpu.dot_dimension_numbers<[1], [0], [0], [1], [0, 0, 1, 1], [], []>} : vector<4x4xf32>, vector<4x512xf32>, vector<4x512xf32> -> vector<4x512xf32>
    %331 = arith.addf %322, %330 : vector<4x512xf32>
    %c20_206 = arith.constant 20 : index
    %c0_207 = arith.constant 0 : index
    %c0_208 = arith.constant 0 : index
    %332 = vector.load %arg7[%c20_206, %c0_207, %c0_208] : memref<27x4x4xf32, #tpu.memory_space<vmem>>, vector<1x4x4xf32>
    %333 = vector.shape_cast %332 : vector<1x4x4xf32> to vector<4x4xf32>
    %334 = vector.extract_strided_slice %326 {offsets = [0, 512], sizes = [4, 512], strides = [1, 1]} : vector<4x1024xf32> to vector<4x512xf32>
    %cst_209 = arith.constant dense<0.000000e+00> : vector<4x512xf32>
    %335 = tpu.matmul %333, %334, %cst_209 {dimension_numbers = #tpu.dot_dimension_numbers<[1], [0], [0], [1], [0, 0, 1, 1], [], []>} : vector<4x4xf32>, vector<4x512xf32>, vector<4x512xf32> -> vector<4x512xf32>
    %336 = arith.addf %331, %335 : vector<4x512xf32>
    %c897_i32 = arith.constant 897 : i32
    %337 = tpu.dynamic_rotate %40 by %c897_i32 dim 1 : vector<4x1024xf32>, i32 -> vector<4x1024xf32>
    %c21 = arith.constant 21 : index
    %c0_210 = arith.constant 0 : index
    %338 = vector.load %arg4[%c21, %c0_210] : memref<27x1024xf32, #tpu.memory_space<vmem>>, vector<1x1024xf32>
    %339 = vector.broadcast %338 : vector<1x1024xf32> to vector<4x1024xf32>
    %340 = arith.mulf %337, %339 : vector<4x1024xf32>
    %c21_211 = arith.constant 21 : index
    %c0_212 = arith.constant 0 : index
    %c0_213 = arith.constant 0 : index
    %341 = vector.load %arg6[%c21_211, %c0_212, %c0_213] : memref<27x4x4xf32, #tpu.memory_space<vmem>>, vector<1x4x4xf32>
    %342 = vector.shape_cast %341 : vector<1x4x4xf32> to vector<4x4xf32>
    %343 = vector.extract_strided_slice %340 {offsets = [0, 0], sizes = [4, 512], strides = [1, 1]} : vector<4x1024xf32> to vector<4x512xf32>
    %cst_214 = arith.constant dense<0.000000e+00> : vector<4x512xf32>
    %344 = tpu.matmul %342, %343, %cst_214 {dimension_numbers = #tpu.dot_dimension_numbers<[1], [0], [0], [1], [0, 0, 1, 1], [], []>} : vector<4x4xf32>, vector<4x512xf32>, vector<4x512xf32> -> vector<4x512xf32>
    %345 = arith.addf %336, %344 : vector<4x512xf32>
    %c21_215 = arith.constant 21 : index
    %c0_216 = arith.constant 0 : index
    %c0_217 = arith.constant 0 : index
    %346 = vector.load %arg7[%c21_215, %c0_216, %c0_217] : memref<27x4x4xf32, #tpu.memory_space<vmem>>, vector<1x4x4xf32>
    %347 = vector.shape_cast %346 : vector<1x4x4xf32> to vector<4x4xf32>
    %348 = vector.extract_strided_slice %340 {offsets = [0, 512], sizes = [4, 512], strides = [1, 1]} : vector<4x1024xf32> to vector<4x512xf32>
    %cst_218 = arith.constant dense<0.000000e+00> : vector<4x512xf32>
    %349 = tpu.matmul %347, %348, %cst_218 {dimension_numbers = #tpu.dot_dimension_numbers<[1], [0], [0], [1], [0, 0, 1, 1], [], []>} : vector<4x4xf32>, vector<4x512xf32>, vector<4x512xf32> -> vector<4x512xf32>
    %350 = arith.addf %345, %349 : vector<4x512xf32>
    %c896_i32 = arith.constant 896 : i32
    %351 = tpu.dynamic_rotate %40 by %c896_i32 dim 1 : vector<4x1024xf32>, i32 -> vector<4x1024xf32>
    %c22 = arith.constant 22 : index
    %c0_219 = arith.constant 0 : index
    %352 = vector.load %arg4[%c22, %c0_219] : memref<27x1024xf32, #tpu.memory_space<vmem>>, vector<1x1024xf32>
    %353 = vector.broadcast %352 : vector<1x1024xf32> to vector<4x1024xf32>
    %354 = arith.mulf %351, %353 : vector<4x1024xf32>
    %c22_220 = arith.constant 22 : index
    %c0_221 = arith.constant 0 : index
    %c0_222 = arith.constant 0 : index
    %355 = vector.load %arg6[%c22_220, %c0_221, %c0_222] : memref<27x4x4xf32, #tpu.memory_space<vmem>>, vector<1x4x4xf32>
    %356 = vector.shape_cast %355 : vector<1x4x4xf32> to vector<4x4xf32>
    %357 = vector.extract_strided_slice %354 {offsets = [0, 0], sizes = [4, 512], strides = [1, 1]} : vector<4x1024xf32> to vector<4x512xf32>
    %cst_223 = arith.constant dense<0.000000e+00> : vector<4x512xf32>
    %358 = tpu.matmul %356, %357, %cst_223 {dimension_numbers = #tpu.dot_dimension_numbers<[1], [0], [0], [1], [0, 0, 1, 1], [], []>} : vector<4x4xf32>, vector<4x512xf32>, vector<4x512xf32> -> vector<4x512xf32>
    %359 = arith.addf %350, %358 : vector<4x512xf32>
    %c22_224 = arith.constant 22 : index
    %c0_225 = arith.constant 0 : index
    %c0_226 = arith.constant 0 : index
    %360 = vector.load %arg7[%c22_224, %c0_225, %c0_226] : memref<27x4x4xf32, #tpu.memory_space<vmem>>, vector<1x4x4xf32>
    %361 = vector.shape_cast %360 : vector<1x4x4xf32> to vector<4x4xf32>
    %362 = vector.extract_strided_slice %354 {offsets = [0, 512], sizes = [4, 512], strides = [1, 1]} : vector<4x1024xf32> to vector<4x512xf32>
    %cst_227 = arith.constant dense<0.000000e+00> : vector<4x512xf32>
    %363 = tpu.matmul %361, %362, %cst_227 {dimension_numbers = #tpu.dot_dimension_numbers<[1], [0], [0], [1], [0, 0, 1, 1], [], []>} : vector<4x4xf32>, vector<4x512xf32>, vector<4x512xf32> -> vector<4x512xf32>
    %364 = arith.addf %359, %363 : vector<4x512xf32>
    %c895_i32 = arith.constant 895 : i32
    %365 = tpu.dynamic_rotate %40 by %c895_i32 dim 1 : vector<4x1024xf32>, i32 -> vector<4x1024xf32>
    %c23 = arith.constant 23 : index
    %c0_228 = arith.constant 0 : index
    %366 = vector.load %arg4[%c23, %c0_228] : memref<27x1024xf32, #tpu.memory_space<vmem>>, vector<1x1024xf32>
    %367 = vector.broadcast %366 : vector<1x1024xf32> to vector<4x1024xf32>
    %368 = arith.mulf %365, %367 : vector<4x1024xf32>
    %c23_229 = arith.constant 23 : index
    %c0_230 = arith.constant 0 : index
    %c0_231 = arith.constant 0 : index
    %369 = vector.load %arg6[%c23_229, %c0_230, %c0_231] : memref<27x4x4xf32, #tpu.memory_space<vmem>>, vector<1x4x4xf32>
    %370 = vector.shape_cast %369 : vector<1x4x4xf32> to vector<4x4xf32>
    %371 = vector.extract_strided_slice %368 {offsets = [0, 0], sizes = [4, 512], strides = [1, 1]} : vector<4x1024xf32> to vector<4x512xf32>
    %cst_232 = arith.constant dense<0.000000e+00> : vector<4x512xf32>
    %372 = tpu.matmul %370, %371, %cst_232 {dimension_numbers = #tpu.dot_dimension_numbers<[1], [0], [0], [1], [0, 0, 1, 1], [], []>} : vector<4x4xf32>, vector<4x512xf32>, vector<4x512xf32> -> vector<4x512xf32>
    %373 = arith.addf %364, %372 : vector<4x512xf32>
    %c23_233 = arith.constant 23 : index
    %c0_234 = arith.constant 0 : index
    %c0_235 = arith.constant 0 : index
    %374 = vector.load %arg7[%c23_233, %c0_234, %c0_235] : memref<27x4x4xf32, #tpu.memory_space<vmem>>, vector<1x4x4xf32>
    %375 = vector.shape_cast %374 : vector<1x4x4xf32> to vector<4x4xf32>
    %376 = vector.extract_strided_slice %368 {offsets = [0, 512], sizes = [4, 512], strides = [1, 1]} : vector<4x1024xf32> to vector<4x512xf32>
    %cst_236 = arith.constant dense<0.000000e+00> : vector<4x512xf32>
    %377 = tpu.matmul %375, %376, %cst_236 {dimension_numbers = #tpu.dot_dimension_numbers<[1], [0], [0], [1], [0, 0, 1, 1], [], []>} : vector<4x4xf32>, vector<4x512xf32>, vector<4x512xf32> -> vector<4x512xf32>
    %378 = arith.addf %373, %377 : vector<4x512xf32>
    %c889_i32 = arith.constant 889 : i32
    %379 = tpu.dynamic_rotate %40 by %c889_i32 dim 1 : vector<4x1024xf32>, i32 -> vector<4x1024xf32>
    %c24 = arith.constant 24 : index
    %c0_237 = arith.constant 0 : index
    %380 = vector.load %arg4[%c24, %c0_237] : memref<27x1024xf32, #tpu.memory_space<vmem>>, vector<1x1024xf32>
    %381 = vector.broadcast %380 : vector<1x1024xf32> to vector<4x1024xf32>
    %382 = arith.mulf %379, %381 : vector<4x1024xf32>
    %c24_238 = arith.constant 24 : index
    %c0_239 = arith.constant 0 : index
    %c0_240 = arith.constant 0 : index
    %383 = vector.load %arg6[%c24_238, %c0_239, %c0_240] : memref<27x4x4xf32, #tpu.memory_space<vmem>>, vector<1x4x4xf32>
    %384 = vector.shape_cast %383 : vector<1x4x4xf32> to vector<4x4xf32>
    %385 = vector.extract_strided_slice %382 {offsets = [0, 0], sizes = [4, 512], strides = [1, 1]} : vector<4x1024xf32> to vector<4x512xf32>
    %cst_241 = arith.constant dense<0.000000e+00> : vector<4x512xf32>
    %386 = tpu.matmul %384, %385, %cst_241 {dimension_numbers = #tpu.dot_dimension_numbers<[1], [0], [0], [1], [0, 0, 1, 1], [], []>} : vector<4x4xf32>, vector<4x512xf32>, vector<4x512xf32> -> vector<4x512xf32>
    %387 = arith.addf %378, %386 : vector<4x512xf32>
    %c24_242 = arith.constant 24 : index
    %c0_243 = arith.constant 0 : index
    %c0_244 = arith.constant 0 : index
    %388 = vector.load %arg7[%c24_242, %c0_243, %c0_244] : memref<27x4x4xf32, #tpu.memory_space<vmem>>, vector<1x4x4xf32>
    %389 = vector.shape_cast %388 : vector<1x4x4xf32> to vector<4x4xf32>
    %390 = vector.extract_strided_slice %382 {offsets = [0, 512], sizes = [4, 512], strides = [1, 1]} : vector<4x1024xf32> to vector<4x512xf32>
    %cst_245 = arith.constant dense<0.000000e+00> : vector<4x512xf32>
    %391 = tpu.matmul %389, %390, %cst_245 {dimension_numbers = #tpu.dot_dimension_numbers<[1], [0], [0], [1], [0, 0, 1, 1], [], []>} : vector<4x4xf32>, vector<4x512xf32>, vector<4x512xf32> -> vector<4x512xf32>
    %392 = arith.addf %387, %391 : vector<4x512xf32>
    %c888_i32 = arith.constant 888 : i32
    %393 = tpu.dynamic_rotate %40 by %c888_i32 dim 1 : vector<4x1024xf32>, i32 -> vector<4x1024xf32>
    %c25 = arith.constant 25 : index
    %c0_246 = arith.constant 0 : index
    %394 = vector.load %arg4[%c25, %c0_246] : memref<27x1024xf32, #tpu.memory_space<vmem>>, vector<1x1024xf32>
    %395 = vector.broadcast %394 : vector<1x1024xf32> to vector<4x1024xf32>
    %396 = arith.mulf %393, %395 : vector<4x1024xf32>
    %c25_247 = arith.constant 25 : index
    %c0_248 = arith.constant 0 : index
    %c0_249 = arith.constant 0 : index
    %397 = vector.load %arg6[%c25_247, %c0_248, %c0_249] : memref<27x4x4xf32, #tpu.memory_space<vmem>>, vector<1x4x4xf32>
    %398 = vector.shape_cast %397 : vector<1x4x4xf32> to vector<4x4xf32>
    %399 = vector.extract_strided_slice %396 {offsets = [0, 0], sizes = [4, 512], strides = [1, 1]} : vector<4x1024xf32> to vector<4x512xf32>
    %cst_250 = arith.constant dense<0.000000e+00> : vector<4x512xf32>
    %400 = tpu.matmul %398, %399, %cst_250 {dimension_numbers = #tpu.dot_dimension_numbers<[1], [0], [0], [1], [0, 0, 1, 1], [], []>} : vector<4x4xf32>, vector<4x512xf32>, vector<4x512xf32> -> vector<4x512xf32>
    %401 = arith.addf %392, %400 : vector<4x512xf32>
    %c25_251 = arith.constant 25 : index
    %c0_252 = arith.constant 0 : index
    %c0_253 = arith.constant 0 : index
    %402 = vector.load %arg7[%c25_251, %c0_252, %c0_253] : memref<27x4x4xf32, #tpu.memory_space<vmem>>, vector<1x4x4xf32>
    %403 = vector.shape_cast %402 : vector<1x4x4xf32> to vector<4x4xf32>
    %404 = vector.extract_strided_slice %396 {offsets = [0, 512], sizes = [4, 512], strides = [1, 1]} : vector<4x1024xf32> to vector<4x512xf32>
    %cst_254 = arith.constant dense<0.000000e+00> : vector<4x512xf32>
    %405 = tpu.matmul %403, %404, %cst_254 {dimension_numbers = #tpu.dot_dimension_numbers<[1], [0], [0], [1], [0, 0, 1, 1], [], []>} : vector<4x4xf32>, vector<4x512xf32>, vector<4x512xf32> -> vector<4x512xf32>
    %406 = arith.addf %401, %405 : vector<4x512xf32>
    %c887_i32 = arith.constant 887 : i32
    %407 = tpu.dynamic_rotate %40 by %c887_i32 dim 1 : vector<4x1024xf32>, i32 -> vector<4x1024xf32>
    %c26 = arith.constant 26 : index
    %c0_255 = arith.constant 0 : index
    %408 = vector.load %arg4[%c26, %c0_255] : memref<27x1024xf32, #tpu.memory_space<vmem>>, vector<1x1024xf32>
    %409 = vector.broadcast %408 : vector<1x1024xf32> to vector<4x1024xf32>
    %410 = arith.mulf %407, %409 : vector<4x1024xf32>
    %c26_256 = arith.constant 26 : index
    %c0_257 = arith.constant 0 : index
    %c0_258 = arith.constant 0 : index
    %411 = vector.load %arg6[%c26_256, %c0_257, %c0_258] : memref<27x4x4xf32, #tpu.memory_space<vmem>>, vector<1x4x4xf32>
    %412 = vector.shape_cast %411 : vector<1x4x4xf32> to vector<4x4xf32>
    %413 = vector.extract_strided_slice %410 {offsets = [0, 0], sizes = [4, 512], strides = [1, 1]} : vector<4x1024xf32> to vector<4x512xf32>
    %cst_259 = arith.constant dense<0.000000e+00> : vector<4x512xf32>
    %414 = tpu.matmul %412, %413, %cst_259 {dimension_numbers = #tpu.dot_dimension_numbers<[1], [0], [0], [1], [0, 0, 1, 1], [], []>} : vector<4x4xf32>, vector<4x512xf32>, vector<4x512xf32> -> vector<4x512xf32>
    %415 = arith.addf %406, %414 : vector<4x512xf32>
    %c26_260 = arith.constant 26 : index
    %c0_261 = arith.constant 0 : index
    %c0_262 = arith.constant 0 : index
    %416 = vector.load %arg7[%c26_260, %c0_261, %c0_262] : memref<27x4x4xf32, #tpu.memory_space<vmem>>, vector<1x4x4xf32>
    %417 = vector.shape_cast %416 : vector<1x4x4xf32> to vector<4x4xf32>
    %418 = vector.extract_strided_slice %410 {offsets = [0, 512], sizes = [4, 512], strides = [1, 1]} : vector<4x1024xf32> to vector<4x512xf32>
    %cst_263 = arith.constant dense<0.000000e+00> : vector<4x512xf32>
    %419 = tpu.matmul %417, %418, %cst_263 {dimension_numbers = #tpu.dot_dimension_numbers<[1], [0], [0], [1], [0, 0, 1, 1], [], []>} : vector<4x4xf32>, vector<4x512xf32>, vector<4x512xf32> -> vector<4x512xf32>
    %420 = arith.addf %415, %419 : vector<4x512xf32>
    %cst_264 = arith.constant 0.000000e+00 : f32
    %421 = vector.broadcast %cst_264 : f32 to vector<4x512xf32>
    %422 = arith.maximumf %420, %421 : vector<4x512xf32>
    %cst_265 = arith.constant 0.000000e+00 : f32
    %423 = vector.broadcast %cst_265 : f32 to vector<4x512xf32>
    %cst_266 = arith.constant 0.000000e+00 : f32
    %424 = vector.broadcast %cst_266 : f32 to vector<4x512xf32>
    %c0_267 = arith.constant 0 : index
    %c0_268 = arith.constant 0 : index
    %425 = vector.load %arg5[%c0_267, %c0_268] : memref<8x512xf32, #tpu.memory_space<vmem>>, vector<1x512xf32>
    %426 = vector.broadcast %425 : vector<1x512xf32> to vector<4x512xf32>
    %427 = arith.mulf %422, %426 : vector<4x512xf32>
    %c0_269 = arith.constant 0 : index
    %c0_270 = arith.constant 0 : index
    %c0_271 = arith.constant 0 : index
    %428 = vector.load %arg9[%c0_269, %c0_270, %c0_271] : memref<8x4x4xf32, #tpu.memory_space<vmem>>, vector<1x4x4xf32>
    %429 = vector.shape_cast %428 : vector<1x4x4xf32> to vector<4x4xf32>
    %cst_272 = arith.constant dense<0.000000e+00> : vector<4x512xf32>
    %430 = tpu.matmul %429, %427, %cst_272 {dimension_numbers = #tpu.dot_dimension_numbers<[1], [0], [0], [1], [0, 0, 1, 1], [], []>} : vector<4x4xf32>, vector<4x512xf32>, vector<4x512xf32> -> vector<4x512xf32>
    %431 = arith.addf %423, %430 : vector<4x512xf32>
    %c0_273 = arith.constant 0 : index
    %c0_274 = arith.constant 0 : index
    %c0_275 = arith.constant 0 : index
    %432 = vector.load %arg10[%c0_273, %c0_274, %c0_275] : memref<8x4x4xf32, #tpu.memory_space<vmem>>, vector<1x4x4xf32>
    %433 = vector.shape_cast %432 : vector<1x4x4xf32> to vector<4x4xf32>
    %cst_276 = arith.constant dense<0.000000e+00> : vector<4x512xf32>
    %434 = tpu.matmul %433, %427, %cst_276 {dimension_numbers = #tpu.dot_dimension_numbers<[1], [0], [0], [1], [0, 0, 1, 1], [], []>} : vector<4x4xf32>, vector<4x512xf32>, vector<4x512xf32> -> vector<4x512xf32>
    %435 = arith.addf %424, %434 : vector<4x512xf32>
    %c511_i32 = arith.constant 511 : i32
    %436 = tpu.dynamic_rotate %422 by %c511_i32 dim 1 : vector<4x512xf32>, i32 -> vector<4x512xf32>
    %c1_277 = arith.constant 1 : index
    %c0_278 = arith.constant 0 : index
    %437 = vector.load %arg5[%c1_277, %c0_278] : memref<8x512xf32, #tpu.memory_space<vmem>>, vector<1x512xf32>
    %438 = vector.broadcast %437 : vector<1x512xf32> to vector<4x512xf32>
    %439 = arith.mulf %436, %438 : vector<4x512xf32>
    %c1_279 = arith.constant 1 : index
    %c0_280 = arith.constant 0 : index
    %c0_281 = arith.constant 0 : index
    %440 = vector.load %arg9[%c1_279, %c0_280, %c0_281] : memref<8x4x4xf32, #tpu.memory_space<vmem>>, vector<1x4x4xf32>
    %441 = vector.shape_cast %440 : vector<1x4x4xf32> to vector<4x4xf32>
    %cst_282 = arith.constant dense<0.000000e+00> : vector<4x512xf32>
    %442 = tpu.matmul %441, %439, %cst_282 {dimension_numbers = #tpu.dot_dimension_numbers<[1], [0], [0], [1], [0, 0, 1, 1], [], []>} : vector<4x4xf32>, vector<4x512xf32>, vector<4x512xf32> -> vector<4x512xf32>
    %443 = arith.addf %431, %442 : vector<4x512xf32>
    %c1_283 = arith.constant 1 : index
    %c0_284 = arith.constant 0 : index
    %c0_285 = arith.constant 0 : index
    %444 = vector.load %arg10[%c1_283, %c0_284, %c0_285] : memref<8x4x4xf32, #tpu.memory_space<vmem>>, vector<1x4x4xf32>
    %445 = vector.shape_cast %444 : vector<1x4x4xf32> to vector<4x4xf32>
    %cst_286 = arith.constant dense<0.000000e+00> : vector<4x512xf32>
    %446 = tpu.matmul %445, %439, %cst_286 {dimension_numbers = #tpu.dot_dimension_numbers<[1], [0], [0], [1], [0, 0, 1, 1], [], []>} : vector<4x4xf32>, vector<4x512xf32>, vector<4x512xf32> -> vector<4x512xf32>
    %447 = arith.addf %435, %446 : vector<4x512xf32>
    %c504_i32 = arith.constant 504 : i32
    %448 = tpu.dynamic_rotate %422 by %c504_i32 dim 1 : vector<4x512xf32>, i32 -> vector<4x512xf32>
    %c2_287 = arith.constant 2 : index
    %c0_288 = arith.constant 0 : index
    %449 = vector.load %arg5[%c2_287, %c0_288] : memref<8x512xf32, #tpu.memory_space<vmem>>, vector<1x512xf32>
    %450 = vector.broadcast %449 : vector<1x512xf32> to vector<4x512xf32>
    %451 = arith.mulf %448, %450 : vector<4x512xf32>
    %c2_289 = arith.constant 2 : index
    %c0_290 = arith.constant 0 : index
    %c0_291 = arith.constant 0 : index
    %452 = vector.load %arg9[%c2_289, %c0_290, %c0_291] : memref<8x4x4xf32, #tpu.memory_space<vmem>>, vector<1x4x4xf32>
    %453 = vector.shape_cast %452 : vector<1x4x4xf32> to vector<4x4xf32>
    %cst_292 = arith.constant dense<0.000000e+00> : vector<4x512xf32>
    %454 = tpu.matmul %453, %451, %cst_292 {dimension_numbers = #tpu.dot_dimension_numbers<[1], [0], [0], [1], [0, 0, 1, 1], [], []>} : vector<4x4xf32>, vector<4x512xf32>, vector<4x512xf32> -> vector<4x512xf32>
    %455 = arith.addf %443, %454 : vector<4x512xf32>
    %c2_293 = arith.constant 2 : index
    %c0_294 = arith.constant 0 : index
    %c0_295 = arith.constant 0 : index
    %456 = vector.load %arg10[%c2_293, %c0_294, %c0_295] : memref<8x4x4xf32, #tpu.memory_space<vmem>>, vector<1x4x4xf32>
    %457 = vector.shape_cast %456 : vector<1x4x4xf32> to vector<4x4xf32>
    %cst_296 = arith.constant dense<0.000000e+00> : vector<4x512xf32>
    %458 = tpu.matmul %457, %451, %cst_296 {dimension_numbers = #tpu.dot_dimension_numbers<[1], [0], [0], [1], [0, 0, 1, 1], [], []>} : vector<4x4xf32>, vector<4x512xf32>, vector<4x512xf32> -> vector<4x512xf32>
    %459 = arith.addf %447, %458 : vector<4x512xf32>
    %c503_i32 = arith.constant 503 : i32
    %460 = tpu.dynamic_rotate %422 by %c503_i32 dim 1 : vector<4x512xf32>, i32 -> vector<4x512xf32>
    %c3_297 = arith.constant 3 : index
    %c0_298 = arith.constant 0 : index
    %461 = vector.load %arg5[%c3_297, %c0_298] : memref<8x512xf32, #tpu.memory_space<vmem>>, vector<1x512xf32>
    %462 = vector.broadcast %461 : vector<1x512xf32> to vector<4x512xf32>
    %463 = arith.mulf %460, %462 : vector<4x512xf32>
    %c3_299 = arith.constant 3 : index
    %c0_300 = arith.constant 0 : index
    %c0_301 = arith.constant 0 : index
    %464 = vector.load %arg9[%c3_299, %c0_300, %c0_301] : memref<8x4x4xf32, #tpu.memory_space<vmem>>, vector<1x4x4xf32>
    %465 = vector.shape_cast %464 : vector<1x4x4xf32> to vector<4x4xf32>
    %cst_302 = arith.constant dense<0.000000e+00> : vector<4x512xf32>
    %466 = tpu.matmul %465, %463, %cst_302 {dimension_numbers = #tpu.dot_dimension_numbers<[1], [0], [0], [1], [0, 0, 1, 1], [], []>} : vector<4x4xf32>, vector<4x512xf32>, vector<4x512xf32> -> vector<4x512xf32>
    %467 = arith.addf %455, %466 : vector<4x512xf32>
    %c3_303 = arith.constant 3 : index
    %c0_304 = arith.constant 0 : index
    %c0_305 = arith.constant 0 : index
    %468 = vector.load %arg10[%c3_303, %c0_304, %c0_305] : memref<8x4x4xf32, #tpu.memory_space<vmem>>, vector<1x4x4xf32>
    %469 = vector.shape_cast %468 : vector<1x4x4xf32> to vector<4x4xf32>
    %cst_306 = arith.constant dense<0.000000e+00> : vector<4x512xf32>
    %470 = tpu.matmul %469, %463, %cst_306 {dimension_numbers = #tpu.dot_dimension_numbers<[1], [0], [0], [1], [0, 0, 1, 1], [], []>} : vector<4x4xf32>, vector<4x512xf32>, vector<4x512xf32> -> vector<4x512xf32>
    %471 = arith.addf %459, %470 : vector<4x512xf32>
    %c384_i32 = arith.constant 384 : i32
    %472 = tpu.dynamic_rotate %422 by %c384_i32 dim 1 : vector<4x512xf32>, i32 -> vector<4x512xf32>
    %c4_307 = arith.constant 4 : index
    %c0_308 = arith.constant 0 : index
    %473 = vector.load %arg5[%c4_307, %c0_308] : memref<8x512xf32, #tpu.memory_space<vmem>>, vector<1x512xf32>
    %474 = vector.broadcast %473 : vector<1x512xf32> to vector<4x512xf32>
    %475 = arith.mulf %472, %474 : vector<4x512xf32>
    %c4_309 = arith.constant 4 : index
    %c0_310 = arith.constant 0 : index
    %c0_311 = arith.constant 0 : index
    %476 = vector.load %arg10[%c4_309, %c0_310, %c0_311] : memref<8x4x4xf32, #tpu.memory_space<vmem>>, vector<1x4x4xf32>
    %477 = vector.shape_cast %476 : vector<1x4x4xf32> to vector<4x4xf32>
    %cst_312 = arith.constant dense<0.000000e+00> : vector<4x512xf32>
    %478 = tpu.matmul %477, %475, %cst_312 {dimension_numbers = #tpu.dot_dimension_numbers<[1], [0], [0], [1], [0, 0, 1, 1], [], []>} : vector<4x4xf32>, vector<4x512xf32>, vector<4x512xf32> -> vector<4x512xf32>
    %479 = arith.addf %471, %478 : vector<4x512xf32>
    %c383_i32 = arith.constant 383 : i32
    %480 = tpu.dynamic_rotate %422 by %c383_i32 dim 1 : vector<4x512xf32>, i32 -> vector<4x512xf32>
    %c5_313 = arith.constant 5 : index
    %c0_314 = arith.constant 0 : index
    %481 = vector.load %arg5[%c5_313, %c0_314] : memref<8x512xf32, #tpu.memory_space<vmem>>, vector<1x512xf32>
    %482 = vector.broadcast %481 : vector<1x512xf32> to vector<4x512xf32>
    %483 = arith.mulf %480, %482 : vector<4x512xf32>
    %c5_315 = arith.constant 5 : index
    %c0_316 = arith.constant 0 : index
    %c0_317 = arith.constant 0 : index
    %484 = vector.load %arg10[%c5_315, %c0_316, %c0_317] : memref<8x4x4xf32, #tpu.memory_space<vmem>>, vector<1x4x4xf32>
    %485 = vector.shape_cast %484 : vector<1x4x4xf32> to vector<4x4xf32>
    %cst_318 = arith.constant dense<0.000000e+00> : vector<4x512xf32>
    %486 = tpu.matmul %485, %483, %cst_318 {dimension_numbers = #tpu.dot_dimension_numbers<[1], [0], [0], [1], [0, 0, 1, 1], [], []>} : vector<4x4xf32>, vector<4x512xf32>, vector<4x512xf32> -> vector<4x512xf32>
    %487 = arith.addf %479, %486 : vector<4x512xf32>
    %c376_i32 = arith.constant 376 : i32
    %488 = tpu.dynamic_rotate %422 by %c376_i32 dim 1 : vector<4x512xf32>, i32 -> vector<4x512xf32>
    %c6_319 = arith.constant 6 : index
    %c0_320 = arith.constant 0 : index
    %489 = vector.load %arg5[%c6_319, %c0_320] : memref<8x512xf32, #tpu.memory_space<vmem>>, vector<1x512xf32>
    %490 = vector.broadcast %489 : vector<1x512xf32> to vector<4x512xf32>
    %491 = arith.mulf %488, %490 : vector<4x512xf32>
    %c6_321 = arith.constant 6 : index
    %c0_322 = arith.constant 0 : index
    %c0_323 = arith.constant 0 : index
    %492 = vector.load %arg10[%c6_321, %c0_322, %c0_323] : memref<8x4x4xf32, #tpu.memory_space<vmem>>, vector<1x4x4xf32>
    %493 = vector.shape_cast %492 : vector<1x4x4xf32> to vector<4x4xf32>
    %cst_324 = arith.constant dense<0.000000e+00> : vector<4x512xf32>
    %494 = tpu.matmul %493, %491, %cst_324 {dimension_numbers = #tpu.dot_dimension_numbers<[1], [0], [0], [1], [0, 0, 1, 1], [], []>} : vector<4x4xf32>, vector<4x512xf32>, vector<4x512xf32> -> vector<4x512xf32>
    %495 = arith.addf %487, %494 : vector<4x512xf32>
    %c375_i32 = arith.constant 375 : i32
    %496 = tpu.dynamic_rotate %422 by %c375_i32 dim 1 : vector<4x512xf32>, i32 -> vector<4x512xf32>
    %c7_325 = arith.constant 7 : index
    %c0_326 = arith.constant 0 : index
    %497 = vector.load %arg5[%c7_325, %c0_326] : memref<8x512xf32, #tpu.memory_space<vmem>>, vector<1x512xf32>
    %498 = vector.broadcast %497 : vector<1x512xf32> to vector<4x512xf32>
    %499 = arith.mulf %496, %498 : vector<4x512xf32>
    %c7_327 = arith.constant 7 : index
    %c0_328 = arith.constant 0 : index
    %c0_329 = arith.constant 0 : index
    %500 = vector.load %arg10[%c7_327, %c0_328, %c0_329] : memref<8x4x4xf32, #tpu.memory_space<vmem>>, vector<1x4x4xf32>
    %501 = vector.shape_cast %500 : vector<1x4x4xf32> to vector<4x4xf32>
    %cst_330 = arith.constant dense<0.000000e+00> : vector<4x512xf32>
    %502 = tpu.matmul %501, %499, %cst_330 {dimension_numbers = #tpu.dot_dimension_numbers<[1], [0], [0], [1], [0, 0, 1, 1], [], []>} : vector<4x4xf32>, vector<4x512xf32>, vector<4x512xf32> -> vector<4x512xf32>
    %503 = arith.addf %495, %502 : vector<4x512xf32>
    %504 = vector.extract_strided_slice %467 {offsets = [0, 0], sizes = [4, 128], strides = [1, 1]} : vector<4x512xf32> to vector<4x128xf32>
    %505 = vector.extract_strided_slice %503 {offsets = [0, 0], sizes = [4, 128], strides = [1, 1]} : vector<4x512xf32> to vector<4x128xf32>
    %506 = arith.maximumf %504, %505 : vector<4x128xf32>
    %507 = vector.extract_strided_slice %467 {offsets = [0, 128], sizes = [4, 128], strides = [1, 1]} : vector<4x512xf32> to vector<4x128xf32>
    %508 = vector.extract_strided_slice %503 {offsets = [0, 128], sizes = [4, 128], strides = [1, 1]} : vector<4x512xf32> to vector<4x128xf32>
    %509 = arith.maximumf %507, %508 : vector<4x128xf32>
    %510 = arith.maximumf %506, %509 : vector<4x128xf32>
    %511 = vector.extract_strided_slice %467 {offsets = [0, 256], sizes = [4, 128], strides = [1, 1]} : vector<4x512xf32> to vector<4x128xf32>
    %512 = vector.extract_strided_slice %503 {offsets = [0, 256], sizes = [4, 128], strides = [1, 1]} : vector<4x512xf32> to vector<4x128xf32>
    %513 = arith.maximumf %511, %512 : vector<4x128xf32>
    %514 = arith.maximumf %510, %513 : vector<4x128xf32>
    %515 = vector.extract_strided_slice %467 {offsets = [0, 384], sizes = [4, 128], strides = [1, 1]} : vector<4x512xf32> to vector<4x128xf32>
    %516 = vector.extract_strided_slice %503 {offsets = [0, 384], sizes = [4, 128], strides = [1, 1]} : vector<4x512xf32> to vector<4x128xf32>
    %517 = arith.maximumf %515, %516 : vector<4x128xf32>
    %518 = arith.maximumf %514, %517 : vector<4x128xf32>
    %519 = tpu.concatenate %518, %518, %518, %518 in 1 : vector<4x128xf32>, vector<4x128xf32>, vector<4x128xf32>, vector<4x128xf32> -> vector<4x512xf32>
    %520 = arith.subf %467, %519 : vector<4x512xf32>
    %521 = math.exp %520 : vector<4x512xf32>
    %522 = arith.subf %503, %519 : vector<4x512xf32>
    %523 = math.exp %522 : vector<4x512xf32>
    %524 = vector.extract_strided_slice %521 {offsets = [0, 0], sizes = [4, 128], strides = [1, 1]} : vector<4x512xf32> to vector<4x128xf32>
    %525 = vector.extract_strided_slice %523 {offsets = [0, 0], sizes = [4, 128], strides = [1, 1]} : vector<4x512xf32> to vector<4x128xf32>
    %526 = arith.addf %524, %525 : vector<4x128xf32>
    %527 = vector.extract_strided_slice %521 {offsets = [0, 128], sizes = [4, 128], strides = [1, 1]} : vector<4x512xf32> to vector<4x128xf32>
    %528 = arith.addf %526, %527 : vector<4x128xf32>
    %529 = vector.extract_strided_slice %523 {offsets = [0, 128], sizes = [4, 128], strides = [1, 1]} : vector<4x512xf32> to vector<4x128xf32>
    %530 = arith.addf %528, %529 : vector<4x128xf32>
    %531 = vector.extract_strided_slice %521 {offsets = [0, 256], sizes = [4, 128], strides = [1, 1]} : vector<4x512xf32> to vector<4x128xf32>
    %532 = arith.addf %530, %531 : vector<4x128xf32>
    %533 = vector.extract_strided_slice %523 {offsets = [0, 256], sizes = [4, 128], strides = [1, 1]} : vector<4x512xf32> to vector<4x128xf32>
    %534 = arith.addf %532, %533 : vector<4x128xf32>
    %535 = vector.extract_strided_slice %521 {offsets = [0, 384], sizes = [4, 128], strides = [1, 1]} : vector<4x512xf32> to vector<4x128xf32>
    %536 = arith.addf %534, %535 : vector<4x128xf32>
    %537 = vector.extract_strided_slice %523 {offsets = [0, 384], sizes = [4, 128], strides = [1, 1]} : vector<4x512xf32> to vector<4x128xf32>
    %538 = arith.addf %536, %537 : vector<4x128xf32>
    %539 = tpu.reciprocal %538 {approx = true} : vector<4x128xf32> -> vector<4x128xf32>
    %540 = arith.mulf %538, %539 : vector<4x128xf32>
    %cst_331 = arith.constant 2.000000e+00 : f32
    %541 = vector.broadcast %cst_331 : f32 to vector<4x128xf32>
    %542 = arith.subf %541, %540 : vector<4x128xf32>
    %543 = arith.mulf %539, %542 : vector<4x128xf32>
    %544 = tpu.concatenate %543, %543, %543, %543 in 1 : vector<4x128xf32>, vector<4x128xf32>, vector<4x128xf32>, vector<4x128xf32> -> vector<4x512xf32>
    %545 = arith.mulf %521, %544 : vector<4x512xf32>
    %c0_332 = arith.constant 0 : index
    %c0_333 = arith.constant 0 : index
    %c0_334 = arith.constant 0 : index
    %c0_335 = arith.constant 0 : index
    %546 = vector.load %arg11[%c0_332, %c0_333, %c0_334, %c0_335] : memref<1x2x4x512xf32, #tpu.memory_space<vmem>>, vector<1x1x4x512xf32>
    %547 = vector.shape_cast %546 : vector<1x1x4x512xf32> to vector<4x512xf32>
    %548 = vector.shape_cast %545 : vector<4x512xf32> to vector<1x1x4x512xf32>
    tpu.vector_store %arg11[%c0_332, %c0_333, %c0_334, %c0_335], %548 {strides = array<i32>} : memref<1x2x4x512xf32, #tpu.memory_space<vmem>>, vector<1x1x4x512xf32>,
    %549 = arith.mulf %523, %544 : vector<4x512xf32>
    %c0_336 = arith.constant 0 : index
    %c1_337 = arith.constant 1 : index
    %c0_338 = arith.constant 0 : index
    %c0_339 = arith.constant 0 : index
    %550 = vector.load %arg11[%c0_336, %c1_337, %c0_338, %c0_339] : memref<1x2x4x512xf32, #tpu.memory_space<vmem>>, vector<1x1x4x512xf32>
    %551 = vector.shape_cast %550 : vector<1x1x4x512xf32> to vector<4x512xf32>
    %552 = vector.shape_cast %549 : vector<4x512xf32> to vector<1x1x4x512xf32>
    tpu.vector_store %arg11[%c0_336, %c1_337, %c0_338, %c0_339], %552 {strides = array<i32>} : memref<1x2x4x512xf32, #tpu.memory_space<vmem>>, vector<1x1x4x512xf32>,
    return
  }
  func.func @transform_0(%arg0: i32) -> (i32, i32, i32) {
    %c0_i32 = arith.constant 0 : i32
    %c0_i32_0 = arith.constant 0 : i32
    %c0_i32_1 = arith.constant 0 : i32
    return %arg0, %c0_i32, %c0_i32_0 : i32, i32, i32
  }
  func.func @transform_1(%arg0: i32) -> (i32, i32, i32) {
    %c0_i32 = arith.constant 0 : i32
    %c0_i32_0 = arith.constant 0 : i32
    %c0_i32_1 = arith.constant 0 : i32
    return %arg0, %c0_i32, %c0_i32_0 : i32, i32, i32
  }
  func.func @transform_2(%arg0: i32) -> (i32, i32) {
    %c0_i32 = arith.constant 0 : i32
    %c0_i32_0 = arith.constant 0 : i32
    %c0_i32_1 = arith.constant 0 : i32
    return %c0_i32, %c0_i32_0 : i32, i32
  }
  func.func @transform_3(%arg0: i32) -> (i32, i32) {
    %c0_i32 = arith.constant 0 : i32
    %c0_i32_0 = arith.constant 0 : i32
    %c0_i32_1 = arith.constant 0 : i32
    return %c0_i32, %c0_i32_0 : i32, i32
  }
  func.func @transform_4(%arg0: i32) -> (i32, i32) {
    %c0_i32 = arith.constant 0 : i32
    %c0_i32_0 = arith.constant 0 : i32
    %c0_i32_1 = arith.constant 0 : i32
    return %c0_i32, %c0_i32_0 : i32, i32
  }
  func.func @transform_5(%arg0: i32) -> (i32, i32, i32) {
    %c0_i32 = arith.constant 0 : i32
    %c0_i32_0 = arith.constant 0 : i32
    %c0_i32_1 = arith.constant 0 : i32
    %c0_i32_2 = arith.constant 0 : i32
    return %c0_i32, %c0_i32_0, %c0_i32_1 : i32, i32, i32
  }
  func.func @transform_6(%arg0: i32) -> (i32, i32, i32) {
    %c0_i32 = arith.constant 0 : i32
    %c0_i32_0 = arith.constant 0 : i32
    %c0_i32_1 = arith.constant 0 : i32
    %c0_i32_2 = arith.constant 0 : i32
    return %c0_i32, %c0_i32_0, %c0_i32_1 : i32, i32, i32
  }
  func.func @transform_7(%arg0: i32) -> (i32, i32) {
    %c0_i32 = arith.constant 0 : i32
    %c0_i32_0 = arith.constant 0 : i32
    %c0_i32_1 = arith.constant 0 : i32
    return %c0_i32, %c0_i32_0 : i32, i32
  }
  func.func @transform_8(%arg0: i32) -> (i32, i32, i32) {
    %c0_i32 = arith.constant 0 : i32
    %c0_i32_0 = arith.constant 0 : i32
    %c0_i32_1 = arith.constant 0 : i32
    %c0_i32_2 = arith.constant 0 : i32
    return %c0_i32, %c0_i32_0, %c0_i32_1 : i32, i32, i32
  }
  func.func @transform_9(%arg0: i32) -> (i32, i32, i32) {
    %c0_i32 = arith.constant 0 : i32
    %c0_i32_0 = arith.constant 0 : i32
    %c0_i32_1 = arith.constant 0 : i32
    %c0_i32_2 = arith.constant 0 : i32
    return %c0_i32, %c0_i32_0, %c0_i32_1 : i32, i32, i32
  }
  func.func @transform_10(%arg0: i32) -> (i32, i32, i32, i32) {
    %c0_i32 = arith.constant 0 : i32
    %c0_i32_0 = arith.constant 0 : i32
    %c0_i32_1 = arith.constant 0 : i32
    %c0_i32_2 = arith.constant 0 : i32
    return %arg0, %c0_i32, %c0_i32_0, %c0_i32_1 : i32, i32, i32, i32
  }
}

</mosaic_0001>

<bundles_post_ra>
// kernel: tpu_custom_call.1
= control target key start
LH: loop header
LB: loop body
LE: loop exit
PB: predicated region body
PF: predicated region fallthrough
CT: control target
= control target key end

     0   :  { %15 = vsyncpa [#allocation3], 0  ;;  %s16267_s0 = inlined_call_operand.vmem [shape: f32[2,4,128], index: 0, kind: input, shape index: {}]   ;;  %s16268_s1 = inlined_call_operand.vmem [shape: f32[2,4,128], index: 1, kind: input, shape index: {}]   ;;  %s16269_s2 = inlined_call_operand.vmem [shape: f32[4,128], index: 2, kind: input, shape index: {}]   ;;  %s16270_s3 = inlined_call_operand.vmem [shape: f32[27,1024], index: 3, kind: input, shape index: {}]   ;;  %s16271_s4 = inlined_call_operand.vmem [shape: f32[8,512], index: 4, kind: input, shape index: {}]   ;;  %s16272_s5 = inlined_call_operand.vmem [shape: f32[27,4,4], index: 5, kind: input, shape index: {}]   ;;  %s16273_s6 = inlined_call_operand.vmem [shape: f32[27,4,4], index: 6, kind: input, shape index: {}]   ;;  %s16274_s7 = inlined_call_operand.vmem [shape: f32[4,1], index: 7, kind: input, shape index: {}]   ;;  %s16275_s8 = inlined_call_operand.vmem [shape: f32[8,4,4], index: 8, kind: input, shape index: {}]   ;;  %s16276_s9 = inlined_call_operand.vmem [shape: f32[8,4,4], index: 9, kind: input, shape index: {}]   ;;  %s16277_s10 = inlined_call_operand.hbm [shape: f32[2,2,4,512], index: 10, kind: output, shape index: {}]  }
   0x1   :  { %17 = vsyncpa [#allocation3 + $0x1], 0  ;;  %s14162_s13 = smov 0   ;;  %s14164_s14 = smov 0  }
   0x2   :  { %s14166_s15 = smov 0   ;;  %s14168_s16 = smov 0  }
   0x3 LB: > { %s14183_s17 = sadd.s32 4294967295, %s14091_s16   ;;  %s13165_s18 = sadd.s32 4294967294, %s14091_s16   ;;  %s14091_s16 = sphi %s14168_s16, %s16469_s16   ;;  %s14087_s15 = sphi %s14166_s15, %s16468_s15   ;;  %s14083_s14 = sphi %s14164_s14, %s16467_s14   ;;  %s14079_s13 = sphi %s14162_s13, %s16466_s13  }
   0x4   : > { %s14187_s19 = sadd.s32 1, %s14091_s16   ;;  %s250_s20 = sadd.s32 1, %s14087_s15 }
   0x5   : > { %s247_s21 = ssub.s32 %s14091_s16, %s14187_s19  ;;  %p260_p0 = scmp.ne.s32.totalorder %s14087_s15, %s14083_s14 }
   0x6   : > { %p248_p1 = scmp.eq.s32.totalorder %s247_s21, 0  ;;  %p261_p2 = scmp.eq.s32.totalorder %s14183_s17, 1 }
   0x7   : > { %p266_p3 = scmp.ne.s32.totalorder %s14083_s14, %s14079_s13  ;;  %p267_p4 = scmp.eq.s32.totalorder %s13165_s18, 1 }
   0x8   : > { %s14198_s22 = scalar_select %p248_p1, %s14087_s15, %s250_s20  }
   0x9   : > { %p14200_p5 = por %p261_p2, %p260_p0  ;;  %p14204_p6 = por %p267_p4, %p266_p3 }
   0xa   : > { %16355 = sst [smem:[#allocation5_spill]] %s14198_s22  ;;  %p13168_p7 = scmp.ge.s32.totalorder %s14091_s16, 1 }
   0xb   : > { %p323_p8 = scmp.lt.s32.totalorder %s14091_s16, 3 }
   0xd   : > { %p324_p9 = pnand %p13168_p7, %p323_p8 }
   0xf   : > { %327 = sbr.rel (%p324_p9) target bundleno = 1395 (0x573), region = 60 }
  0x16   : > { %p364_p10 = scmp.lt.s32.totalorder %s14183_s17, 1  ;;  %v13174_v0 = vld [vmem:[%s16269_s2 + $0x2] ss:$0 sm:$0xff]  ;;  %s14093_s21 = smov 1   ;;  %v13175_v7 = vld [vmem:[%s16269_s2 + $0x3] ss:$0 sm:$0xff]  ;;  %v443_v31 = vlaneseq }
  0x17   : > { %s14094_s22 = smov 126   ;;  %s14096_s27 = smov 9   ;;  %v13172_v8 = vld [vmem:[%s16269_s2] ss:$0 sm:$0xff]  ;;  %v13173_v16 = vld [vmem:[%s16269_s2 + $0x1] ss:$0 sm:$0xff] }
  0x18   : > { %s365_s25 = scalar_select %p364_p10, %s14183_s17, 1  ;;  %v16280_v18 = vmov 0.0   ;;  %v454_v32 = vld [vmem:[%s16270_s3] ss:$8 sm:$0xf]  ;;  %v14344_v34 = vand.u32 127, %v443_v31 }
  0x19   : > { %588 = vmatprep.mubr.f32.mxu0 %v16280_v18  ;;  %659 = vmatprep.mubr.f32.mxu1 %v16280_v18  ;;  %s14098_s12 = smov 8   ;;  %s14099_s18 = smov 7   ;;  %v455_v33 = vld [vmem:[%s16270_s3] ss:$8 sm:$0xf0]  ;;  %v459_v36 = vshrl.u32 %v443_v31, 7 }
  0x1a   : > { %s13170_s26 = sshll.u32 %s365_s25, 2  ;;  %s14095_s25 = smov 127   ;;  %16366 = vst [vmem:[#allocation14_spill] sm:$0xff] %v14344_v34  ;;  %v456_v37 = vor.u32 %v455_v33, %v454_v32  ;;  %vm445_vm0 = vcmp.lt.s32.totalorder %v14344_v34, 9  ;;  %vm511_vm1 = vcmask 1043456   ;;  %vm507_vm2 = vcmask 31744  }
  0x1b   : > { %s371_s11 = scalar_lea.vmem %s16268_s1, %s13170_s26  ;;  %s367_s20 = scalar_lea.vmem %s16267_s0, %s13170_s26  ;;  %v14350_v38 = vsub.s32 1, %v459_v36  ;;  %v14353_v39 = vsub.s32 0, %v459_v36  ;;  %v14369_v46 = vsub.s32 2, %v459_v36  ;;  %v14371_v47 = vsub.s32 3, %v459_v36  ;;  %v506_v51 = vld [vmem:[%s16272_s5] sm:$0xf] }
  0x1c   : > { %v373_v1 = vld [vmem:[%s371_s11] sm:$0xf]  ;;  %s14102_s30 = smov 119   ;;  %v14385_v54 = vsub.s32 4, %v459_v36  ;;  %v14387_v55 = vsub.s32 5, %v459_v36  ;;  %v14390_v57 = vsub.s32 7, %v459_v36 }
  0x1d   : > { %409 = vrot.lane.b32.xlu1 %v373_v1, %s14093_s21  ;;  %v404_v2 = vmul.f32 %v13174_v0, %v373_v1  ;;  %375 = vrot.lane.b32.xlu0 %v373_v1, %s14094_s22  ;;  %v372_v3 = vld [vmem:[%s367_s20] sm:$0xf]  ;;  %s14100_s20 = smov 121   ;;  %v465_v41 = vrot.slane %v456_v37, %v14350_v38  ;;  %v461_v42 = vrot.slane %v456_v37, %v14353_v39  ;;  %v14401_v61 = vsub.s32 6, %v459_v36  ;;  %s13700_s11 = sshll.u32 %s14183_s17, 9 }
  0x1e   : > { %v374_v13 = vmul.f32 %v372_v3, %v372_v3  ;;  %v473_v52 = vrot.slane %v456_v37, %v14371_v47  ;;  %v469_v53 = vrot.slane %v456_v37, %v14369_v46  ;;  %v477_v62 = vrot.slane %v456_v37, %v14385_v54  ;;  %s16222_s26 = scalar_lea.hbm %s16277_s10, %s13700_s11  ;;  %s14104_s28 = smov [#allocation2]  }
  0x1f   : > { %v405_v4 = vmul.f32 0.25, %v404_v2  ;;  %v481_v63 = vrot.slane %v456_v37, %v14387_v55  ;;  %vm848_vm3 = vcmp.lt.s32.totalorder %v14344_v34, 8  ;;  %vm1252_vm4 = vcmp.lt.s32.totalorder %v14344_v34, 7 }
  0x20   : > { %vm1656_vm5 = vcmp.lt.s32.totalorder %v14344_v34, 1  ;;  %vm2439_vm6 = vcmp.lt.s32.totalorder %v14344_v34, 127  ;;  %vm2843_vm7 = vcmp.lt.s32.totalorder %v14344_v34, 121  ;;  %vm3247_vm8 = vcmp.lt.s32.totalorder %v14344_v34, 120 }
  0x21   : > { %v406_v5 = vmul.f32 %v405_v4, %v404_v2  ;;  %v14222_v6 = vmul.f32 %v405_v4, %v372_v3  ;;  %387 = vrot.lane.b32.xlu0 %v373_v1, %s14095_s25  ;;  %v489_v2 = vrot.slane %v456_v37, %v14390_v57  ;;  %vm3651_vm9 = vcmp.lt.s32.totalorder %v14344_v34, 119 }
  0x23   : > { %16358 = vst [vmem:[#allocation6_spill] sm:$0xff] %v14222_v6  ;;  %439 = vrot.lane.b32.xlu1 %v14222_v6, %s14096_s27  ;;  %v14240_v22 = vadd.f32 %v406_v5, %v374_v13  ;;  %v485_v5 = vrot.slane %v456_v37, %v14401_v61 }
  0x25   : > { %16360 = vst [vmem:[#allocation8_spill] sm:$0xff] %v14240_v22 }
  0x8f   : > { %v410_v9 = vpop.permute.xlu1 %409  ;;  %v376_v10 = vpop.permute.xlu0 %375 }
  0x90   : > { %v416_v11 = vmul.f32 %v13175_v7, %v410_v9  ;;  %v382_v12 = vmul.f32 %v13172_v8, %v376_v10  ;;  %v13188_v7 = vld [vmem:[%s16270_s3 + $0x1] ss:$8 sm:$0xf] }
  0x91   : > { %v13189_v8 = vld [vmem:[%s16270_s3 + $0x1] ss:$8 sm:$0xf0] }
  0x92   : > { %v417_v14 = vmul.f32 0.25, %v416_v11  ;;  %v383_v15 = vmul.f32 0.25, %v382_v12 }
  0x93   : > { %v388_v17 = vpop.permute.xlu0 %387 }
  0x94   : > { %v14238_v19 = vmul.f32 %v417_v14, %v372_v3  ;;  %v384_v20 = vmul.f32 %v383_v15, %v382_v12  ;;  %v394_v21 = vmul.f32 %v13173_v16, %v388_v17  ;;  %v418_v25 = vmul.f32 %v417_v14, %v416_v11  ;;  %v670_v17 = vld [vmem:[%s16273_s6] sm:$0xf] }
  0x95   : > { %v14258_v29 = vmul.f32 %v383_v15, %v372_v3  ;;  %v440_v35 = vpop.permute.xlu1 %439  ;;  %v860_v16 = vor.u32 %v13189_v8, %v13188_v7 }
  0x96   : > { %16359 = vst [vmem:[#allocation7_spill] sm:$0xff] %v14238_v19  ;;  %v14242_v23 = vadd.f32 %v384_v20, %v374_v13  ;;  %441 = vrot.lane.b32.xlu0 %v14238_v19, %s14096_s27  ;;  %v395_v24 = vmul.f32 0.25, %v394_v21  ;;  %v14252_v28 = vadd.f32 %v418_v25, %v374_v13 }
  0x97   : > { %16364 = vst [vmem:[#allocation12_spill] sm:$0xff] %v14258_v29  ;;  %v869_v25 = vrot.slane %v860_v16, %v14350_v38  ;;  %v873_v37 = vrot.slane %v860_v16, %v14369_v46 }
  0x98   : > { %16361 = vst [vmem:[#allocation9_spill] sm:$0xff] %v14242_v23  ;;  %427 = vrot.lane.b32.xlu1 %v14242_v23, %s14096_s27  ;;  %v396_v26 = vmul.f32 %v395_v24, %v394_v21  ;;  %16363 = vst [vmem:[#allocation11_spill] sm:$0xff] %v14252_v28  ;;  %v14260_v30 = vmul.f32 %v395_v24, %v372_v3 }
  0x9a   : > { %431 = vrot.lane.b32.xlu0 %v14240_v22, %s14096_s27  ;;  %v14250_v27 = vadd.f32 %v396_v26, %v374_v13  ;;  %16365 = vst [vmem:[#allocation13_spill] sm:$0xff] %v14260_v30  ;;  %v865_v26 = vrot.slane %v860_v16, %v14353_v39 }
  0x9c   : > { %16362 = vst [vmem:[#allocation10_spill] sm:$0xff] %v14250_v27  ;;  %429 = vrot.lane.b32.xlu1 %v14250_v27, %s14096_s27 }
  0x9e   : > { %433 = vrot.lane.b32.xlu0 %v14252_v28, %s14096_s27 }
  0xa0   : > { %435 = vrot.lane.b32.xlu1 %v14258_v29, %s14096_s27 }
  0xa2   : > { %437 = vrot.lane.b32.xlu0 %v14260_v30, %s14096_s27 }
  0xa4   : > { %844 = vrot.lane.b32.xlu1 %v14222_v6, %s14098_s12 }
  0xa6   : > { %846 = vrot.lane.b32.xlu0 %v14238_v19, %s14098_s12 }
  0xa8   : > { %832 = vrot.lane.b32.xlu1 %v14242_v23, %s14098_s12 }
  0xaa   : > { %836 = vrot.lane.b32.xlu0 %v14240_v22, %s14098_s12 }
  0xac   : > { %834 = vrot.lane.b32.xlu1 %v14250_v27, %s14098_s12 }
  0xae   : > { %838 = vrot.lane.b32.xlu0 %v14252_v28, %s14098_s12 }
  0xb0   : > { %840 = vrot.lane.b32.xlu1 %v14258_v29, %s14098_s12 }
  0xb2   : > { %842 = vrot.lane.b32.xlu0 %v14260_v30, %s14098_s12 }
  0xb4   : > { %1248 = vrot.lane.b32.xlu1 %v14222_v6, %s14099_s18 }
  0xb6   : > { %1250 = vrot.lane.b32.xlu0 %v14238_v19, %s14099_s18 }
  0xb8   : > { %1236 = vrot.lane.b32.xlu1 %v14242_v23, %s14099_s18 }
  0xba   : > { %1240 = vrot.lane.b32.xlu0 %v14240_v22, %s14099_s18 }
  0xbc   : > { %1238 = vrot.lane.b32.xlu1 %v14250_v27, %s14099_s18 }
  0xbe   : > { %1242 = vrot.lane.b32.xlu0 %v14252_v28, %s14099_s18 }
  0xc0   : > { %1244 = vrot.lane.b32.xlu1 %v14258_v29, %s14099_s18 }
  0xc2   : > { %1246 = vrot.lane.b32.xlu0 %v14260_v30, %s14099_s18 }
  0xc4   : > { %1640 = vrot.lane.b32.xlu1 %v14242_v23, %s14093_s21 }
  0xc6   : > { %1654 = vrot.lane.b32.xlu0 %v14238_v19, %s14093_s21 }
  0xc8   : > { %1642 = vrot.lane.b32.xlu1 %v14250_v27, %s14093_s21 }
  0xca   : > { %1644 = vrot.lane.b32.xlu0 %v14240_v22, %s14093_s21 }
  0xcc   : > { %1652 = vrot.lane.b32.xlu1 %v14222_v6, %s14093_s21 }
  0xce   : > { %1646 = vrot.lane.b32.xlu0 %v14252_v28, %s14093_s21 }
  0xd0   : > { %1648 = vrot.lane.b32.xlu1 %v14258_v29, %s14093_s21 }
  0xd2   : > { %1650 = vrot.lane.b32.xlu0 %v14260_v30, %s14093_s21  ;;  %s14101_s21 = smov 120  }
  0xd4   : > { %2427 = vrot.lane.b32.xlu1 %v14240_v22, %s14095_s25 }
  0xd6   : > { %2425 = vrot.lane.b32.xlu0 %v14250_v27, %s14095_s25 }
  0xd8   : > { %2423 = vrot.lane.b32.xlu1 %v14242_v23, %s14095_s25 }
  0xda   : > { %2429 = vrot.lane.b32.xlu0 %v14252_v28, %s14095_s25 }
  0xdc   : > { %2437 = vrot.lane.b32.xlu1 %v14238_v19, %s14095_s25 }
  0xde   : > { %2431 = vrot.lane.b32.xlu0 %v14258_v29, %s14095_s25 }
  0xe0   : > { %2433 = vrot.lane.b32.xlu1 %v14260_v30, %s14095_s25 }
  0xe2   : > { %2435 = vrot.lane.b32.xlu0 %v14222_v6, %s14095_s25 }
  0xe4   : > { %2831 = vrot.lane.b32.xlu1 %v14240_v22, %s14100_s20 }
  0xe6   : > { %2829 = vrot.lane.b32.xlu0 %v14250_v27, %s14100_s20 }
  0xe8   : > { %2827 = vrot.lane.b32.xlu1 %v14242_v23, %s14100_s20 }
  0xea   : > { %2833 = vrot.lane.b32.xlu0 %v14252_v28, %s14100_s20 }
  0xec   : > { %2841 = vrot.lane.b32.xlu1 %v14238_v19, %s14100_s20 }
  0xee   : > { %2835 = vrot.lane.b32.xlu0 %v14258_v29, %s14100_s20 }
  0xf0   : > { %2837 = vrot.lane.b32.xlu1 %v14260_v30, %s14100_s20 }
  0xf2   : > { %2839 = vrot.lane.b32.xlu0 %v14222_v6, %s14100_s20 }
  0xf4   : > { %3235 = vrot.lane.b32.xlu1 %v14240_v22, %s14101_s21 }
  0xf6   : > { %3233 = vrot.lane.b32.xlu0 %v14250_v27, %s14101_s21 }
  0xf8   : > { %3231 = vrot.lane.b32.xlu1 %v14242_v23, %s14101_s21 }
  0xfa   : > { %3237 = vrot.lane.b32.xlu0 %v14252_v28, %s14101_s21 }
  0xfc   : > { %3245 = vrot.lane.b32.xlu1 %v14238_v19, %s14101_s21 }
  0xfe   : > { %3239 = vrot.lane.b32.xlu0 %v14258_v29, %s14101_s21 }
 0x100   : > { %3241 = vrot.lane.b32.xlu1 %v14260_v30, %s14101_s21 }
 0x102   : > { %3243 = vrot.lane.b32.xlu0 %v14222_v6, %s14101_s21 }
 0x104   : > { %3639 = vrot.lane.b32.xlu1 %v14240_v22, %s14102_s30 }
 0x106   : > { %3637 = vrot.lane.b32.xlu0 %v14250_v27, %s14102_s30 }
 0x108   : > { %v442_v40 = vpop.permute.xlu0 %441  ;;  %3635 = vrot.lane.b32.xlu1 %v14242_v23, %s14102_s30 }
 0x109   : > { %v14361_v43 = vsel %vm445_vm0, %v440_v35, %v442_v40 }
 0x10a   : > { %3641 = vrot.lane.b32.xlu0 %v14252_v28, %s14102_s30  ;;  %v428_v44 = vpop.permute.xlu1 %427  ;;  %v498_v50 = vmul.f32 %v461_v42, %v14361_v43  ;;  %v13190_v42 = vld [vmem:[%s16272_s5 + $0x4] sm:$0xf] }
 0x10b   : > { %v14367_v45 = vsel %vm445_vm0, %v442_v40, %v428_v44  ;;  %v877_v40 = vrot.slane %v860_v16, %v14371_v47 }
 0x10c   : > { %v432_v48 = vpop.permute.xlu0 %431  ;;  %v499_v49 = vmul.f32 %v465_v41, %v14367_v45  ;;  %3649 = vrot.lane.b32.xlu1 %v14238_v19, %s14102_s30 }
 0x10e   : > { %3643 = vrot.lane.b32.xlu0 %v14258_v29, %s14102_s30  ;;  %13176 = vmatprep.subr.msk.mxu0 %vm511_vm1, %v499_v49  ;;  %v430_v56 = vpop.permute.xlu1 %429 }
 0x10f   : > { %13177 = vmatpush1.msk.msra.mxu0 %vm511_vm1, %v498_v50  ;;  %v14394_v58 = vsel %vm445_vm0, %v430_v56, %v432_v48  ;;  %v14398_v59 = vsel %vm445_vm0, %v428_v44, %v430_v56  ;;  %v881_v56 = vrot.slane %v860_v16, %v14385_v54 }
 0x110   : > { %v434_v60 = vpop.permute.xlu0 %433  ;;  %13178 = vmatmul.mubr.msk.f32.vlgmr.msra.gmra.mrb[0].mxu0 %vm507_vm2, %v506_v51  ;;  %3645 = vrot.lane.b32.xlu1 %v14260_v30, %s14102_s30  ;;  %v501_v0 = vmul.f32 %v473_v52, %v14394_v58  ;;  %v500_v1 = vmul.f32 %v469_v53, %v14398_v59  ;;  %v885_v53 = vrot.slane %v860_v16, %v14387_v55 }
 0x111   : > { %750 = vmatprep.mubr.f32.mxu0 %v16280_v18  ;;  %v14415_v3 = vsel %vm445_vm0, %v432_v48, %v434_v60 }
 0x112   : > { %3647 = vrot.lane.b32.xlu0 %v14222_v6, %s14102_s30  ;;  %v436_v4 = vpop.permute.xlu1 %435  ;;  %13179 = vmatprep.subr.msk.mxu1 %vm511_vm1, %v501_v0  ;;  %v502_v13 = vmul.f32 %v477_v62, %v14415_v3  ;;  %v889_v0 = vrot.slane %v860_v16, %v14401_v61 }
 0x113   : > { %v14427_v9 = vsel %vm445_vm0, %v434_v60, %v436_v4  ;;  %13180 = vmatpush1.msk.msra.mxu1 %vm511_vm1, %v500_v1  ;;  %v893_v60 = vrot.slane %v860_v16, %v14390_v57  ;;  %v13204_v1 = vld [vmem:[%s16270_s3 + $0x2] ss:$8 sm:$0xf]  ;;  %v13197_v16 = vld [vmem:[%s16273_s6 + $0x4] sm:$0xf] }
 0x114   : > { %v438_v10 = vpop.permute.xlu0 %437  ;;  %v503_v11 = vmul.f32 %v481_v63, %v14427_v9  ;;  %13181 = vmatmul.mubr.msk.f32.vlgmr.msra.gmra.mrb[0].mxu1 %vm507_vm2, %v506_v51 }
 0x115   : > { %v14433_v12 = vsel %vm445_vm0, %v438_v10, %v440_v35  ;;  %v14438_v14 = vsel %vm445_vm0, %v436_v4, %v438_v10  ;;  %821 = vmatprep.mubr.f32.mxu1 %v16280_v18 }
 0x116   : > { %v505_v15 = vmul.f32 %v489_v2, %v14433_v12  ;;  %v504_v20 = vmul.f32 %v485_v5, %v14438_v14  ;;  %13182 = vmatprep.subr.msk.mxu0 %vm511_vm1, %v503_v11  ;;  %v845_v21 = vpop.permute.xlu1 %844  ;;  %v13205_v2 = vld [vmem:[%s16270_s3 + $0x2] ss:$8 sm:$0xf0] }
 0x117   : > { %13183 = vmatpush1.msk.msra.mxu0 %vm511_vm1, %v502_v13 }
 0x118   : > { %v847_v24 = vpop.permute.xlu0 %846  ;;  %13185 = vmatprep.subr.msk.mxu1 %vm511_vm1, %v505_v15  ;;  %13184 = vmatmul.mubr.msk.f32.vlgmr.msra.gmra.mrb[0].mxu0 %vm507_vm2, %v670_v17  ;;  %v1264_v15 = vor.u32 %v13205_v2, %v13204_v1 }
 0x119   : > { %13186 = vmatpush1.msk.msra.mxu1 %vm511_vm1, %v504_v20  ;;  %991 = vmatprep.mubr.f32.mxu0 %v16280_v18  ;;  %v14458_v31 = vsel %vm848_vm3, %v845_v21, %v847_v24 }
 0x11a   : > { %v833_v32 = vpop.permute.xlu1 %832  ;;  %v902_v41 = vmul.f32 %v865_v26, %v14458_v31  ;;  %v1289_v1 = vrot.slane %v1264_v15, %v14387_v55  ;;  %v1285_v2 = vrot.slane %v1264_v15, %v14385_v54 }
 0x11b   : > { %v14462_v33 = vsel %vm848_vm3, %v847_v24, %v833_v32  ;;  %v1273_v24 = vrot.slane %v1264_v15, %v14350_v38 }
 0x11c   : > { %v837_v35 = vpop.permute.xlu0 %836  ;;  %v903_v36 = vmul.f32 %v869_v25, %v14462_v33  ;;  %13187 = vmatmul.mubr.msk.f32.vlgmr.msra.gmra.mrb[0].mxu1 %vm507_vm2, %v670_v17  ;;  %v1269_v25 = vrot.slane %v1264_v15, %v14353_v39 }
 0x11d   : > { %1062 = vmatprep.mubr.f32.mxu1 %v16280_v18 }
 0x11e   : > { %13191 = vmatprep.subr.msk.mxu0 %vm511_vm1, %v903_v36  ;;  %v835_v44 = vpop.permute.xlu1 %834 }
 0x11f   : > { %v14476_v48 = vsel %vm848_vm3, %v835_v44, %v837_v35  ;;  %v14480_v49 = vsel %vm848_vm3, %v833_v32, %v835_v44  ;;  %13192 = vmatpush1.msk.msra.mxu0 %vm511_vm1, %v902_v41  ;;  %v1281_v41 = vrot.slane %v1264_v15, %v14371_v47  ;;  %v13206_v44 = vld [vmem:[%s16272_s5 + $0x8] sm:$0xf] }
 0x120   : > { %v839_v50 = vpop.permute.xlu0 %838  ;;  %v904_v51 = vmul.f32 %v873_v37, %v14480_v49  ;;  %v905_v52 = vmul.f32 %v877_v40, %v14476_v48  ;;  %13193 = vmatmul.mubr.msk.f32.vlgmr.msra.gmra.mrb[0].mxu0 %vm507_vm2, %v13190_v42  ;;  %v1277_v40 = vrot.slane %v1264_v15, %v14369_v46 }
 0x121   : > { %1154 = vmatprep.mubr.f32.mxu0 %v16280_v18  ;;  %v14492_v62 = vsel %vm848_vm3, %v837_v35, %v839_v50 }
 0x122   : > { %13194 = vmatprep.subr.msk.mxu1 %vm511_vm1, %v905_v52  ;;  %v841_v63 = vpop.permute.xlu1 %840  ;;  %v906_v10 = vmul.f32 %v881_v56, %v14492_v62  ;;  %v13221_v52 = vld [vmem:[%s16270_s3 + $0x3] ss:$8 sm:$0xf0] }
 0x123   : > { %v14504_v4 = vsel %vm848_vm3, %v839_v50, %v841_v63  ;;  %13195 = vmatpush1.msk.msra.mxu1 %vm511_vm1, %v904_v51  ;;  %v13220_v51 = vld [vmem:[%s16270_s3 + $0x3] ss:$8 sm:$0xf] }
 0x124   : > { %v843_v5 = vpop.permute.xlu0 %842  ;;  %v907_v7 = vmul.f32 %v885_v53, %v14504_v4  ;;  %13196 = vmatmul.mubr.msk.f32.vlgmr.msra.gmra.mrb[0].mxu1 %vm507_vm2, %v13190_v42 }
 0x125   : > { %v14510_v8 = vsel %vm848_vm3, %v843_v5, %v845_v21  ;;  %v14515_v11 = vsel %vm848_vm3, %v841_v63, %v843_v5  ;;  %1225 = vmatprep.mubr.f32.mxu1 %v16280_v18  ;;  %v1297_v5 = vrot.slane %v1264_v15, %v14390_v57 }
 0x126   : > { %v909_v13 = vmul.f32 %v893_v60, %v14510_v8  ;;  %v908_v17 = vmul.f32 %v889_v0, %v14515_v11  ;;  %13198 = vmatprep.subr.msk.mxu0 %vm511_vm1, %v907_v7  ;;  %v1249_v20 = vpop.permute.xlu1 %1248  ;;  %v14572_v7 = vor.u32 %v13221_v52, %v13220_v51 }
 0x127   : > { %13199 = vmatpush1.msk.msra.mxu0 %vm511_vm1, %v906_v10 }
 0x128   : > { %v1251_v21 = vpop.permute.xlu0 %1250  ;;  %13201 = vmatprep.subr.msk.mxu1 %vm511_vm1, %v909_v13  ;;  %13200 = vmatmul.mubr.msk.f32.vlgmr.msra.gmra.mrb[0].mxu0 %vm507_vm2, %v13197_v16  ;;  %v1685_v51 = vrot.slane %v14572_v7, %v14371_v47  ;;  %v1681_v52 = vrot.slane %v14572_v7, %v14369_v46 }
 0x129   : > { %13202 = vmatpush1.msk.msra.mxu1 %vm511_vm1, %v908_v17  ;;  %1395 = vmatprep.mubr.f32.mxu0 %v16280_v18  ;;  %v14535_v26 = vsel %vm1252_vm4, %v1249_v20, %v1251_v21 }
 0x12a   : > { %v1237_v32 = vpop.permute.xlu1 %1236  ;;  %v1306_v42 = vmul.f32 %v1269_v25, %v14535_v26 }
 0x12b   : > { %v14539_v35 = vsel %vm1252_vm4, %v1251_v21, %v1237_v32 }
 0x12c   : > { %v1241_v36 = vpop.permute.xlu0 %1240  ;;  %v1307_v37 = vmul.f32 %v1273_v24, %v14539_v35  ;;  %13203 = vmatmul.mubr.msk.f32.vlgmr.msra.gmra.mrb[0].mxu1 %vm507_vm2, %v13197_v16  ;;  %v1293_v16 = vrot.slane %v1264_v15, %v14401_v61 }
 0x12d   : > { %1466 = vmatprep.mubr.f32.mxu1 %v16280_v18 }
 0x12e   : > { %13207 = vmatprep.subr.msk.mxu0 %vm511_vm1, %v1307_v37  ;;  %v1239_v50 = vpop.permute.xlu1 %1238  ;;  %v1677_v37 = vrot.slane %v14572_v7, %v14350_v38 }
 0x12f   : > { %v14559_v53 = vsel %vm1252_vm4, %v1239_v50, %v1241_v36  ;;  %v14563_v56 = vsel %vm1252_vm4, %v1237_v32, %v1239_v50  ;;  %13208 = vmatpush1.msk.msra.mxu0 %vm511_vm1, %v1306_v42 }
 0x130   : > { %v1243_v60 = vpop.permute.xlu0 %1242  ;;  %v1308_v63 = vmul.f32 %v1277_v40, %v14563_v56  ;;  %v1309_v0 = vmul.f32 %v1281_v41, %v14559_v53  ;;  %13209 = vmatmul.mubr.msk.f32.vlgmr.msra.gmra.mrb[0].mxu0 %vm507_vm2, %v13206_v44 }
 0x131   : > { %1558 = vmatprep.mubr.f32.mxu0 %v16280_v18  ;;  %v14577_v10 = vsel %vm1252_vm4, %v1241_v36, %v1243_v60 }
 0x132   : > { %13210 = vmatprep.subr.msk.mxu1 %vm511_vm1, %v1309_v0  ;;  %v1245_v13 = vpop.permute.xlu1 %1244  ;;  %v1310_v32 = vmul.f32 %v1285_v2, %v14577_v10  ;;  %v1673_v2 = vrot.slane %v14572_v7, %v14353_v39 }
 0x133   : > { %v14583_v17 = vsel %vm1252_vm4, %v1243_v60, %v1245_v13  ;;  %13211 = vmatpush1.msk.msra.mxu1 %vm511_vm1, %v1308_v63 }
 0x134   : > { %v1247_v21 = vpop.permute.xlu0 %1246  ;;  %v1311_v24 = vmul.f32 %v1289_v1, %v14583_v17  ;;  %13212 = vmatmul.mubr.msk.f32.vlgmr.msra.gmra.mrb[0].mxu1 %vm507_vm2, %v13206_v44 }
 0x135   : > { %v14589_v25 = vsel %vm1252_vm4, %v1247_v21, %v1249_v20  ;;  %v14595_v15 = vsel %vm1252_vm4, %v1245_v13, %v1247_v21  ;;  %v13213_v20 = vld [vmem:[%s16273_s6 + $0x8] sm:$0xf]  ;;  %1629 = vmatprep.mubr.f32.mxu1 %v16280_v18  ;;  %v13237_v13 = vld [vmem:[%s16270_s3 + $0x4] ss:$8 sm:$0xf0] }
 0x136   : > { %v1313_v36 = vmul.f32 %v1297_v5, %v14589_v25  ;;  %v1312_v40 = vmul.f32 %v1293_v16, %v14595_v15  ;;  %13214 = vmatprep.subr.msk.mxu0 %vm511_vm1, %v1311_v24  ;;  %v1641_v41 = vpop.permute.xlu1 %1640  ;;  %v13236_v5 = vld [vmem:[%s16270_s3 + $0x4] ss:$8 sm:$0xf] }
 0x137   : > { %13215 = vmatpush1.msk.msra.mxu0 %vm511_vm1, %v1310_v32 }
 0x138   : > { %v1655_v42 = vpop.permute.xlu0 %1654  ;;  %13217 = vmatprep.subr.msk.mxu1 %vm511_vm1, %v1313_v36  ;;  %13216 = vmatmul.mubr.msk.f32.vlgmr.msra.gmra.mrb[0].mxu0 %vm507_vm2, %v13213_v20 }
 0x139   : > { %v14611_v44 = vsel %vm1656_vm5, %v1655_v42, %v1641_v41  ;;  %13218 = vmatpush1.msk.msra.mxu1 %vm511_vm1, %v1312_v40  ;;  %1799 = vmatprep.mubr.f32.mxu0 %v16280_v18 }
 0x13a   : > { %v1711_v50 = vmul.f32 %v1677_v37, %v14611_v44  ;;  %v1643_v60 = vpop.permute.xlu1 %1642  ;;  %v14647_v37 = vor.u32 %v13237_v13, %v13236_v5 }
 0x13b   : > { %v14623_v63 = vsel %vm1656_vm5, %v1641_v41, %v1643_v60  ;;  %v13222_v41 = vld [vmem:[%s16272_s5 + $0xc] sm:$0xf] }
 0x13c   : > { %v1645_v0 = vpop.permute.xlu0 %1644  ;;  %13223 = vmatprep.subr.msk.mxu0 %vm511_vm1, %v1711_v50  ;;  %13219 = vmatmul.mubr.msk.f32.vlgmr.msra.gmra.mrb[0].mxu1 %vm507_vm2, %v13213_v20  ;;  %v1712_v21 = vmul.f32 %v1681_v52, %v14623_v63  ;;  %v1693_v20 = vrot.slane %v14572_v7, %v14387_v55  ;;  %v1701_v50 = vrot.slane %v14572_v7, %v14390_v57 }
 0x13d   : > { %v14628_v1 = vsel %vm1656_vm5, %v1643_v60, %v1645_v0  ;;  %1870 = vmatprep.mubr.f32.mxu1 %v16280_v18  ;;  %v2056_v5 = vrot.slane %v14647_v37, %v14350_v38 }
 0x13e   : > { %v1713_v16 = vmul.f32 %v1685_v51, %v14628_v1  ;;  %v1653_v24 = vpop.permute.xlu1 %1652  ;;  %v2064_v51 = vrot.slane %v14647_v37, %v14371_v47 }
 0x13f   : > { %v14644_v32 = vsel %vm1656_vm5, %v1653_v24, %v1655_v42  ;;  %v1689_v42 = vrot.slane %v14572_v7, %v14385_v54 }
 0x140   : > { %16367 = vst [vmem:[#allocation15_spill] sm:$0xff] %v14644_v32  ;;  %v1647_v36 = vpop.permute.xlu0 %1646  ;;  %13226 = vmatprep.subr.msk.mxu1 %vm511_vm1, %v1713_v16  ;;  %v1710_v40 = vmul.f32 %v1673_v2, %v14644_v32  ;;  %v1697_v2 = vrot.slane %v14572_v7, %v14401_v61  ;;  %v2092_v32 = vmul.f32 %v2064_v51, %v14240_v22 }
 0x141   : > { %13227 = vmatpush1.msk.msra.mxu1 %vm511_vm1, %v1712_v21  ;;  %v14664_v52 = vsel %vm1656_vm5, %v1645_v0, %v1647_v36  ;;  %v2080_v51 = vrot.slane %v14647_v37, %v14390_v57 }
 0x142   : > { %13224 = vmatpush1.msk.msra.mxu0 %vm511_vm1, %v1710_v40  ;;  %v1649_v60 = vpop.permute.xlu1 %1648  ;;  %v1714_v7 = vmul.f32 %v1689_v42, %v14664_v52  ;;  %v2052_v42 = vrot.slane %v14647_v37, %v14353_v39 }
 0x143   : > { %v14673_v13 = vsel %vm1656_vm5, %v1647_v36, %v1649_v60  ;;  %13225 = vmatmul.mubr.msk.f32.vlgmr.msra.gmra.mrb[0].mxu0 %vm507_vm2, %v13222_v41 }
 0x144   : > { %16368 = vst [vmem:[#allocation16_spill] sm:$0xff] %v14673_v13  ;;  %v1651_v16 = vpop.permute.xlu0 %1650  ;;  %v1715_v21 = vmul.f32 %v1693_v20, %v14673_v13  ;;  %1962 = vmatprep.mubr.f32.mxu0 %v16280_v18  ;;  %13228 = vmatmul.mubr.msk.f32.vlgmr.msra.gmra.mrb[0].mxu1 %vm507_vm2, %v13222_v41  ;;  %v2090_v18 = vmul.f32 %v2056_v5, %v14242_v23  ;;  %v16370_v13 = vmov 0.0  }
 0x145   : > { %v14679_v0 = vsel %vm1656_vm5, %v1651_v16, %v1653_v24  ;;  %v14685_v40 = vsel %vm1656_vm5, %v1649_v60, %v1651_v16  ;;  %2033 = vmatprep.mubr.f32.mxu1 %v16370_v13  ;;  %v2072_v41 = vrot.slane %v14647_v37, %v14387_v55  ;;  %v13229_v60 = vld [vmem:[%s16273_s6 + $0xc] sm:$0xf]  ;;  %v2089_v16 = vmul.f32 %v2052_v42, %v14238_v19 }
 0x146   : > { %16369 = vst [vmem:[#allocation17_spill] sm:$0xff] %v14685_v40  ;;  %v1717_v36 = vmul.f32 %v1701_v50, %v14679_v0  ;;  %v1716_v20 = vmul.f32 %v1697_v2, %v14685_v40  ;;  %13230 = vmatprep.subr.msk.mxu0 %vm511_vm1, %v1715_v21  ;;  %v14692_v24 = vpop.permute.xlu1 %2427  ;;  %v2060_v2 = vrot.slane %v14647_v37, %v14369_v46  ;;  %v13252_v21 = vld [vmem:[%s16270_s3 + $0x5] ss:$8 sm:$0xf] }
 0x147   : > { %13231 = vmatpush1.msk.msra.mxu0 %vm511_vm1, %v1714_v7 }
 0x148   : > { %v2426_v50 = vpop.permute.xlu0 %2425  ;;  %13233 = vmatprep.subr.msk.mxu1 %vm511_vm1, %v1717_v36  ;;  %13239 = vmatprep.subr.msk.mxu0 %vm511_vm1, %v2090_v18  ;;  %v13253_v18 = vld [vmem:[%s16270_s3 + $0x5] ss:$8 sm:$0xf0]  ;;  %v2094_v36 = vmul.f32 %v2072_v41, %v14258_v29  ;;  %v2068_v41 = vrot.slane %v14647_v37, %v14385_v54 }
 0x149   : > { %13234 = vmatpush1.msk.msra.mxu1 %vm511_vm1, %v1716_v20  ;;  %v2096_v20 = vmul.f32 %v2080_v51, %v14222_v6  ;;  %v14728_v42 = vor.u32 %v13253_v18, %v13252_v21 }
 0x14a   : > { %13242 = vmatprep.subr.msk.mxu1 %vm511_vm1, %v2092_v32  ;;  %v2424_v5 = vpop.permute.xlu1 %2423  ;;  %v2091_v32 = vmul.f32 %v2060_v2, %v14250_v27  ;;  %v2076_v2 = vrot.slane %v14647_v37, %v14401_v61 }
 0x14b   : > { %13232 = vmatmul.mubr.msk.f32.vlgmr.msra.gmra.mrb[0].mxu0 %vm507_vm2, %v13229_v60  ;;  %v2460_v51 = vrot.slane %v14728_v42, %v14350_v38  ;;  %v2468_v21 = vrot.slane %v14728_v42, %v14371_v47  ;;  %v2456_v23 = vrot.slane %v14728_v42, %v14353_v39 }
 0x14c   : > { %v14720_v7 = vpop.permute.xlu0 %2429  ;;  %13240 = vmatpush1.msk.msra.mxu0 %vm511_vm1, %v2089_v16  ;;  %13235 = vmatmul.mubr.msk.f32.vlgmr.msra.gmra.mrb[0].mxu1 %vm507_vm2, %v13229_v60  ;;  %v13238_v60 = vld [vmem:[%s16272_s5 + $0x10] sm:$0xf]  ;;  %v14746_v16 = vsel %vm2439_vm6, %v2424_v5, %v2426_v50  ;;  %v2095_v6 = vmul.f32 %v2076_v2, %v14260_v30  ;;  %v2476_v2 = vrot.slane %v14728_v42, %v14387_v55 }
 0x14d   : > { %13246 = vmatprep.subr.msk.mxu0 %vm511_vm1, %v2094_v36  ;;  %13243 = vmatpush1.msk.msra.mxu1 %vm511_vm1, %v2091_v32  ;;  %16371 = vst [vmem:[#allocation18_spill] sm:$0xff] %v14746_v16  ;;  %v14754_v18 = vsel %vm2439_vm6, %v14692_v24, %v14720_v7  ;;  %v2494_v37 = vmul.f32 %v2460_v51, %v14746_v16 }
 0x14e   : > { %v2438_v19 = vpop.permute.xlu1 %2437  ;;  %2178 = vmatprep.mubr.f32.mxu0 %v16370_v13  ;;  %2249 = vmatprep.mubr.f32.mxu1 %v16370_v13  ;;  %16372 = vst [vmem:[#allocation19_spill] sm:$0xff] %v14754_v18  ;;  %v2496_v22 = vmul.f32 %v2468_v21, %v14754_v18 }
 0x14f   : > { %13249 = vmatprep.subr.msk.mxu1 %vm511_vm1, %v2096_v20  ;;  %v2093_v20 = vmul.f32 %v2068_v41, %v14252_v28  ;;  %v14771_v51 = vsel %vm2439_vm6, %v2438_v19, %v2424_v5  ;;  %v13245_v5 = vld [vmem:[%s16273_s6 + $0x10] sm:$0xf]  ;;  %v13268_v28 = vld [vmem:[%s16270_s3 + $0x6] ss:$8 sm:$0xf] }
 0x150   : > { %v2432_v29 = vpop.permute.xlu0 %2431  ;;  %16373 = vst [vmem:[#allocation20_spill] sm:$0xff] %v14771_v51 }
 0x152   : > { %v2434_v36 = vpop.permute.xlu1 %2433 }
 0x153   : > { %13241 = vmatmul.mubr.msk.f32.vlgmr.msra.gmra.mrb[0].mxu0 %vm507_vm2, %v13238_v60 }
 0x154   : > { %v2436_v32 = vpop.permute.xlu0 %2435  ;;  %13247 = vmatpush1.msk.msra.mxu0 %vm511_vm1, %v2093_v20  ;;  %13244 = vmatmul.mubr.msk.f32.vlgmr.msra.gmra.mrb[0].mxu1 %vm507_vm2, %v13238_v60  ;;  %v2464_v60 = vrot.slane %v14728_v42, %v14369_v46  ;;  %v2484_v20 = vrot.slane %v14728_v42, %v14390_v57 }
 0x155   : > { %13250 = vmatpush1.msk.msra.mxu1 %vm511_vm1, %v2095_v6  ;;  %13255 = vmatprep.subr.msk.mxu0 %vm511_vm1, %v2494_v37  ;;  %v14781_v6 = vsel %vm2439_vm6, %v2432_v29, %v2434_v36  ;;  %v2493_v37 = vmul.f32 %v2456_v23, %v14771_v51  ;;  %v14797_v18 = vsel %vm2439_vm6, %v2436_v32, %v2438_v19 }
 0x156   : > { %v14767_v41 = vpop.permute.xlu1 %2831  ;;  %13258 = vmatprep.subr.msk.mxu1 %vm511_vm1, %v2496_v22  ;;  %2341 = vmatprep.mubr.f32.mxu0 %v16370_v13  ;;  %16374 = vst [vmem:[#allocation21_spill] sm:$0xff] %v14781_v6  ;;  %v14790_v22 = vsel %vm2439_vm6, %v2426_v50, %v14692_v24  ;;  %16376 = vst [vmem:[#allocation23_spill] sm:$0xff] %v14797_v18  ;;  %v2498_v30 = vmul.f32 %v2476_v2, %v14781_v6  ;;  %v13269_v24 = vld [vmem:[%s16270_s3 + $0x6] ss:$8 sm:$0xf0] }
 0x157   : > { %2412 = vmatprep.mubr.f32.mxu1 %v16370_v13  ;;  %16375 = vst [vmem:[#allocation22_spill] sm:$0xff] %v14790_v22  ;;  %v2495_v23 = vmul.f32 %v2464_v60, %v14790_v22  ;;  %v2500_v19 = vmul.f32 %v2484_v20, %v14797_v18  ;;  %v2472_v2 = vrot.slane %v14728_v42, %v14385_v54  ;;  %v13254_v20 = vld [vmem:[%s16272_s5 + $0x14] sm:$0xf] }
 0x158   : > { %v2830_v21 = vpop.permute.xlu0 %2829  ;;  %v14816_v6 = vor.u32 %v13269_v24, %v13268_v28  ;;  %v14823_v60 = vsel %vm2439_vm6, %v14720_v7, %v2432_v29  ;;  %v14837_v29 = vsel %vm2439_vm6, %v2434_v36, %v2436_v32  ;;  %v13284_v22 = vld [vmem:[%s16270_s3 + $0x7] ss:$8 sm:$0xf] }
 0x159   : > { %16377 = vst [vmem:[#allocation24_spill] sm:$0xff] %v14823_v60  ;;  %16378 = vst [vmem:[#allocation25_spill] sm:$0xff] %v14837_v29 }
 0x15a   : > { %v2828_v16 = vpop.permute.xlu1 %2827  ;;  %v2864_v28 = vrot.slane %v14816_v6, %v14350_v38 }
 0x15b   : > { %13248 = vmatmul.mubr.msk.f32.vlgmr.msra.gmra.mrb[0].mxu0 %vm507_vm2, %v13245_v5  ;;  %v14841_v7 = vsel %vm2843_vm7, %v2828_v16, %v2830_v21 }
 0x15c   : > { %v14807_v50 = vpop.permute.xlu0 %2833  ;;  %13256 = vmatpush1.msk.msra.mxu0 %vm511_vm1, %v2493_v37  ;;  %13251 = vmatmul.mubr.msk.f32.vlgmr.msra.gmra.mrb[0].mxu1 %vm507_vm2, %v13245_v5  ;;  %16379 = vst [vmem:[#allocation26_spill] sm:$0xff] %v14841_v7  ;;  %v2497_v37 = vmul.f32 %v2472_v2, %v14823_v60  ;;  %v2860_v2 = vrot.slane %v14816_v6, %v14353_v39 }
 0x15d   : > { %13262 = vmatprep.subr.msk.mxu0 %vm511_vm1, %v2498_v30  ;;  %13259 = vmatpush1.msk.msra.mxu1 %vm511_vm1, %v2495_v23  ;;  %v2480_v30 = vrot.slane %v14728_v42, %v14401_v61  ;;  %v2872_v42 = vrot.slane %v14816_v6, %v14371_v47  ;;  %v14850_v24 = vsel %vm2843_vm7, %v14767_v41, %v14807_v50 }
 0x15e   : > { %v2842_v51 = vpop.permute.xlu1 %2841  ;;  %2582 = vmatprep.mubr.f32.mxu0 %v16370_v13  ;;  %13265 = vmatprep.subr.msk.mxu1 %vm511_vm1, %v2500_v19  ;;  %16380 = vst [vmem:[#allocation27_spill] sm:$0xff] %v14850_v24  ;;  %v2898_v19 = vmul.f32 %v2864_v28, %v14841_v7  ;;  %v2880_v28 = vrot.slane %v14816_v6, %v14387_v55 }
 0x15f   : > { %2653 = vmatprep.mubr.f32.mxu1 %v16370_v13  ;;  %v2499_v32 = vmul.f32 %v2480_v30, %v14837_v29  ;;  %v2900_v18 = vmul.f32 %v2872_v42, %v14850_v24  ;;  %v14866_v30 = vsel %vm2843_vm7, %v2842_v51, %v2828_v16  ;;  %v13261_v16 = vld [vmem:[%s16273_s6 + $0x14] sm:$0xf] }
 0x160   : > { %v2836_v5 = vpop.permute.xlu0 %2835  ;;  %16381 = vst [vmem:[#allocation28_spill] sm:$0xff] %v14866_v30 }
 0x162   : > { %v2838_v23 = vpop.permute.xlu1 %2837 }
 0x163   : > { %13257 = vmatmul.mubr.msk.f32.vlgmr.msra.gmra.mrb[0].mxu0 %vm507_vm2, %v13254_v20 }
 0x164   : > { %v2840_v36 = vpop.permute.xlu0 %2839  ;;  %13263 = vmatpush1.msk.msra.mxu0 %vm511_vm1, %v2497_v37  ;;  %13260 = vmatmul.mubr.msk.f32.vlgmr.msra.gmra.mrb[0].mxu1 %vm507_vm2, %v13254_v20  ;;  %v2868_v20 = vrot.slane %v14816_v6, %v14369_v46  ;;  %v14876_v37 = vsel %vm2843_vm7, %v2836_v5, %v2838_v23 }
 0x165   : > { %13266 = vmatpush1.msk.msra.mxu1 %vm511_vm1, %v2499_v32  ;;  %13271 = vmatprep.subr.msk.mxu0 %vm511_vm1, %v2898_v19  ;;  %16382 = vst [vmem:[#allocation29_spill] sm:$0xff] %v14876_v37  ;;  %v2888_v32 = vrot.slane %v14816_v6, %v14390_v57  ;;  %v2897_v19 = vmul.f32 %v2860_v2, %v14866_v30 }
 0x166   : > { %v14862_v60 = vpop.permute.xlu1 %3235  ;;  %13274 = vmatprep.subr.msk.mxu1 %vm511_vm1, %v2900_v18  ;;  %2745 = vmatprep.mubr.f32.mxu0 %v16370_v13  ;;  %v14885_v18 = vsel %vm2843_vm7, %v2830_v21, %v14767_v41  ;;  %v14892_v24 = vsel %vm2843_vm7, %v2840_v36, %v2842_v51  ;;  %v2902_v29 = vmul.f32 %v2880_v28, %v14876_v37  ;;  %v13285_v41 = vld [vmem:[%s16270_s3 + $0x7] ss:$8 sm:$0xf0] }
 0x167   : > { %2816 = vmatprep.mubr.f32.mxu1 %v16370_v13  ;;  %16383 = vst [vmem:[#allocation30_spill] sm:$0xff] %v14885_v18  ;;  %16384 = vst [vmem:[#allocation31_spill] sm:$0xff] %v14892_v24  ;;  %v2899_v2 = vmul.f32 %v2868_v20, %v14885_v18  ;;  %v2904_v51 = vmul.f32 %v2888_v32, %v14892_v24  ;;  %v2876_v28 = vrot.slane %v14816_v6, %v14385_v54  ;;  %v13270_v32 = vld [vmem:[%s16272_s5 + $0x18] sm:$0xf] }
 0x168   : > { %v3234_v42 = vpop.permute.xlu0 %3233  ;;  %v14911_v37 = vor.u32 %v13285_v41, %v13284_v22  ;;  %v14918_v20 = vsel %vm2843_vm7, %v14807_v50, %v2836_v5  ;;  %v14932_v50 = vsel %vm2843_vm7, %v2838_v23, %v2840_v36  ;;  %v13300_v18 = vld [vmem:[%s16270_s3 + $0x40] ss:$8 sm:$0xf] }
 0x169   : > { %16385 = vst [vmem:[#allocation32_spill] sm:$0xff] %v14918_v20  ;;  %16386 = vst [vmem:[#allocation33_spill] sm:$0xff] %v14932_v50 }
 0x16a   : > { %v3232_v7 = vpop.permute.xlu1 %3231  ;;  %v3268_v22 = vrot.slane %v14911_v37, %v14350_v38 }
 0x16b   : > { %13264 = vmatmul.mubr.msk.f32.vlgmr.msra.gmra.mrb[0].mxu0 %vm507_vm2, %v13261_v16  ;;  %v14936_v5 = vsel %vm3247_vm8, %v3232_v7, %v3234_v42 }
 0x16c   : > { %v14902_v21 = vpop.permute.xlu0 %3237  ;;  %13272 = vmatpush1.msk.msra.mxu0 %vm511_vm1, %v2897_v19  ;;  %13267 = vmatmul.mubr.msk.f32.vlgmr.msra.gmra.mrb[0].mxu1 %vm507_vm2, %v13261_v16  ;;  %16387 = vst [vmem:[#allocation34_spill] sm:$0xff] %v14936_v5  ;;  %v2901_v19 = vmul.f32 %v2876_v28, %v14918_v20  ;;  %v3264_v28 = vrot.slane %v14911_v37, %v14353_v39 }
 0x16d   : > { %13278 = vmatprep.subr.msk.mxu0 %vm511_vm1, %v2902_v29  ;;  %13275 = vmatpush1.msk.msra.mxu1 %vm511_vm1, %v2899_v2  ;;  %v2884_v29 = vrot.slane %v14816_v6, %v14401_v61  ;;  %v3276_v6 = vrot.slane %v14911_v37, %v14371_v47  ;;  %v14945_v41 = vsel %vm3247_vm8, %v14862_v60, %v14902_v21 }
 0x16e   : > { %v3246_v30 = vpop.permute.xlu1 %3245  ;;  %2986 = vmatprep.mubr.f32.mxu0 %v16370_v13  ;;  %13281 = vmatprep.subr.msk.mxu1 %vm511_vm1, %v2904_v51  ;;  %16388 = vst [vmem:[#allocation35_spill] sm:$0xff] %v14945_v41  ;;  %v3302_v51 = vmul.f32 %v3268_v22, %v14936_v5  ;;  %v3284_v22 = vrot.slane %v14911_v37, %v14387_v55 }
 0x16f   : > { %3057 = vmatprep.mubr.f32.mxu1 %v16370_v13  ;;  %v2903_v36 = vmul.f32 %v2884_v29, %v14932_v50  ;;  %v3304_v24 = vmul.f32 %v3276_v6, %v14945_v41  ;;  %v14961_v29 = vsel %vm3247_vm8, %v3246_v30, %v3232_v7  ;;  %v13277_v7 = vld [vmem:[%s16273_s6 + $0x18] sm:$0xf] }
 0x170   : > { %v3240_v16 = vpop.permute.xlu0 %3239  ;;  %16389 = vst [vmem:[#allocation36_spill] sm:$0xff] %v14961_v29 }
 0x172   : > { %v3242_v2 = vpop.permute.xlu1 %3241 }
 0x173   : > { %13273 = vmatmul.mubr.msk.f32.vlgmr.msra.gmra.mrb[0].mxu0 %vm507_vm2, %v13270_v32 }
 0x174   : > { %v3244_v23 = vpop.permute.xlu0 %3243  ;;  %13279 = vmatpush1.msk.msra.mxu0 %vm511_vm1, %v2901_v19  ;;  %13276 = vmatmul.mubr.msk.f32.vlgmr.msra.gmra.mrb[0].mxu1 %vm507_vm2, %v13270_v32  ;;  %v3272_v32 = vrot.slane %v14911_v37, %v14369_v46  ;;  %v14971_v19 = vsel %vm3247_vm8, %v3240_v16, %v3242_v2 }
 0x175   : > { %13282 = vmatpush1.msk.msra.mxu1 %vm511_vm1, %v2903_v36  ;;  %13287 = vmatprep.subr.msk.mxu0 %vm511_vm1, %v3302_v51  ;;  %16390 = vst [vmem:[#allocation37_spill] sm:$0xff] %v14971_v19  ;;  %v3292_v36 = vrot.slane %v14911_v37, %v14390_v57  ;;  %v3301_v51 = vmul.f32 %v3264_v28, %v14961_v29 }
 0x176   : > { %v14957_v20 = vpop.permute.xlu1 %3639  ;;  %13290 = vmatprep.subr.msk.mxu1 %vm511_vm1, %v3304_v24  ;;  %3149 = vmatprep.mubr.f32.mxu0 %v16370_v13  ;;  %v14980_v24 = vsel %vm3247_vm8, %v3234_v42, %v14862_v60  ;;  %v14987_v41 = vsel %vm3247_vm8, %v3244_v23, %v3246_v30  ;;  %v3306_v50 = vmul.f32 %v3284_v22, %v14971_v19  ;;  %v13301_v60 = vld [vmem:[%s16270_s3 + $0x40] ss:$8 sm:$0xf0] }
 0x177   : > { %3220 = vmatprep.mubr.f32.mxu1 %v16370_v13  ;;  %16391 = vst [vmem:[#allocation38_spill] sm:$0xff] %v14980_v24  ;;  %16392 = vst [vmem:[#allocation39_spill] sm:$0xff] %v14987_v41  ;;  %v3303_v28 = vmul.f32 %v3272_v32, %v14980_v24  ;;  %v3308_v30 = vmul.f32 %v3292_v36, %v14987_v41  ;;  %v3280_v22 = vrot.slane %v14911_v37, %v14385_v54 }
 0x178   : > { %v3638_v6 = vpop.permute.xlu0 %3637  ;;  %v15006_v19 = vor.u32 %v13301_v60, %v13300_v18  ;;  %v15013_v32 = vsel %vm3247_vm8, %v14902_v21, %v3240_v16  ;;  %v15027_v21 = vsel %vm3247_vm8, %v3242_v2, %v3244_v23 }
 0x179   : > { %16393 = vst [vmem:[#allocation40_spill] sm:$0xff] %v15013_v32  ;;  %16394 = vst [vmem:[#allocation41_spill] sm:$0xff] %v15027_v21  ;;  %v3305_v60 = vmul.f32 %v3280_v22, %v15013_v32 }
 0x17a   : > { %v3636_v5 = vpop.permute.xlu1 %3635  ;;  %v3672_v18 = vrot.slane %v15006_v19, %v14350_v38  ;;  %v3668_v22 = vrot.slane %v15006_v19, %v14353_v39 }
 0x17b   : > { %13280 = vmatmul.mubr.msk.f32.vlgmr.msra.gmra.mrb[0].mxu0 %vm507_vm2, %v13277_v7  ;;  %v15031_v16 = vsel %vm3651_vm9, %v3636_v5, %v3638_v6 }
 0x17c   : > { %v14997_v42 = vpop.permute.xlu0 %3641  ;;  %13288 = vmatpush1.msk.msra.mxu0 %vm511_vm1, %v3301_v51  ;;  %13283 = vmatmul.mubr.msk.f32.vlgmr.msra.gmra.mrb[0].mxu1 %vm507_vm2, %v13277_v7  ;;  %v13286_v7 = vld [vmem:[%s16272_s5 + $0x1c] sm:$0xf]  ;;  %16395 = vst [vmem:[#allocation42_spill] sm:$0xff] %v15031_v16  ;;  %v3706_v23 = vmul.f32 %v3672_v18, %v15031_v16 }
 0x17d   : > { %13294 = vmatprep.subr.msk.mxu0 %vm511_vm1, %v3306_v50  ;;  %13291 = vmatpush1.msk.msra.mxu1 %vm511_vm1, %v3303_v28  ;;  %v3288_v50 = vrot.slane %v14911_v37, %v14401_v61  ;;  %v3680_v37 = vrot.slane %v15006_v19, %v14371_v47  ;;  %v15040_v28 = vsel %vm3651_vm9, %v14957_v20, %v14997_v42 }
 0x17e   : > { %3390 = vmatprep.mubr.f32.mxu0 %v16370_v13  ;;  %13297 = vmatprep.subr.msk.mxu1 %vm511_vm1, %v3308_v30  ;;  %v3650_v36 = vpop.permute.xlu1 %3649  ;;  %16396 = vst [vmem:[#allocation43_spill] sm:$0xff] %v15040_v28 }
 0x17f   : > { %3461 = vmatprep.mubr.f32.mxu1 %v16370_v13  ;;  %v3307_v2 = vmul.f32 %v3288_v50, %v15027_v21  ;;  %v3708_v30 = vmul.f32 %v3680_v37, %v15040_v28  ;;  %v15054_v29 = vsel %vm3651_vm9, %v3650_v36, %v3636_v5  ;;  %v3688_v50 = vrot.slane %v15006_v19, %v14387_v55  ;;  %v13293_v5 = vld [vmem:[%s16273_s6 + $0x1c] sm:$0xf] }
 0x180   : > { %v3644_v51 = vpop.permute.xlu0 %3643  ;;  %v3705_v28 = vmul.f32 %v3668_v22, %v15054_v29 }
 0x182   : > { %v3646_v41 = vpop.permute.xlu1 %3645 }
 0x183   : > { %13289 = vmatmul.mubr.msk.f32.vlgmr.msra.gmra.mrb[0].mxu0 %vm507_vm2, %v13286_v7  ;;  %v15064_v37 = vsel %vm3651_vm9, %v3644_v51, %v3646_v41 }
 0x184   : > { %13295 = vmatpush1.msk.msra.mxu0 %vm511_vm1, %v3305_v60  ;;  %13292 = vmatmul.mubr.msk.f32.vlgmr.msra.gmra.mrb[0].mxu1 %vm507_vm2, %v13286_v7  ;;  %v3648_v18 = vpop.permute.xlu0 %3647  ;;  %v3676_v7 = vrot.slane %v15006_v19, %v14369_v46  ;;  %v15073_v60 = vsel %vm3651_vm9, %v3638_v6, %v14957_v20  ;;  %v3710_v20 = vmul.f32 %v3688_v50, %v15064_v37 }
 0x185   : > { %13298 = vmatpush1.msk.msra.mxu1 %vm511_vm1, %v3307_v2  ;;  %13303 = vmatprep.subr.msk.mxu0 %vm511_vm1, %v3706_v23  ;;  %16397 = vst [vmem:[#allocation44_spill] sm:$0xff] %v15073_v60  ;;  %v3696_v2 = vrot.slane %v15006_v19, %v14390_v57  ;;  %v13316_v23 = vld [vmem:[%s16270_s3 + $0x41] ss:$8 sm:$0xf]  ;;  %v15086_v16 = vsel %vm3651_vm9, %v3648_v18, %v3650_v36 }
 0x186   : > { %13306 = vmatprep.subr.msk.mxu1 %vm511_vm1, %v3708_v30  ;;  %3553 = vmatprep.mubr.f32.mxu0 %v16370_v13  ;;  %v13317_v30 = vld [vmem:[%s16270_s3 + $0x41] ss:$8 sm:$0xf0]  ;;  %v3707_v6 = vmul.f32 %v3676_v7, %v15073_v60  ;;  %v3684_v36 = vrot.slane %v15006_v19, %v14385_v54  ;;  %v3692_v50 = vrot.slane %v15006_v19, %v14401_v61 }
 0x187   : > { %3624 = vmatprep.mubr.f32.mxu1 %v16370_v13  ;;  %v4042_v21 = vor.u32 %v13317_v30, %v13316_v23  ;;  %v3712_v32 = vmul.f32 %v3696_v2, %v15086_v16  ;;  %v13302_v7 = vld [vmem:[%s16272_s5 + $0x20] sm:$0xf]  ;;  %v15115_v2 = vsel %vm3651_vm9, %v3646_v41, %v3648_v18 }
 0x188   : > { %v13309_v30 = vld [vmem:[%s16273_s6 + $0x20] sm:$0xf] }
 0x189   : > { %v4051_v22 = vrot.slane %v4042_v21, %v14350_v38  ;;  %v4047_v41 = vrot.slane %v4042_v21, %v14353_v39  ;;  %v4055_v18 = vrot.slane %v4042_v21, %v14369_v46 }
 0x18b   : > { %13296 = vmatmul.mubr.msk.f32.vlgmr.msra.gmra.mrb[0].mxu0 %vm507_vm2, %v13293_v5 }
 0x18c   : > { %13304 = vmatpush1.msk.msra.mxu0 %vm511_vm1, %v3705_v28  ;;  %3794 = vmatprep.mubr.f32.mxu0 %v16370_v13  ;;  %v15104_v28 = vsel %vm3651_vm9, %v14997_v42, %v3644_v51  ;;  %v4085_v42 = vmul.f32 %v4051_v22, %v14398_v59  ;;  %v4067_v51 = vrot.slane %v4042_v21, %v14387_v55  ;;  %v13333_v22 = vld [vmem:[%s16270_s3 + $0x42] ss:$8 sm:$0xf0] }
 0x18d   : > { %13299 = vmatmul.mubr.msk.f32.vlgmr.msra.gmra.mrb[0].mxu1 %vm507_vm2, %v13293_v5  ;;  %13310 = vmatprep.subr.msk.mxu0 %vm511_vm1, %v3710_v20  ;;  %16398 = vst [vmem:[#allocation45_spill] sm:$0xff] %v15104_v28  ;;  %v4059_v5 = vrot.slane %v4042_v21, %v14371_v47  ;;  %v3709_v23 = vmul.f32 %v3684_v36, %v15104_v28  ;;  %v13332_v36 = vld [vmem:[%s16270_s3 + $0x42] ss:$8 sm:$0xf] }
 0x18e   : > { %13307 = vmatpush1.msk.msra.mxu1 %vm511_vm1, %v3707_v6  ;;  %3865 = vmatprep.mubr.f32.mxu1 %v16370_v13  ;;  %v4075_v20 = vrot.slane %v4042_v21, %v14390_v57  ;;  %v4084_v6 = vmul.f32 %v4047_v41, %v14367_v45  ;;  %v13318_v41 = vld [vmem:[%s16272_s5 + $0x24] sm:$0xf] }
 0x18f   : > { %13313 = vmatprep.subr.msk.mxu1 %vm511_vm1, %v3712_v32  ;;  %v3711_v32 = vmul.f32 %v3692_v50, %v15115_v2  ;;  %v4087_v19 = vmul.f32 %v4059_v5, %v14415_v3  ;;  %v4089_v50 = vmul.f32 %v4067_v51, %v14438_v14 }
 0x190   : > { %v4091_v5 = vmul.f32 %v4075_v20, %v14361_v43 }
 0x193   : > { %13305 = vmatmul.mubr.msk.f32.vlgmr.msra.gmra.mrb[0].mxu0 %vm507_vm2, %v13302_v7 }
 0x194   : > { %13311 = vmatpush1.msk.msra.mxu0 %vm511_vm1, %v3709_v23  ;;  %3957 = vmatprep.mubr.f32.mxu0 %v16370_v13  ;;  %v4421_v23 = vor.u32 %v13333_v22, %v13332_v36 }
 0x195   : > { %13308 = vmatmul.mubr.msk.f32.vlgmr.msra.gmra.mrb[0].mxu1 %vm507_vm2, %v13302_v7  ;;  %13319 = vmatprep.subr.msk.mxu0 %vm511_vm1, %v4085_v42  ;;  %v4086_v7 = vmul.f32 %v4055_v18, %v14394_v58  ;;  %v4063_v42 = vrot.slane %v4042_v21, %v14385_v54 }
 0x196   : > { %13314 = vmatpush1.msk.msra.mxu1 %vm511_vm1, %v3711_v32  ;;  %4028 = vmatprep.mubr.f32.mxu1 %v16370_v13  ;;  %v4430_v32 = vrot.slane %v4421_v23, %v14350_v38  ;;  %v4438_v51 = vrot.slane %v4421_v23, %v14371_v47  ;;  %v4446_v36 = vrot.slane %v4421_v23, %v14387_v55 }
 0x197   : > { %13322 = vmatprep.subr.msk.mxu1 %vm511_vm1, %v4087_v19  ;;  %v4071_v19 = vrot.slane %v4042_v21, %v14401_v61  ;;  %v4088_v18 = vmul.f32 %v4063_v42, %v14427_v9  ;;  %v4434_v22 = vrot.slane %v4421_v23, %v14369_v46  ;;  %v13348_v42 = vld [vmem:[%s16270_s3 + $0x43] ss:$8 sm:$0xf] }
 0x198   : > { %v4466_v21 = vmul.f32 %v4438_v51, %v14492_v62 }
 0x199   : > { %v4090_v20 = vmul.f32 %v4071_v19, %v14433_v12  ;;  %v4468_v19 = vmul.f32 %v4446_v36, %v14515_v11 }
 0x19b   : > { %13312 = vmatmul.mubr.msk.f32.vlgmr.msra.gmra.mrb[0].mxu0 %vm507_vm2, %v13309_v30 }
 0x19c   : > { %13320 = vmatpush1.msk.msra.mxu0 %vm511_vm1, %v4084_v6  ;;  %4173 = vmatprep.mubr.f32.mxu0 %v16370_v13  ;;  %v4426_v6 = vrot.slane %v4421_v23, %v14353_v39 }
 0x19d   : > { %13315 = vmatmul.mubr.msk.f32.vlgmr.msra.gmra.mrb[0].mxu1 %vm507_vm2, %v13309_v30  ;;  %13326 = vmatprep.subr.msk.mxu0 %vm511_vm1, %v4089_v50  ;;  %v4464_v30 = vmul.f32 %v4430_v32, %v14480_v49  ;;  %v13325_v50 = vld [vmem:[%s16273_s6 + $0x24] sm:$0xf]  ;;  %v13349_v32 = vld [vmem:[%s16270_s3 + $0x43] ss:$8 sm:$0xf0] }
 0x19e   : > { %13323 = vmatpush1.msk.msra.mxu1 %vm511_vm1, %v4086_v7  ;;  %4244 = vmatprep.mubr.f32.mxu1 %v16370_v13  ;;  %v4454_v7 = vrot.slane %v4421_v23, %v14390_v57 }
 0x19f   : > { %13329 = vmatprep.subr.msk.mxu1 %vm511_vm1, %v4091_v5  ;;  %v4463_v5 = vmul.f32 %v4426_v6, %v14462_v33  ;;  %v13334_v6 = vld [vmem:[%s16272_s5 + $0x28] sm:$0xf] }
 0x1a0   : > { %v4470_v51 = vmul.f32 %v4454_v7, %v14458_v31 }
 0x1a3   : > { %13321 = vmatmul.mubr.msk.f32.vlgmr.msra.gmra.mrb[0].mxu0 %vm507_vm2, %v13318_v41 }
 0x1a4   : > { %13327 = vmatpush1.msk.msra.mxu0 %vm511_vm1, %v4088_v18  ;;  %4336 = vmatprep.mubr.f32.mxu0 %v16370_v13  ;;  %v4800_v18 = vor.u32 %v13349_v32, %v13348_v42 }
 0x1a5   : > { %13324 = vmatmul.mubr.msk.f32.vlgmr.msra.gmra.mrb[0].mxu1 %vm507_vm2, %v13318_v41  ;;  %13335 = vmatprep.subr.msk.mxu0 %vm511_vm1, %v4464_v30  ;;  %v4465_v41 = vmul.f32 %v4434_v22, %v14476_v48  ;;  %v4442_v30 = vrot.slane %v4421_v23, %v14385_v54 }
 0x1a6   : > { %13330 = vmatpush1.msk.msra.mxu1 %vm511_vm1, %v4090_v20  ;;  %4407 = vmatprep.mubr.f32.mxu1 %v16370_v13  ;;  %v4809_v20 = vrot.slane %v4800_v18, %v14350_v38  ;;  %v4817_v36 = vrot.slane %v4800_v18, %v14371_v47  ;;  %v4825_v42 = vrot.slane %v4800_v18, %v14387_v55 }
 0x1a7   : > { %13338 = vmatprep.subr.msk.mxu1 %vm511_vm1, %v4466_v21  ;;  %v4450_v21 = vrot.slane %v4421_v23, %v14401_v61  ;;  %v4467_v22 = vmul.f32 %v4442_v30, %v14504_v4  ;;  %v4813_v32 = vrot.slane %v4800_v18, %v14369_v46  ;;  %v13364_v30 = vld [vmem:[%s16270_s3 + $0x44] ss:$8 sm:$0xf] }
 0x1a8   : > { %v4845_v23 = vmul.f32 %v4817_v36, %v14577_v10 }
 0x1a9   : > { %v4469_v7 = vmul.f32 %v4450_v21, %v14510_v8  ;;  %v4847_v21 = vmul.f32 %v4825_v42, %v14595_v15 }
 0x1ab   : > { %13328 = vmatmul.mubr.msk.f32.vlgmr.msra.gmra.mrb[0].mxu0 %vm507_vm2, %v13325_v50 }
 0x1ac   : > { %13336 = vmatpush1.msk.msra.mxu0 %vm511_vm1, %v4463_v5  ;;  %4552 = vmatprep.mubr.f32.mxu0 %v16370_v13  ;;  %v4805_v5 = vrot.slane %v4800_v18, %v14353_v39 }
 0x1ad   : > { %13331 = vmatmul.mubr.msk.f32.vlgmr.msra.gmra.mrb[0].mxu1 %vm507_vm2, %v13325_v50  ;;  %13342 = vmatprep.subr.msk.mxu0 %vm511_vm1, %v4468_v19  ;;  %v4843_v50 = vmul.f32 %v4809_v20, %v14563_v56  ;;  %v13341_v19 = vld [vmem:[%s16273_s6 + $0x28] sm:$0xf]  ;;  %v13365_v20 = vld [vmem:[%s16270_s3 + $0x44] ss:$8 sm:$0xf0] }
 0x1ae   : > { %13339 = vmatpush1.msk.msra.mxu1 %vm511_vm1, %v4465_v41  ;;  %4623 = vmatprep.mubr.f32.mxu1 %v16370_v13  ;;  %v4833_v41 = vrot.slane %v4800_v18, %v14390_v57 }
 0x1af   : > { %13345 = vmatprep.subr.msk.mxu1 %vm511_vm1, %v4470_v51  ;;  %v4842_v51 = vmul.f32 %v4805_v5, %v14539_v35  ;;  %v13350_v5 = vld [vmem:[%s16272_s5 + $0x2c] sm:$0xf] }
 0x1b0   : > { %v4849_v36 = vmul.f32 %v4833_v41, %v14535_v26 }
 0x1b3   : > { %13337 = vmatmul.mubr.msk.f32.vlgmr.msra.gmra.mrb[0].mxu0 %vm507_vm2, %v13334_v6 }
 0x1b4   : > { %13343 = vmatpush1.msk.msra.mxu0 %vm511_vm1, %v4467_v22  ;;  %4715 = vmatprep.mubr.f32.mxu0 %v16370_v13  ;;  %v5179_v22 = vor.u32 %v13365_v20, %v13364_v30 }
 0x1b5   : > { %13340 = vmatmul.mubr.msk.f32.vlgmr.msra.gmra.mrb[0].mxu1 %vm507_vm2, %v13334_v6  ;;  %13351 = vmatprep.subr.msk.mxu0 %vm511_vm1, %v4843_v50  ;;  %v4844_v6 = vmul.f32 %v4813_v32, %v14559_v53  ;;  %v4821_v50 = vrot.slane %v4800_v18, %v14385_v54 }
 0x1b6   : > { %13346 = vmatpush1.msk.msra.mxu1 %vm511_vm1, %v4469_v7  ;;  %4786 = vmatprep.mubr.f32.mxu1 %v16370_v13  ;;  %v5188_v7 = vrot.slane %v5179_v22, %v14350_v38  ;;  %v5196_v42 = vrot.slane %v5179_v22, %v14371_v47  ;;  %v5204_v30 = vrot.slane %v5179_v22, %v14387_v55 }
 0x1b7   : > { %13354 = vmatprep.subr.msk.mxu1 %vm511_vm1, %v4845_v23  ;;  %v4829_v23 = vrot.slane %v4800_v18, %v14401_v61  ;;  %v4846_v32 = vmul.f32 %v4821_v50, %v14583_v17  ;;  %v5192_v20 = vrot.slane %v5179_v22, %v14369_v46  ;;  %v13380_v50 = vld [vmem:[%s16270_s3 + $0x45] ss:$8 sm:$0xf] }
 0x1b8   : > { %v5224_v18 = vmul.f32 %v5196_v42, %v14664_v52  ;;  %v16399_v42 = vld [vmem:[#allocation15_spill] sm:$0xff] }
 0x1b9   : > { %v4848_v41 = vmul.f32 %v4829_v23, %v14589_v25  ;;  %v5226_v23 = vmul.f32 %v5204_v30, %v14685_v40  ;;  %v13366_v30 = vld [vmem:[%s16272_s5 + $0x30] sm:$0xf] }
 0x1bb   : > { %13344 = vmatmul.mubr.msk.f32.vlgmr.msra.gmra.mrb[0].mxu0 %vm507_vm2, %v13341_v19 }
 0x1bc   : > { %13352 = vmatpush1.msk.msra.mxu0 %vm511_vm1, %v4842_v51  ;;  %4931 = vmatprep.mubr.f32.mxu0 %v16370_v13  ;;  %v5184_v51 = vrot.slane %v5179_v22, %v14353_v39 }
 0x1bd   : > { %13347 = vmatmul.mubr.msk.f32.vlgmr.msra.gmra.mrb[0].mxu1 %vm507_vm2, %v13341_v19  ;;  %13358 = vmatprep.subr.msk.mxu0 %vm511_vm1, %v4847_v21  ;;  %v5222_v19 = vmul.f32 %v5188_v7, %v14623_v63  ;;  %v13357_v21 = vld [vmem:[%s16273_s6 + $0x2c] sm:$0xf] }
 0x1be   : > { %13355 = vmatpush1.msk.msra.mxu1 %vm511_vm1, %v4844_v6  ;;  %5002 = vmatprep.mubr.f32.mxu1 %v16370_v13  ;;  %v5212_v6 = vrot.slane %v5179_v22, %v14390_v57  ;;  %v13381_v7 = vld [vmem:[%s16270_s3 + $0x45] ss:$8 sm:$0xf0] }
 0x1bf   : > { %13361 = vmatprep.subr.msk.mxu1 %vm511_vm1, %v4849_v36  ;;  %v5221_v36 = vmul.f32 %v5184_v51, %v14611_v44  ;;  %v5208_v51 = vrot.slane %v5179_v22, %v14401_v61 }
 0x1c3   : > { %13353 = vmatmul.mubr.msk.f32.vlgmr.msra.gmra.mrb[0].mxu0 %vm507_vm2, %v13350_v5 }
 0x1c4   : > { %13359 = vmatpush1.msk.msra.mxu0 %vm511_vm1, %v4846_v32  ;;  %5094 = vmatprep.mubr.f32.mxu0 %v16370_v13  ;;  %v5228_v32 = vmul.f32 %v5212_v6, %v16399_v42 }
 0x1c5   : > { %13356 = vmatmul.mubr.msk.f32.vlgmr.msra.gmra.mrb[0].mxu1 %vm507_vm2, %v13350_v5  ;;  %13367 = vmatprep.subr.msk.mxu0 %vm511_vm1, %v5222_v19  ;;  %v5223_v5 = vmul.f32 %v5192_v20, %v14628_v1  ;;  %v5558_v19 = vor.u32 %v13381_v7, %v13380_v50  ;;  %v5227_v50 = vmul.f32 %v5208_v51, %v14679_v0  ;;  %v13373_v51 = vld [vmem:[%s16273_s6 + $0x30] sm:$0xf] }
 0x1c6   : > { %13362 = vmatpush1.msk.msra.mxu1 %vm511_vm1, %v4848_v41  ;;  %5165 = vmatprep.mubr.f32.mxu1 %v16370_v13  ;;  %v5200_v41 = vrot.slane %v5179_v22, %v14385_v54  ;;  %v16401_v22 = vld [vmem:[#allocation11_spill] sm:$0xff] }
 0x1c7   : > { %13370 = vmatprep.subr.msk.mxu1 %vm511_vm1, %v5224_v18  ;;  %v5567_v18 = vrot.slane %v5558_v19, %v14350_v38  ;;  %v5575_v20 = vrot.slane %v5558_v19, %v14371_v47 }
 0x1c9   : > { %v5603_v7 = vmul.f32 %v5575_v20, %v16401_v22  ;;  %v16402_v20 = vld [vmem:[#allocation9_spill] sm:$0xff] }
 0x1cb   : > { %13360 = vmatmul.mubr.msk.f32.vlgmr.msra.gmra.mrb[0].mxu0 %vm507_vm2, %v13357_v21 }
 0x1cc   : > { %13368 = vmatpush1.msk.msra.mxu0 %vm511_vm1, %v5221_v36  ;;  %5310 = vmatprep.mubr.f32.mxu0 %v16370_v13  ;;  %v5601_v36 = vmul.f32 %v5567_v18, %v14250_v27  ;;  %v13397_v18 = vld [vmem:[%s16270_s3 + $0x46] ss:$8 sm:$0xf0] }
 0x1cd   : > { %13363 = vmatmul.mubr.msk.f32.vlgmr.msra.gmra.mrb[0].mxu1 %vm507_vm2, %v13357_v21  ;;  %13374 = vmatprep.subr.msk.mxu0 %vm511_vm1, %v5226_v23  ;;  %v16400_v21 = vld [vmem:[#allocation16_spill] sm:$0xff]  ;;  %v5563_v23 = vrot.slane %v5558_v19, %v14353_v39  ;;  %v16405_v27 = vld [vmem:[#allocation7_spill] sm:$0xff] }
 0x1ce   : > { %13371 = vmatpush1.msk.msra.mxu1 %vm511_vm1, %v5223_v5  ;;  %5381 = vmatprep.mubr.f32.mxu1 %v16370_v13  ;;  %v5225_v6 = vmul.f32 %v5200_v41, %v16400_v21  ;;  %v5571_v5 = vrot.slane %v5558_v19, %v14369_v46  ;;  %v5583_v41 = vrot.slane %v5558_v19, %v14387_v55 }
 0x1cf   : > { %13377 = vmatprep.subr.msk.mxu1 %vm511_vm1, %v5228_v32  ;;  %v13396_v32 = vld [vmem:[%s16270_s3 + $0x46] ss:$8 sm:$0xf] }
 0x1d0   : > { %v5937_v34 = vor.u32 %v13397_v18, %v13396_v32  ;;  %v16406_v18 = vld [vmem:[#allocation12_spill] sm:$0xff] }
 0x1d2   : > { %v5946_v32 = vrot.slane %v5937_v34, %v14350_v38 }
 0x1d3   : > { %13369 = vmatmul.mubr.msk.f32.vlgmr.msra.gmra.mrb[0].mxu0 %vm507_vm2, %v13366_v30 }
 0x1d4   : > { %13375 = vmatpush1.msk.msra.mxu0 %vm511_vm1, %v5225_v6  ;;  %5473 = vmatprep.mubr.f32.mxu0 %v16370_v13  ;;  %v5600_v6 = vmul.f32 %v5563_v23, %v16402_v20  ;;  %v5579_v23 = vrot.slane %v5558_v19, %v14385_v54 }
 0x1d5   : > { %13372 = vmatmul.mubr.msk.f32.vlgmr.msra.gmra.mrb[0].mxu1 %vm507_vm2, %v13366_v30  ;;  %13383 = vmatprep.subr.msk.mxu0 %vm511_vm1, %v5601_v36  ;;  %v5591_v30 = vrot.slane %v5558_v19, %v14390_v57  ;;  %v16403_v36 = vld [vmem:[#allocation8_spill] sm:$0xff] }
 0x1d6   : > { %13378 = vmatpush1.msk.msra.mxu1 %vm511_vm1, %v5227_v50  ;;  %5544 = vmatprep.mubr.f32.mxu1 %v16370_v13  ;;  %v5602_v50 = vmul.f32 %v5571_v5, %v16403_v36  ;;  %v5587_v5 = vrot.slane %v5558_v19, %v14401_v61  ;;  %v16409_v19 = vld [vmem:[#allocation24_spill] sm:$0xff]  ;;  %v5958_v36 = vrot.slane %v5937_v34, %v14385_v54 }
 0x1d7   : > { %13386 = vmatprep.subr.msk.mxu1 %vm511_vm1, %v5603_v7  ;;  %v16404_v7 = vld [vmem:[#allocation13_spill] sm:$0xff]  ;;  %v5607_v42 = vmul.f32 %v5591_v30, %v16405_v27  ;;  %v16407_v30 = vld [vmem:[#allocation6_spill] sm:$0xff] }
 0x1d8   : > { %v5605_v22 = vmul.f32 %v5583_v41, %v16404_v7  ;;  %v13382_v41 = vld [vmem:[%s16272_s5 + $0x34] sm:$0xf]  ;;  %v5942_v7 = vrot.slane %v5937_v34, %v14353_v39 }
 0x1db   : > { %13376 = vmatmul.mubr.msk.f32.vlgmr.msra.gmra.mrb[0].mxu0 %vm507_vm2, %v13373_v51 }
 0x1dc   : > { %13384 = vmatpush1.msk.msra.mxu0 %vm511_vm1, %v5600_v6  ;;  %5689 = vmatprep.mubr.f32.mxu0 %v16370_v13  ;;  %v5606_v6 = vmul.f32 %v5587_v5, %v16407_v30  ;;  %v13412_v5 = vld [vmem:[%s16270_s3 + $0x47] ss:$8 sm:$0xf] }
 0x1dd   : > { %13379 = vmatmul.mubr.msk.f32.vlgmr.msra.gmra.mrb[0].mxu1 %vm507_vm2, %v13373_v51  ;;  %13390 = vmatprep.subr.msk.mxu0 %vm511_vm1, %v5605_v22  ;;  %v5954_v22 = vrot.slane %v5937_v34, %v14371_v47  ;;  %v5604_v51 = vmul.f32 %v5579_v23, %v16406_v18  ;;  %v5962_v23 = vrot.slane %v5937_v34, %v14387_v55  ;;  %v16413_v18 = vld [vmem:[#allocation20_spill] sm:$0xff] }
 0x1de   : > { %13387 = vmatpush1.msk.msra.mxu1 %vm511_vm1, %v5602_v50  ;;  %5760 = vmatprep.mubr.f32.mxu1 %v16370_v13  ;;  %v16408_v50 = vld [vmem:[#allocation22_spill] sm:$0xff] }
 0x1df   : > { %13393 = vmatprep.subr.msk.mxu1 %vm511_vm1, %v5607_v42  ;;  %v5980_v27 = vmul.f32 %v5946_v32, %v16408_v50  ;;  %v5982_v42 = vmul.f32 %v5954_v22, %v16409_v19  ;;  %v5950_v32 = vrot.slane %v5937_v34, %v14369_v46  ;;  %v5970_v22 = vrot.slane %v5937_v34, %v14390_v57  ;;  %v16411_v19 = vld [vmem:[#allocation25_spill] sm:$0xff] }
 0x1e0   : > { %v5984_v50 = vmul.f32 %v5962_v23, %v16411_v19  ;;  %v5966_v23 = vrot.slane %v5937_v34, %v14401_v61 }
 0x1e1   : > { %v5986_v40 = vmul.f32 %v5970_v22, %v16413_v18 }
 0x1e3   : > { %13385 = vmatmul.mubr.msk.f32.vlgmr.msra.gmra.mrb[0].mxu0 %vm507_vm2, %v13382_v41 }
 0x1e4   : > { %13391 = vmatpush1.msk.msra.mxu0 %vm511_vm1, %v5604_v51  ;;  %5852 = vmatprep.mubr.f32.mxu0 %v16370_v13  ;;  %v16410_v51 = vld [vmem:[#allocation18_spill] sm:$0xff] }
 0x1e5   : > { %13388 = vmatmul.mubr.msk.f32.vlgmr.msra.gmra.mrb[0].mxu1 %vm507_vm2, %v13382_v41  ;;  %13399 = vmatprep.subr.msk.mxu0 %vm511_vm1, %v5980_v27  ;;  %v13413_v27 = vld [vmem:[%s16270_s3 + $0x47] ss:$8 sm:$0xf0] }
 0x1e6   : > { %13394 = vmatpush1.msk.msra.mxu1 %vm511_vm1, %v5606_v6  ;;  %5923 = vmatprep.mubr.f32.mxu1 %v16370_v13  ;;  %v13389_v41 = vld [vmem:[%s16273_s6 + $0x34] sm:$0xf]  ;;  %v5979_v6 = vmul.f32 %v5942_v7, %v16410_v51  ;;  %v6316_v20 = vor.u32 %v13413_v27, %v13412_v5  ;;  %v13398_v5 = vld [vmem:[%s16272_s5 + $0x38] sm:$0xf] }
 0x1e7   : > { %13402 = vmatprep.subr.msk.mxu1 %vm511_vm1, %v5982_v42  ;;  %v16412_v42 = vld [vmem:[#allocation19_spill] sm:$0xff]  ;;  %v16414_v27 = vld [vmem:[#allocation21_spill] sm:$0xff] }
 0x1e8   : > { %v5981_v30 = vmul.f32 %v5950_v32, %v16412_v42  ;;  %v6325_v7 = vrot.slane %v6316_v20, %v14350_v38  ;;  %v6333_v32 = vrot.slane %v6316_v20, %v14371_v47  ;;  %v6321_v18 = vrot.slane %v6316_v20, %v14353_v39 }
 0x1e9   : > { %v6337_v42 = vrot.slane %v6316_v20, %v14385_v54 }
 0x1eb   : > { %13392 = vmatmul.mubr.msk.f32.vlgmr.msra.gmra.mrb[0].mxu0 %vm507_vm2, %v13389_v41 }
 0x1ec   : > { %13400 = vmatpush1.msk.msra.mxu0 %vm511_vm1, %v5979_v6  ;;  %6068 = vmatprep.mubr.f32.mxu0 %v16370_v13 }
 0x1ed   : > { %13395 = vmatmul.mubr.msk.f32.vlgmr.msra.gmra.mrb[0].mxu1 %vm507_vm2, %v13389_v41  ;;  %13406 = vmatprep.subr.msk.mxu0 %vm511_vm1, %v5984_v50  ;;  %v5983_v50 = vmul.f32 %v5958_v36, %v16414_v27  ;;  %v16415_v41 = vld [vmem:[#allocation30_spill] sm:$0xff]  ;;  %v6341_v36 = vrot.slane %v6316_v20, %v14387_v55 }
 0x1ee   : > { %13403 = vmatpush1.msk.msra.mxu1 %vm511_vm1, %v5981_v30  ;;  %6139 = vmatprep.mubr.f32.mxu1 %v16370_v13  ;;  %v6359_v22 = vmul.f32 %v6325_v7, %v16415_v41  ;;  %v16416_v30 = vld [vmem:[#allocation23_spill] sm:$0xff] }
 0x1ef   : > { %13409 = vmatprep.subr.msk.mxu1 %vm511_vm1, %v5986_v40  ;;  %v5985_v6 = vmul.f32 %v5966_v23, %v16416_v30  ;;  %v16417_v40 = vld [vmem:[#allocation32_spill] sm:$0xff]  ;;  %v6329_v23 = vrot.slane %v6316_v20, %v14369_v46 }
 0x1f0   : > { %v6361_v34 = vmul.f32 %v6333_v32, %v16417_v40  ;;  %v13428_v7 = vld [vmem:[%s16270_s3 + $0x80] ss:$8 sm:$0xf] }
 0x1f1   : > { %v13405_v32 = vld [vmem:[%s16273_s6 + $0x38] sm:$0xf]  ;;  %v16421_v30 = vld [vmem:[#allocation28_spill] sm:$0xff] }
 0x1f2   : > { %v16419_v40 = vld [vmem:[#allocation33_spill] sm:$0xff] }
 0x1f3   : > { %13401 = vmatmul.mubr.msk.f32.vlgmr.msra.gmra.mrb[0].mxu0 %vm507_vm2, %v13398_v5  ;;  %v6363_v41 = vmul.f32 %v6341_v36, %v16419_v40  ;;  %v6345_v36 = vrot.slane %v6316_v20, %v14401_v61 }
 0x1f4   : > { %13407 = vmatpush1.msk.msra.mxu0 %vm511_vm1, %v5983_v50  ;;  %6231 = vmatprep.mubr.f32.mxu0 %v16370_v13  ;;  %v6349_v50 = vrot.slane %v6316_v20, %v14390_v57 }
 0x1f5   : > { %13404 = vmatmul.mubr.msk.f32.vlgmr.msra.gmra.mrb[0].mxu1 %vm507_vm2, %v13398_v5  ;;  %13415 = vmatprep.subr.msk.mxu0 %vm511_vm1, %v6359_v22  ;;  %v13429_v5 = vld [vmem:[%s16270_s3 + $0x80] ss:$8 sm:$0xf0] }
 0x1f6   : > { %13410 = vmatpush1.msk.msra.mxu1 %vm511_vm1, %v5985_v6  ;;  %6302 = vmatprep.mubr.f32.mxu1 %v16370_v13  ;;  %v16418_v22 = vld [vmem:[#allocation26_spill] sm:$0xff]  ;;  %v6695_v19 = vor.u32 %v13429_v5, %v13428_v7  ;;  %v6365_v27 = vmul.f32 %v6349_v50, %v16421_v30  ;;  %v13414_v7 = vld [vmem:[%s16272_s5 + $0x3c] sm:$0xf] }
 0x1f7   : > { %13418 = vmatprep.subr.msk.mxu1 %vm511_vm1, %v6361_v34  ;;  %v6358_v6 = vmul.f32 %v6321_v18, %v16418_v22  ;;  %v16420_v34 = vld [vmem:[#allocation27_spill] sm:$0xff]  ;;  %v16422_v5 = vld [vmem:[#allocation29_spill] sm:$0xff]  ;;  %v16428_v22 = vld [vmem:[#allocation36_spill] sm:$0xff] }
 0x1f8   : > { %v6360_v51 = vmul.f32 %v6329_v23, %v16420_v34  ;;  %v6704_v18 = vrot.slane %v6695_v19, %v14350_v38  ;;  %v6712_v23 = vrot.slane %v6695_v19, %v14371_v47 }
 0x1fb   : > { %13408 = vmatmul.mubr.msk.f32.vlgmr.msra.gmra.mrb[0].mxu0 %vm507_vm2, %v13405_v32 }
 0x1fc   : > { %13416 = vmatpush1.msk.msra.mxu0 %vm511_vm1, %v6358_v6  ;;  %6447 = vmatprep.mubr.f32.mxu0 %v16370_v13  ;;  %v6700_v6 = vrot.slane %v6695_v19, %v14353_v39 }
 0x1fd   : > { %13411 = vmatmul.mubr.msk.f32.vlgmr.msra.gmra.mrb[0].mxu1 %vm507_vm2, %v13405_v32  ;;  %13422 = vmatprep.subr.msk.mxu0 %vm511_vm1, %v6363_v41  ;;  %v6362_v41 = vmul.f32 %v6337_v42, %v16422_v5  ;;  %v6738_v32 = vmul.f32 %v6704_v18, %v14980_v24  ;;  %v6720_v42 = vrot.slane %v6695_v19, %v14387_v55  ;;  %v13444_v18 = vld [vmem:[%s16270_s3 + $0x81] ss:$8 sm:$0xf] }
 0x1fe   : > { %13419 = vmatpush1.msk.msra.mxu1 %vm511_vm1, %v6360_v51  ;;  %6518 = vmatprep.mubr.f32.mxu1 %v16370_v13  ;;  %v16423_v51 = vld [vmem:[#allocation31_spill] sm:$0xff]  ;;  %v6716_v5 = vrot.slane %v6695_v19, %v14385_v54 }
 0x1ff   : > { %13425 = vmatprep.subr.msk.mxu1 %vm511_vm1, %v6365_v27  ;;  %v6364_v50 = vmul.f32 %v6345_v36, %v16423_v51  ;;  %v16424_v27 = vld [vmem:[#allocation40_spill] sm:$0xff]  ;;  %v6708_v36 = vrot.slane %v6695_v19, %v14369_v46 }
 0x200   : > { %v6740_v20 = vmul.f32 %v6712_v23, %v16424_v27  ;;  %v13421_v23 = vld [vmem:[%s16273_s6 + $0x3c] sm:$0xf] }
 0x201   : > { %v16426_v27 = vld [vmem:[#allocation41_spill] sm:$0xff] }
 0x202   : > { %v6742_v24 = vmul.f32 %v6720_v42, %v16426_v27  ;;  %v6724_v42 = vrot.slane %v6695_v19, %v14401_v61 }
 0x203   : > { %13417 = vmatmul.mubr.msk.f32.vlgmr.msra.gmra.mrb[0].mxu0 %vm507_vm2, %v13414_v7 }
 0x204   : > { %13423 = vmatpush1.msk.msra.mxu0 %vm511_vm1, %v6362_v41  ;;  %6610 = vmatprep.mubr.f32.mxu0 %v16370_v13  ;;  %v6728_v41 = vrot.slane %v6695_v19, %v14390_v57 }
 0x205   : > { %13420 = vmatmul.mubr.msk.f32.vlgmr.msra.gmra.mrb[0].mxu1 %vm507_vm2, %v13414_v7  ;;  %13431 = vmatprep.subr.msk.mxu0 %vm511_vm1, %v6738_v32  ;;  %v13445_v7 = vld [vmem:[%s16270_s3 + $0x81] ss:$8 sm:$0xf0] }
 0x206   : > { %13426 = vmatpush1.msk.msra.mxu1 %vm511_vm1, %v6364_v50  ;;  %6681 = vmatprep.mubr.f32.mxu1 %v16370_v13  ;;  %v16425_v32 = vld [vmem:[#allocation34_spill] sm:$0xff]  ;;  %v7074_v30 = vor.u32 %v13445_v7, %v13444_v18  ;;  %v6744_v51 = vmul.f32 %v6728_v41, %v16428_v22  ;;  %v16429_v7 = vld [vmem:[#allocation37_spill] sm:$0xff] }
 0x207   : > { %13434 = vmatprep.subr.msk.mxu1 %vm511_vm1, %v6740_v20  ;;  %v6737_v50 = vmul.f32 %v6700_v6, %v16425_v32  ;;  %v16427_v20 = vld [vmem:[#allocation35_spill] sm:$0xff]  ;;  %v13430_v18 = vld [vmem:[%s16272_s5 + $0x40] sm:$0xf] }
 0x208   : > { %v6739_v40 = vmul.f32 %v6708_v36, %v16427_v20  ;;  %v7083_v6 = vrot.slane %v7074_v30, %v14350_v38  ;;  %v7091_v36 = vrot.slane %v7074_v30, %v14371_v47  ;;  %v7095_v27 = vrot.slane %v7074_v30, %v14385_v54 }
 0x20a   : > { %v7119_v19 = vmul.f32 %v7091_v36, %v15104_v28  ;;  %v13461_v36 = vld [vmem:[%s16270_s3 + $0x82] ss:$8 sm:$0xf0] }
 0x20b   : > { %13424 = vmatmul.mubr.msk.f32.vlgmr.msra.gmra.mrb[0].mxu0 %vm507_vm2, %v13421_v23 }
 0x20c   : > { %13432 = vmatpush1.msk.msra.mxu0 %vm511_vm1, %v6737_v50  ;;  %6826 = vmatprep.mubr.f32.mxu0 %v16370_v13  ;;  %v7087_v50 = vrot.slane %v7074_v30, %v14369_v46 }
 0x20d   : > { %13427 = vmatmul.mubr.msk.f32.vlgmr.msra.gmra.mrb[0].mxu1 %vm507_vm2, %v13421_v23  ;;  %13438 = vmatprep.subr.msk.mxu0 %vm511_vm1, %v6742_v24  ;;  %v6741_v24 = vmul.f32 %v6716_v5, %v16429_v7  ;;  %v7117_v23 = vmul.f32 %v7083_v6, %v15073_v60  ;;  %v7099_v5 = vrot.slane %v7074_v30, %v14387_v55  ;;  %v13437_v6 = vld [vmem:[%s16273_s6 + $0x40] sm:$0xf] }
 0x20e   : > { %13435 = vmatpush1.msk.msra.mxu1 %vm511_vm1, %v6739_v40  ;;  %6897 = vmatprep.mubr.f32.mxu1 %v16370_v13  ;;  %v16430_v40 = vld [vmem:[#allocation39_spill] sm:$0xff] }
 0x20f   : > { %13441 = vmatprep.subr.msk.mxu1 %vm511_vm1, %v6744_v51  ;;  %v6743_v41 = vmul.f32 %v6724_v42, %v16430_v40  ;;  %v7079_v51 = vrot.slane %v7074_v30, %v14353_v39  ;;  %v7107_v42 = vrot.slane %v7074_v30, %v14390_v57 }
 0x211   : > { %v7123_v22 = vmul.f32 %v7107_v42, %v15054_v29  ;;  %v7120_v42 = vmul.f32 %v7095_v27, %v15064_v37 }
 0x213   : > { %13433 = vmatmul.mubr.msk.f32.vlgmr.msra.gmra.mrb[0].mxu0 %vm507_vm2, %v13430_v18 }
 0x214   : > { %13439 = vmatpush1.msk.msra.mxu0 %vm511_vm1, %v6741_v24  ;;  %6989 = vmatprep.mubr.f32.mxu0 %v16370_v13  ;;  %v16431_v24 = vld [vmem:[#allocation42_spill] sm:$0xff] }
 0x215   : > { %13436 = vmatmul.mubr.msk.f32.vlgmr.msra.gmra.mrb[0].mxu1 %vm507_vm2, %v13430_v18  ;;  %13447 = vmatprep.subr.msk.mxu0 %vm511_vm1, %v7117_v23  ;;  %v13460_v18 = vld [vmem:[%s16270_s3 + $0x82] ss:$8 sm:$0xf]  ;;  %v7116_v23 = vmul.f32 %v7079_v51, %v16431_v24 }
 0x216   : > { %13442 = vmatpush1.msk.msra.mxu1 %vm511_vm1, %v6743_v41  ;;  %7060 = vmatprep.mubr.f32.mxu1 %v16370_v13  ;;  %v7121_v41 = vmul.f32 %v7099_v5, %v15115_v2  ;;  %v7453_v60 = vor.u32 %v13461_v36, %v13460_v18  ;;  %v7103_v5 = vrot.slane %v7074_v30, %v14401_v61 }
 0x217   : > { %13450 = vmatprep.subr.msk.mxu1 %vm511_vm1, %v7119_v19  ;;  %v16432_v19 = vld [vmem:[#allocation43_spill] sm:$0xff] }
 0x218   : > { %v7118_v28 = vmul.f32 %v7087_v50, %v16432_v19  ;;  %v7462_v51 = vrot.slane %v7453_v60, %v14350_v38  ;;  %v13446_v50 = vld [vmem:[%s16272_s5 + $0x44] sm:$0xf]  ;;  %v7466_v27 = vrot.slane %v7453_v60, %v14369_v46  ;;  %v7486_v36 = vrot.slane %v7453_v60, %v14390_v57 }
 0x21a   : > { %v7496_v18 = vmul.f32 %v7462_v51, %v14394_v58  ;;  %v7478_v58 = vrot.slane %v7453_v60, %v14387_v55  ;;  %v13477_v51 = vld [vmem:[%s16270_s3 + $0x83] ss:$8 sm:$0xf0] }
 0x21b   : > { %13440 = vmatmul.mubr.msk.f32.vlgmr.msra.gmra.mrb[0].mxu0 %vm507_vm2, %v13437_v6 }
 0x21c   : > { %13448 = vmatpush1.msk.msra.mxu0 %vm511_vm1, %v7116_v23  ;;  %7205 = vmatprep.mubr.f32.mxu0 %v16370_v13 }
 0x21d   : > { %13443 = vmatmul.mubr.msk.f32.vlgmr.msra.gmra.mrb[0].mxu1 %vm507_vm2, %v13437_v6  ;;  %13454 = vmatprep.subr.msk.mxu0 %vm511_vm1, %v7121_v41  ;;  %v7470_v6 = vrot.slane %v7453_v60, %v14371_v47  ;;  %v13476_v41 = vld [vmem:[%s16270_s3 + $0x83] ss:$8 sm:$0xf] }
 0x21e   : > { %13451 = vmatpush1.msk.msra.mxu1 %vm511_vm1, %v7118_v28  ;;  %7276 = vmatprep.mubr.f32.mxu1 %v16370_v13  ;;  %v7122_v28 = vmul.f32 %v7103_v5, %v15086_v16  ;;  %v7500_v5 = vmul.f32 %v7478_v58, %v14433_v12 }
 0x21f   : > { %13457 = vmatprep.subr.msk.mxu1 %vm511_vm1, %v7123_v22  ;;  %v7498_v30 = vmul.f32 %v7470_v6, %v14427_v9  ;;  %v7458_v22 = vrot.slane %v7453_v60, %v14353_v39  ;;  %v13453_v9 = vld [vmem:[%s16273_s6 + $0x44] sm:$0xf]  ;;  %v7832_v6 = vor.u32 %v13477_v51, %v13476_v41 }
 0x221   : > { %v7495_v23 = vmul.f32 %v7458_v22, %v14398_v59  ;;  %v7502_v59 = vmul.f32 %v7486_v36, %v14367_v45  ;;  %v7841_v12 = vrot.slane %v7832_v6, %v14350_v38  ;;  %v13462_v45 = vld [vmem:[%s16272_s5 + $0x48] sm:$0xf]  ;;  %v7837_v58 = vrot.slane %v7832_v6, %v14353_v39  ;;  %v13493_v36 = vld [vmem:[%s16270_s3 + $0x84] ss:$8 sm:$0xf0] }
 0x223   : > { %13449 = vmatmul.mubr.msk.f32.vlgmr.msra.gmra.mrb[0].mxu0 %vm507_vm2, %v13446_v50 }
 0x224   : > { %13455 = vmatpush1.msk.msra.mxu0 %vm511_vm1, %v7120_v42  ;;  %7368 = vmatprep.mubr.f32.mxu0 %v16370_v13  ;;  %v7474_v42 = vrot.slane %v7453_v60, %v14385_v54 }
 0x225   : > { %13452 = vmatmul.mubr.msk.f32.vlgmr.msra.gmra.mrb[0].mxu1 %vm507_vm2, %v13446_v50  ;;  %13463 = vmatprep.subr.msk.mxu0 %vm511_vm1, %v7496_v18  ;;  %v7497_v50 = vmul.f32 %v7466_v27, %v14415_v3  ;;  %v7482_v3 = vrot.slane %v7453_v60, %v14401_v61  ;;  %v7849_v18 = vrot.slane %v7832_v6, %v14371_v47 }
 0x226   : > { %13458 = vmatpush1.msk.msra.mxu1 %vm511_vm1, %v7122_v28  ;;  %7439 = vmatprep.mubr.f32.mxu1 %v16370_v13  ;;  %v7499_v28 = vmul.f32 %v7474_v42, %v14438_v14  ;;  %v7857_v14 = vrot.slane %v7832_v6, %v14387_v55  ;;  %v7874_v27 = vmul.f32 %v7837_v58, %v14480_v49 }
 0x227   : > { %13466 = vmatprep.subr.msk.mxu1 %vm511_vm1, %v7498_v30  ;;  %v7875_v30 = vmul.f32 %v7841_v12, %v14476_v48  ;;  %v7501_v22 = vmul.f32 %v7482_v3, %v14361_v43  ;;  %v7877_v60 = vmul.f32 %v7849_v18, %v14504_v4  ;;  %v7845_v43 = vrot.slane %v7832_v6, %v14369_v46  ;;  %v13469_v48 = vld [vmem:[%s16273_s6 + $0x48] sm:$0xf] }
 0x228   : > { %v7865_v4 = vrot.slane %v7832_v6, %v14390_v57 }
 0x229   : > { %v7876_v41 = vmul.f32 %v7845_v43, %v14492_v62 }
 0x22a   : > { %v7881_v49 = vmul.f32 %v7865_v4, %v14462_v33  ;;  %v14103_v33 = vmov 0  }
 0x22b   : > { %13456 = vmatmul.mubr.msk.f32.vlgmr.msra.gmra.mrb[0].mxu0 %vm507_vm2, %v13453_v9  ;;  %14009 = vset.pattern.permute.xlu1 %v14103_v33 }
 0x22c   : > { %13464 = vmatpush1.msk.msra.mxu0 %vm511_vm1, %v7495_v23  ;;  %7584 = vmatprep.mubr.f32.mxu0 %v16370_v13  ;;  %v7879_v23 = vmul.f32 %v7857_v14, %v14510_v8  ;;  %v7853_v8 = vrot.slane %v7832_v6, %v14385_v54 }
 0x22d   : > { %13459 = vmatmul.mubr.msk.f32.vlgmr.msra.gmra.mrb[0].mxu1 %vm507_vm2, %v13453_v9  ;;  %13470 = vmatprep.subr.msk.mxu0 %vm511_vm1, %v7500_v5  ;;  %v13492_v9 = vld [vmem:[%s16270_s3 + $0x84] ss:$8 sm:$0xf]  ;;  %v421_v5 = vld [vmem:[%s16274_s7] sm:$0xf] }
 0x22e   : > { %13467 = vmatpush1.msk.msra.mxu1 %vm511_vm1, %v7497_v50  ;;  %7655 = vmatprep.mubr.f32.mxu1 %v16370_v13  ;;  %v8211_v51 = vor.u32 %v13493_v36, %v13492_v9  ;;  %v7861_v50 = vrot.slane %v7832_v6, %v14401_v61  ;;  %v7878_v12 = vmul.f32 %v7853_v8, %v14515_v11 }
 0x22f   : > { %13473 = vmatprep.subr.msk.mxu1 %vm511_vm1, %v7502_v59  ;;  %v13478_v59 = vld [vmem:[%s16272_s5 + $0x4c] sm:$0xf]  ;;  %424 = vperm.xlu1 %14009, %v421_v5  }
 0x230   : > { %v8220_v62 = vrot.slane %v8211_v51, %v14350_v38  ;;  %14010 = vset.pattern.permute.xlu0 %v14103_v33  ;;  %v8228_v42 = vrot.slane %v8211_v51, %v14371_v47  ;;  %v8216_v18 = vrot.slane %v8211_v51, %v14353_v39  ;;  %v8236_v11 = vrot.slane %v8211_v51, %v14387_v55 }
 0x231   : > { %v8232_v43 = vrot.slane %v8211_v51, %v14385_v54 }
 0x232   : > { %v8254_v3 = vmul.f32 %v8220_v62, %v14559_v53  ;;  %v8256_v6 = vmul.f32 %v8228_v42, %v14583_v17  ;;  %v13485_v53 = vld [vmem:[%s16273_s6 + $0x4c] sm:$0xf]  ;;  %v8244_v17 = vrot.slane %v8211_v51, %v14390_v57 }
 0x233   : > { %13465 = vmatmul.mubr.msk.f32.vlgmr.msra.gmra.mrb[0].mxu0 %vm507_vm2, %v13462_v45  ;;  %v8257_v4 = vmul.f32 %v8232_v43, %v14595_v15 }
 0x234   : > { %13471 = vmatpush1.msk.msra.mxu0 %vm511_vm1, %v7499_v28  ;;  %7747 = vmatprep.mubr.f32.mxu0 %v16370_v13  ;;  %v8253_v28 = vmul.f32 %v8216_v18, %v14563_v56  ;;  %v8260_v56 = vmul.f32 %v8244_v17, %v14539_v35  ;;  %v13494_v35 = vld [vmem:[%s16272_s5 + $0x50] sm:$0xf]  ;;  %v13517_v17 = vld [vmem:[%s16273_s6 + $0x54] sm:$0xf] }
 0x235   : > { %13468 = vmatmul.mubr.msk.f32.vlgmr.msra.gmra.mrb[0].mxu1 %vm507_vm2, %v13462_v45  ;;  %13479 = vmatprep.subr.msk.mxu0 %vm511_vm1, %v7875_v30  ;;  %v7880_v45 = vmul.f32 %v7861_v50, %v14458_v31  ;;  %v8224_v31 = vrot.slane %v8211_v51, %v14369_v46  ;;  %v13508_v30 = vld [vmem:[%s16270_s3 + $0x85] ss:$8 sm:$0xf] }
 0x236   : > { %13474 = vmatpush1.msk.msra.mxu1 %vm511_vm1, %v7501_v22  ;;  %7818 = vmatprep.mubr.f32.mxu1 %v16370_v13  ;;  %v13509_v22 = vld [vmem:[%s16270_s3 + $0x85] ss:$8 sm:$0xf0] }
 0x237   : > { %13482 = vmatprep.subr.msk.mxu1 %vm511_vm1, %v7877_v60  ;;  %v8258_v60 = vmul.f32 %v8236_v11, %v14589_v25  ;;  %v8255_v58 = vmul.f32 %v8224_v31, %v14577_v10  ;;  %v8590_v14 = vor.u32 %v13509_v22, %v13508_v30  ;;  %v8240_v10 = vrot.slane %v8211_v51, %v14401_v61  ;;  %v16436_v18 = vld [vmem:[#allocation12_spill] sm:$0xff]  ;;  %v16437_v22 = vld [vmem:[#allocation6_spill] sm:$0xff] }
 0x239   : > { %v8599_v25 = vrot.slane %v8590_v14, %v14350_v38  ;;  %v8259_v9 = vmul.f32 %v8240_v10, %v14535_v26  ;;  %v8615_v15 = vrot.slane %v8590_v14, %v14387_v55  ;;  %v13524_v26 = vld [vmem:[%s16270_s3 + $0x86] ss:$8 sm:$0xf] }
 0x23b   : > { %13472 = vmatmul.mubr.msk.f32.vlgmr.msra.gmra.mrb[0].mxu0 %vm507_vm2, %v13469_v48  ;;  %v8637_v5 = vmul.f32 %v8615_v15, %v14679_v0 }
 0x23c   : > { %13480 = vmatpush1.msk.msra.mxu0 %vm511_vm1, %v7874_v27  ;;  %7963 = vmatprep.mubr.f32.mxu0 %v16370_v13  ;;  %v8633_v27 = vmul.f32 %v8599_v25, %v14628_v1  ;;  %v8603_v1 = vrot.slane %v8590_v14, %v14369_v46  ;;  %v16439_v25 = vld [vmem:[#allocation11_spill] sm:$0xff] }
 0x23d   : > { %13475 = vmatmul.mubr.msk.f32.vlgmr.msra.gmra.mrb[0].mxu1 %vm507_vm2, %v13469_v48  ;;  %13486 = vmatprep.subr.msk.mxu0 %vm511_vm1, %v7879_v23  ;;  %v8607_v48 = vrot.slane %v8590_v14, %v14371_v47  ;;  %v8595_v23 = vrot.slane %v8590_v14, %v14353_v39 }
 0x23e   : > { %13483 = vmatpush1.msk.msra.mxu1 %vm511_vm1, %v7876_v41  ;;  %8034 = vmatprep.mubr.f32.mxu1 %v16370_v13  ;;  %v13525_v41 = vld [vmem:[%s16270_s3 + $0x86] ss:$8 sm:$0xf0]  ;;  %v8634_v62 = vmul.f32 %v8603_v1, %v14664_v52  ;;  %v8619_v52 = vrot.slane %v8590_v14, %v14401_v61 }
 0x23f   : > { %13489 = vmatprep.subr.msk.mxu1 %vm511_vm1, %v7881_v49  ;;  %v8635_v36 = vmul.f32 %v8607_v48, %v16400_v21  ;;  %v13501_v21 = vld [vmem:[%s16273_s6 + $0x50] sm:$0xf]  ;;  %v8623_v49 = vrot.slane %v8590_v14, %v14390_v57  ;;  %v8632_v51 = vmul.f32 %v8595_v23, %v14623_v63  ;;  %v8969_v8 = vor.u32 %v13525_v41, %v13524_v26  ;;  %v16440_v48 = vld [vmem:[#allocation9_spill] sm:$0xff] }
 0x240   : > { %v8611_v63 = vrot.slane %v8590_v14, %v14385_v54  ;;  %v16438_v14 = vld [vmem:[#allocation10_spill] sm:$0xff]  ;;  %v16441_v26 = vld [vmem:[#allocation13_spill] sm:$0xff] }
 0x241   : > { %v8639_v33 = vmul.f32 %v8623_v49, %v14611_v44  ;;  %v8978_v50 = vrot.slane %v8969_v8, %v14350_v38  ;;  %v13510_v44 = vld [vmem:[%s16272_s5 + $0x54] sm:$0xf]  ;;  %v8986_v0 = vrot.slane %v8969_v8, %v14371_v47  ;;  %v8994_v31 = vrot.slane %v8969_v8, %v14387_v55  ;;  %v16443_v49 = vld [vmem:[#allocation7_spill] sm:$0xff] }
 0x242   : > { %v9002_v30 = vrot.slane %v8969_v8, %v14390_v57  ;;  %v8998_v23 = vrot.slane %v8969_v8, %v14401_v61 }
 0x243   : > { %13481 = vmatmul.mubr.msk.f32.vlgmr.msra.gmra.mrb[0].mxu0 %vm507_vm2, %v13478_v59  ;;  %v9014_v11 = vmul.f32 %v8986_v0, %v16436_v18  ;;  %v16448_v18 = vld [vmem:[#allocation18_spill] sm:$0xff] }
 0x244   : > { %13487 = vmatpush1.msk.msra.mxu0 %vm511_vm1, %v7878_v12  ;;  %8126 = vmatprep.mubr.f32.mxu0 %v16370_v13  ;;  %v16434_v12 = vld [vmem:[#allocation17_spill] sm:$0xff] }
 0x245   : > { %13484 = vmatmul.mubr.msk.f32.vlgmr.msra.gmra.mrb[0].mxu1 %vm507_vm2, %v13478_v59  ;;  %13495 = vmatprep.subr.msk.mxu0 %vm511_vm1, %v8254_v3  ;;  %v16433_v59 = vld [vmem:[#allocation8_spill] sm:$0xff]  ;;  %v8636_v3 = vmul.f32 %v8611_v63, %v16434_v12  ;;  %v13533_v63 = vld [vmem:[%s16273_s6 + $0x58] sm:$0xf]  ;;  %v16446_v12 = vld [vmem:[#allocation23_spill] sm:$0xff] }
 0x246   : > { %13490 = vmatpush1.msk.msra.mxu1 %vm511_vm1, %v7880_v45  ;;  %8197 = vmatprep.mubr.f32.mxu1 %v16370_v13  ;;  %v9012_v42 = vmul.f32 %v8978_v50, %v16433_v59  ;;  %v16435_v45 = vld [vmem:[#allocation15_spill] sm:$0xff] }
 0x247   : > { %13498 = vmatprep.subr.msk.mxu1 %vm511_vm1, %v8256_v6  ;;  %v8638_v6 = vmul.f32 %v8619_v52, %v16435_v45  ;;  %v13556_v59 = vld [vmem:[%s16270_s3 + $0xc0] ss:$8 sm:$0xf] }
 0x248   : > { %v16447_v45 = vld [vmem:[#allocation24_spill] sm:$0xff] }
 0x24b   : > { %13488 = vmatmul.mubr.msk.f32.vlgmr.msra.gmra.mrb[0].mxu0 %vm507_vm2, %v13485_v53 }
 0x24c   : > { %13496 = vmatpush1.msk.msra.mxu0 %vm511_vm1, %v8253_v28  ;;  %8342 = vmatprep.mubr.f32.mxu0 %v16370_v13  ;;  %v8982_v28 = vrot.slane %v8969_v8, %v14369_v46 }
 0x24d   : > { %13491 = vmatmul.mubr.msk.f32.vlgmr.msra.gmra.mrb[0].mxu1 %vm507_vm2, %v13485_v53  ;;  %13502 = vmatprep.subr.msk.mxu0 %vm511_vm1, %v8258_v60  ;;  %v8974_v53 = vrot.slane %v8969_v8, %v14353_v39  ;;  %v9016_v60 = vmul.f32 %v8994_v31, %v16437_v22 }
 0x24e   : > { %13499 = vmatpush1.msk.msra.mxu1 %vm511_vm1, %v8255_v58  ;;  %8413 = vmatprep.mubr.f32.mxu1 %v16370_v13  ;;  %v13540_v58 = vld [vmem:[%s16270_s3 + $0x87] ss:$8 sm:$0xf]  ;;  %v9013_v10 = vmul.f32 %v8982_v28, %v16439_v25 }
 0x24f   : > { %13505 = vmatprep.subr.msk.mxu1 %vm511_vm1, %v8260_v56  ;;  %v13541_v56 = vld [vmem:[%s16270_s3 + $0x87] ss:$8 sm:$0xf0]  ;;  %v9011_v43 = vmul.f32 %v8974_v53, %v16438_v14 }
 0x250   : > { %v16450_v14 = vld [vmem:[#allocation20_spill] sm:$0xff]  ;;  %v16451_v25 = vld [vmem:[#allocation29_spill] sm:$0xff] }
 0x253   : > { %13497 = vmatmul.mubr.msk.f32.vlgmr.msra.gmra.mrb[0].mxu0 %vm507_vm2, %v13494_v35 }
 0x254   : > { %13503 = vmatpush1.msk.msra.mxu0 %vm511_vm1, %v8257_v4  ;;  %8505 = vmatprep.mubr.f32.mxu0 %v16370_v13  ;;  %v9018_v4 = vmul.f32 %v9002_v30, %v16440_v48  ;;  %v13542_v30 = vld [vmem:[%s16272_s5 + $0x5c] sm:$0xf] }
 0x255   : > { %13500 = vmatmul.mubr.msk.f32.vlgmr.msra.gmra.mrb[0].mxu1 %vm507_vm2, %v13494_v35  ;;  %13511 = vmatprep.subr.msk.mxu0 %vm511_vm1, %v8633_v27  ;;  %v9348_v35 = vor.u32 %v13541_v56, %v13540_v58  ;;  %v8990_v27 = vrot.slane %v8969_v8, %v14385_v54 }
 0x256   : > { %13506 = vmatpush1.msk.msra.mxu1 %vm511_vm1, %v8259_v9  ;;  %8576 = vmatprep.mubr.f32.mxu1 %v16370_v13 }
 0x257   : > { %13514 = vmatprep.subr.msk.mxu1 %vm511_vm1, %v8635_v36  ;;  %v9357_v9 = vrot.slane %v9348_v35, %v14350_v38  ;;  %v13526_v36 = vld [vmem:[%s16272_s5 + $0x58] sm:$0xf]  ;;  %v9365_v15 = vrot.slane %v9348_v35, %v14371_v47  ;;  %v9015_v1 = vmul.f32 %v8990_v27, %v16441_v26  ;;  %v9353_v8 = vrot.slane %v9348_v35, %v14353_v39  ;;  %v16453_v26 = vld [vmem:[#allocation31_spill] sm:$0xff] }
 0x258   : > { %v9361_v50 = vrot.slane %v9348_v35, %v14369_v46  ;;  %v9381_v52 = vrot.slane %v9348_v35, %v14390_v57  ;;  %v9369_v53 = vrot.slane %v9348_v35, %v14385_v54  ;;  %v9377_v28 = vrot.slane %v9348_v35, %v14401_v61 }
 0x25b   : > { %13504 = vmatmul.mubr.msk.f32.vlgmr.msra.gmra.mrb[0].mxu0 %vm507_vm2, %v13501_v21 }
 0x25c   : > { %13512 = vmatpush1.msk.msra.mxu0 %vm511_vm1, %v8632_v51  ;;  %8721 = vmatprep.mubr.f32.mxu0 %v16370_v13  ;;  %v9017_v51 = vmul.f32 %v8998_v23, %v16443_v49  ;;  %v13572_v23 = vld [vmem:[%s16270_s3 + $0xc1] ss:$8 sm:$0xf] }
 0x25d   : > { %13507 = vmatmul.mubr.msk.f32.vlgmr.msra.gmra.mrb[0].mxu1 %vm507_vm2, %v13501_v21  ;;  %13518 = vmatprep.subr.msk.mxu0 %vm511_vm1, %v8637_v5  ;;  %v16442_v21 = vld [vmem:[#allocation19_spill] sm:$0xff]  ;;  %v16444_v5 = vld [vmem:[#allocation21_spill] sm:$0xff]  ;;  %v16455_v49 = vld [vmem:[#allocation26_spill] sm:$0xff] }
 0x25e   : > { %13515 = vmatpush1.msk.msra.mxu1 %vm511_vm1, %v8634_v62  ;;  %8792 = vmatprep.mubr.f32.mxu1 %v16370_v13  ;;  %v9391_v41 = vmul.f32 %v9357_v9, %v16442_v21  ;;  %v9393_v62 = vmul.f32 %v9365_v15, %v16444_v5  ;;  %v16452_v9 = vld [vmem:[#allocation30_spill] sm:$0xff]  ;;  %v16454_v21 = vld [vmem:[#allocation32_spill] sm:$0xff] }
 0x25f   : > { %13521 = vmatprep.subr.msk.mxu1 %vm511_vm1, %v8639_v33  ;;  %v9373_v33 = vrot.slane %v9348_v35, %v14387_v55  ;;  %v13573_v15 = vld [vmem:[%s16270_s3 + $0xc1] ss:$8 sm:$0xf0] }
 0x260   : > { %v10106_v5 = vor.u32 %v13573_v15, %v13572_v23 }
 0x263   : > { %13513 = vmatmul.mubr.msk.f32.vlgmr.msra.gmra.mrb[0].mxu0 %vm507_vm2, %v13510_v44 }
 0x264   : > { %13519 = vmatpush1.msk.msra.mxu0 %vm511_vm1, %v8636_v3  ;;  %8884 = vmatprep.mubr.f32.mxu0 %v16370_v13  ;;  %v9395_v3 = vmul.f32 %v9373_v33, %v16446_v12 }
 0x265   : > { %13516 = vmatmul.mubr.msk.f32.vlgmr.msra.gmra.mrb[0].mxu1 %vm507_vm2, %v13510_v44  ;;  %13527 = vmatprep.subr.msk.mxu0 %vm511_vm1, %v9012_v42  ;;  %v16445_v44 = vld [vmem:[#allocation22_spill] sm:$0xff] }
 0x266   : > { %13522 = vmatpush1.msk.msra.mxu1 %vm511_vm1, %v8638_v6  ;;  %8955 = vmatprep.mubr.f32.mxu1 %v16370_v13  ;;  %v9390_v0 = vmul.f32 %v9353_v8, %v16445_v44  ;;  %v13557_v42 = vld [vmem:[%s16270_s3 + $0xc0] ss:$8 sm:$0xf0]  ;;  %v9392_v6 = vmul.f32 %v9361_v50, %v16447_v45  ;;  %v10115_v8 = vrot.slane %v10106_v5, %v14350_v38 }
 0x267   : > { %13530 = vmatprep.subr.msk.mxu1 %vm511_vm1, %v9014_v11  ;;  %v9397_v11 = vmul.f32 %v9381_v52, %v16448_v18  ;;  %v9727_v31 = vor.u32 %v13557_v42, %v13556_v59  ;;  %v13558_v50 = vld [vmem:[%s16272_s5 + $0x60] sm:$0xf]  ;;  %v16456_v52 = vld [vmem:[#allocation33_spill] sm:$0xff]  ;;  %v16457_v59 = vld [vmem:[#allocation28_spill] sm:$0xff]  ;;  %v10119_v45 = vrot.slane %v10106_v5, %v14369_v46 }
 0x268   : > { %v16458_v18 = vld [vmem:[#allocation38_spill] sm:$0xff] }
 0x269   : > { %v9744_v22 = vrot.slane %v9727_v31, %v14371_v47  ;;  %v9732_v35 = vrot.slane %v9727_v31, %v14353_v39  ;;  %v9740_v48 = vrot.slane %v9727_v31, %v14369_v46  ;;  %v9760_v27 = vrot.slane %v9727_v31, %v14390_v57 }
 0x26a   : > { %v9756_v33 = vrot.slane %v9727_v31, %v14401_v61 }
 0x26b   : > { %13520 = vmatmul.mubr.msk.f32.vlgmr.msra.gmra.mrb[0].mxu0 %vm507_vm2, %v13517_v17 }
 0x26c   : > { %13528 = vmatpush1.msk.msra.mxu0 %vm511_vm1, %v9011_v43  ;;  %9100 = vmatprep.mubr.f32.mxu0 %v16370_v13  ;;  %v9396_v43 = vmul.f32 %v9377_v28, %v16450_v14  ;;  %v9775_v42 = vmul.f32 %v9756_v33, %v16457_v59  ;;  %v16459_v28 = vld [vmem:[#allocation40_spill] sm:$0xff] }
 0x26d   : > { %13523 = vmatmul.mubr.msk.f32.vlgmr.msra.gmra.mrb[0].mxu1 %vm507_vm2, %v13517_v17  ;;  %13534 = vmatprep.subr.msk.mxu0 %vm511_vm1, %v9016_v60  ;;  %v9736_v17 = vrot.slane %v9727_v31, %v14350_v38  ;;  %v16449_v60 = vld [vmem:[#allocation25_spill] sm:$0xff] }
 0x26e   : > { %13531 = vmatpush1.msk.msra.mxu1 %vm511_vm1, %v9013_v10  ;;  %9171 = vmatprep.mubr.f32.mxu1 %v16370_v13  ;;  %v9394_v58 = vmul.f32 %v9369_v53, %v16449_v60  ;;  %v9772_v10 = vmul.f32 %v9744_v22, %v16451_v25  ;;  %v13589_v53 = vld [vmem:[%s16270_s3 + $0xc2] ss:$8 sm:$0xf0] }
 0x26f   : > { %13537 = vmatprep.subr.msk.mxu1 %vm511_vm1, %v9018_v4  ;;  %v9770_v56 = vmul.f32 %v9736_v17, %v16420_v34  ;;  %v9752_v34 = vrot.slane %v9727_v31, %v14387_v55  ;;  %v13549_v4 = vld [vmem:[%s16273_s6 + $0x5c] sm:$0xf] }
 0x273   : > { %13529 = vmatmul.mubr.msk.f32.vlgmr.msra.gmra.mrb[0].mxu0 %vm507_vm2, %v13526_v36 }
 0x274   : > { %13535 = vmatpush1.msk.msra.mxu0 %vm511_vm1, %v9015_v1  ;;  %9263 = vmatprep.mubr.f32.mxu0 %v16370_v13  ;;  %v9774_v1 = vmul.f32 %v9752_v34, %v16453_v26  ;;  %v16463_v26 = vld [vmem:[#allocation45_spill] sm:$0xff] }
 0x275   : > { %13532 = vmatmul.mubr.msk.f32.vlgmr.msra.gmra.mrb[0].mxu1 %vm507_vm2, %v13526_v36  ;;  %13543 = vmatprep.subr.msk.mxu0 %vm511_vm1, %v9391_v41  ;;  %v9769_v36 = vmul.f32 %v9732_v35, %v16452_v9  ;;  %v9771_v41 = vmul.f32 %v9740_v48, %v16454_v21  ;;  %v16461_v35 = vld [vmem:[#allocation36_spill] sm:$0xff]  ;;  %v13590_v21 = vld [vmem:[%s16272_s5 + $0x68] sm:$0xf] }
 0x276   : > { %13538 = vmatpush1.msk.msra.mxu1 %vm511_vm1, %v9017_v51  ;;  %9334 = vmatprep.mubr.f32.mxu1 %v16370_v13  ;;  %v9776_v51 = vmul.f32 %v9760_v27, %v16455_v49 }
 0x277   : > { %13546 = vmatprep.subr.msk.mxu1 %vm511_vm1, %v9393_v62  ;;  %v9748_v62 = vrot.slane %v9727_v31, %v14385_v54  ;;  %v13588_v31 = vld [vmem:[%s16270_s3 + $0xc2] ss:$8 sm:$0xf] }
 0x278   : > { %v10485_v60 = vor.u32 %v13589_v53, %v13588_v31 }
 0x279   : > { %v9773_v44 = vmul.f32 %v9748_v62, %v16456_v52 }
 0x27a   : > { %v10502_v14 = vrot.slane %v10485_v60, %v14371_v47  ;;  %v10498_v27 = vrot.slane %v10485_v60, %v14369_v46  ;;  %v10518_v9 = vrot.slane %v10485_v60, %v14390_v57 }
 0x27b   : > { %13536 = vmatmul.mubr.msk.f32.vlgmr.msra.gmra.mrb[0].mxu0 %vm507_vm2, %v13533_v63 }
 0x27c   : > { %13544 = vmatpush1.msk.msra.mxu0 %vm511_vm1, %v9390_v0  ;;  %9479 = vmatprep.mubr.f32.mxu0 %v16370_v13  ;;  %v10149_v0 = vmul.f32 %v10115_v8, %v16427_v20  ;;  %v10131_v20 = vrot.slane %v10106_v5, %v14387_v55  ;;  %v10530_v48 = vmul.f32 %v10502_v14, %v15064_v37  ;;  %v13581_v37 = vld [vmem:[%s16273_s6 + $0x64] sm:$0xf] }
 0x27d   : > { %13539 = vmatmul.mubr.msk.f32.vlgmr.msra.gmra.mrb[0].mxu1 %vm507_vm2, %v13533_v63  ;;  %13550 = vmatprep.subr.msk.mxu0 %vm511_vm1, %v9395_v3  ;;  %v10123_v63 = vrot.slane %v10106_v5, %v14371_v47  ;;  %v10111_v3 = vrot.slane %v10106_v5, %v14353_v39 }
 0x27e   : > { %13547 = vmatpush1.msk.msra.mxu1 %vm511_vm1, %v9392_v6  ;;  %9550 = vmatprep.mubr.f32.mxu1 %v16370_v13  ;;  %v10139_v6 = vrot.slane %v10106_v5, %v14390_v57  ;;  %v10153_v17 = vmul.f32 %v10131_v20, %v16430_v40  ;;  %v10494_v40 = vrot.slane %v10485_v60, %v14350_v38 }
 0x27f   : > { %13553 = vmatprep.subr.msk.mxu1 %vm511_vm1, %v9397_v11  ;;  %v10151_v12 = vmul.f32 %v10123_v63, %v16429_v7  ;;  %v13565_v7 = vld [vmem:[%s16273_s6 + $0x60] sm:$0xf]  ;;  %v10148_v11 = vmul.f32 %v10111_v3, %v16458_v18  ;;  %v10506_v57 = vrot.slane %v10485_v60, %v14385_v54 }
 0x280   : > { %v10155_v22 = vmul.f32 %v10139_v6, %v16425_v32  ;;  %v13574_v32 = vld [vmem:[%s16272_s5 + $0x64] sm:$0xf]  ;;  %v10865_v3 = vld [vmem:[%s16271_s4] ss:$8 sm:$0xf] }
 0x281   : > { %v10874_v53 = vrot.slane %v10865_v3, %v14350_v38 }
 0x283   : > { %13545 = vmatmul.mubr.msk.f32.vlgmr.msra.gmra.mrb[0].mxu0 %vm507_vm2, %v13542_v30 }
 0x284   : > { %13551 = vmatpush1.msk.msra.mxu0 %vm511_vm1, %v9394_v58  ;;  %9642 = vmatprep.mubr.f32.mxu0 %v16370_v13  ;;  %v10127_v58 = vrot.slane %v10106_v5, %v14385_v54  ;;  %v13597_v54 = vld [vmem:[%s16273_s6 + $0x68] sm:$0xf] }
 0x285   : > { %13548 = vmatmul.mubr.msk.f32.vlgmr.msra.gmra.mrb[0].mxu1 %vm507_vm2, %v13542_v30  ;;  %13559 = vmatprep.subr.msk.mxu0 %vm511_vm1, %v9770_v56  ;;  %v10150_v30 = vmul.f32 %v10119_v45, %v16459_v28  ;;  %v10135_v56 = vrot.slane %v10106_v5, %v14401_v61 }
 0x286   : > { %13554 = vmatpush1.msk.msra.mxu1 %vm511_vm1, %v9396_v43  ;;  %9713 = vmatprep.mubr.f32.mxu1 %v16370_v13  ;;  %v16460_v43 = vld [vmem:[#allocation41_spill] sm:$0xff] }
 0x287   : > { %13562 = vmatprep.subr.msk.mxu1 %vm511_vm1, %v9772_v10  ;;  %v10152_v25 = vmul.f32 %v10127_v58, %v16460_v43  ;;  %v10528_v10 = vmul.f32 %v10494_v40, %v16432_v19  ;;  %v10154_v34 = vmul.f32 %v10135_v56, %v16461_v35  ;;  %v10510_v19 = vrot.slane %v10485_v60, %v14387_v55  ;;  %v13605_v40 = vld [vmem:[%s16275_s8 + $0x4] sm:$0xf] }
 0x288   : > { %v10534_v55 = vmul.f32 %v10518_v9, %v16431_v24  ;;  %v10531_v24 = vmul.f32 %v10506_v57, %v15115_v2  ;;  %v10882_v56 = vrot.slane %v10865_v3, %v14371_v47  ;;  %v10878_v43 = vrot.slane %v10865_v3, %v14369_v46 }
 0x289   : > { %v10532_v15 = vmul.f32 %v10510_v19, %v15086_v16  ;;  %v10514_v16 = vrot.slane %v10485_v60, %v14401_v61  ;;  %v10891_v19 = vld [vmem:[%s16275_s8] sm:$0xf] }
 0x28b   : > { %13552 = vmatmul.mubr.msk.f32.vlgmr.msra.gmra.mrb[0].mxu0 %vm507_vm2, %v13549_v4 }
 0x28c   : > { %13560 = vmatpush1.msk.msra.mxu0 %vm511_vm1, %v9769_v36  ;;  %9858 = vmatprep.mubr.f32.mxu0 %v16370_v13  ;;  %v16462_v36 = vld [vmem:[#allocation44_spill] sm:$0xff] }
 0x28d   : > { %13555 = vmatmul.mubr.msk.f32.vlgmr.msra.gmra.mrb[0].mxu1 %vm507_vm2, %v13549_v4  ;;  %13566 = vmatprep.subr.msk.mxu0 %vm511_vm1, %v9774_v1  ;;  %v10490_v4 = vrot.slane %v10485_v60, %v14353_v39  ;;  %v10529_v1 = vmul.f32 %v10498_v27, %v16463_v26  ;;  %v13631_v27 = vld [vmem:[%s16271_s4 + $0x2] ss:$8 sm:$0xf] }
 0x28e   : > { %13563 = vmatpush1.msk.msra.mxu1 %vm511_vm1, %v9771_v41  ;;  %9929 = vmatprep.mubr.f32.mxu1 %v16370_v13  ;;  %v10533_v41 = vmul.f32 %v10514_v16, %v15054_v29  ;;  %v11570_v26 = vrot.slane %v13631_v27, %v14371_v47 }
 0x28f   : > { %13569 = vmatprep.subr.msk.mxu1 %vm511_vm1, %v9776_v51  ;;  %v10527_v23 = vmul.f32 %v10490_v4, %v16462_v36  ;;  %v11562_v36 = vrot.slane %v13631_v27, %v14350_v38 }
 0x293   : > { %13561 = vmatmul.mubr.msk.f32.vlgmr.msra.gmra.mrb[0].mxu0 %vm507_vm2, %v13558_v50 }
 0x294   : > { %13567 = vmatpush1.msk.msra.mxu0 %vm511_vm1, %v9773_v44  ;;  %10021 = vmatprep.mubr.f32.mxu0 %v16370_v13 }
 0x295   : > { %13564 = vmatmul.mubr.msk.f32.vlgmr.msra.gmra.mrb[0].mxu1 %vm507_vm2, %v13558_v50  ;;  %13575 = vmatprep.subr.msk.mxu0 %vm511_vm1, %v10149_v0  ;;  %v13604_v0 = vld [vmem:[%s16271_s4 + $0x1] ss:$8 sm:$0xf] }
 0x296   : > { %13570 = vmatpush1.msk.msra.mxu1 %vm511_vm1, %v9775_v42  ;;  %10092 = vmatprep.mubr.f32.mxu1 %v16370_v13  ;;  %v10915_v59 = vrot.slane %v13604_v0, %v14350_v38  ;;  %v10919_v18 = vrot.slane %v13604_v0, %v14369_v46 }
 0x297   : > { %13578 = vmatprep.subr.msk.mxu1 %vm511_vm1, %v10151_v12 }
 0x29b   : > { %13568 = vmatmul.mubr.msk.f32.vlgmr.msra.gmra.mrb[0].mxu0 %vm507_vm2, %v13565_v7 }
 0x29c   : > { %13576 = vmatpush1.msk.msra.mxu0 %vm511_vm1, %v10148_v11  ;;  %10237 = vmatprep.mubr.f32.mxu0 %v16370_v13  ;;  %v10923_v11 = vrot.slane %v13604_v0, %v14371_v47 }
 0x29d   : > { %13571 = vmatmul.mubr.msk.f32.vlgmr.msra.gmra.mrb[0].mxu1 %vm507_vm2, %v13565_v7  ;;  %13582 = vmatprep.subr.msk.mxu0 %vm511_vm1, %v10153_v17  ;;  %v10911_v7 = vrot.slane %v13604_v0, %v14353_v39  ;;  %v13632_v0 = vld [vmem:[%s16275_s8 + $0x8] sm:$0xf] }
 0x29e   : > { %13579 = vmatpush1.msk.msra.mxu1 %vm511_vm1, %v10150_v30  ;;  %10308 = vmatprep.mubr.f32.mxu1 %v16370_v13  ;;  %v10870_v30 = vrot.slane %v10865_v3, %v14353_v39 }
 0x29f   : > { %13585 = vmatprep.subr.msk.mxu1 %vm511_vm1, %v10155_v22 }
 0x2a3   : > { %13577 = vmatmul.mubr.msk.f32.vlgmr.msra.gmra.mrb[0].mxu0 %vm507_vm2, %v13574_v32 }
 0x2a4   : > { %13583 = vmatpush1.msk.msra.mxu0 %vm511_vm1, %v10152_v25  ;;  %10400 = vmatprep.mubr.f32.mxu0 %v16370_v13 }
 0x2a5   : > { %13580 = vmatmul.mubr.msk.f32.vlgmr.msra.gmra.mrb[0].mxu1 %vm507_vm2, %v13574_v32  ;;  %13591 = vmatprep.subr.msk.mxu0 %vm511_vm1, %v10528_v10 }
 0x2a6   : > { %13586 = vmatpush1.msk.msra.mxu1 %vm511_vm1, %v10154_v34  ;;  %10471 = vmatprep.mubr.f32.mxu1 %v16370_v13 }
 0x2a7   : > { %13594 = vmatprep.subr.msk.mxu1 %vm511_vm1, %v10530_v48 }
 0x2ab   : > { %13584 = vmatmul.mubr.msk.f32.vlgmr.msra.gmra.mrb[0].mxu0 %vm507_vm2, %v13581_v37 }
 0x2ac   : > { %13592 = vmatpush1.msk.msra.mxu0 %vm511_vm1, %v10527_v23  ;;  %10616 = vmatprep.mubr.f32.mxu0 %v16370_v13  ;;  %v13618_v23 = vld [vmem:[%s16276_s9 + $0x4] sm:$0xf] }
 0x2ad   : > { %13587 = vmatmul.mubr.msk.f32.vlgmr.msra.gmra.mrb[0].mxu1 %vm507_vm2, %v13581_v37  ;;  %13598 = vmatprep.subr.msk.mxu0 %vm511_vm1, %v10532_v15 }
 0x2ae   : > { %13595 = vmatpush1.msk.msra.mxu1 %vm511_vm1, %v10529_v1  ;;  %10687 = vmatprep.mubr.f32.mxu1 %v16370_v13  ;;  %v425_v61 = vpop.permute.xlu1 %424 }
 0x2af   : > { %13601 = vmatprep.subr.msk.mxu1 %vm511_vm1, %v10534_v55 }
 0x2b3   : > { %13593 = vmatmul.mubr.msk.f32.vlgmr.msra.gmra.mrb[0].mxu0 %vm507_vm2, %v13590_v21 }
 0x2b4   : > { %13599 = vmatpush1.msk.msra.mxu0 %vm511_vm1, %v10531_v24  ;;  %10779 = vmatprep.mubr.f32.mxu0 %v16370_v13  ;;  %v11558_v24 = vrot.slane %v13631_v27, %v14353_v39 }
 0x2b5   : > { %13596 = vmatmul.mubr.msk.f32.vlgmr.msra.gmra.mrb[0].mxu1 %vm507_vm2, %v13590_v21 }
 0x2b6   : > { %13602 = vmatpush1.msk.msra.mxu1 %vm511_vm1, %v10533_v41  ;;  %10850 = vmatprep.mubr.f32.mxu1 %v16370_v13 }
 0x2bb   : > { %13600 = vmatmul.mubr.msk.f32.vlgmr.msra.gmra.mrb[0].mxu0 %vm507_vm2, %v13597_v54 }
 0x2bc   : > { %11013 = vmatprep.mubr.f32.mxu0 %v16370_v13 }
 0x2bd   : > { %13603 = vmatmul.mubr.msk.f32.vlgmr.msra.gmra.mrb[0].mxu1 %vm507_vm2, %v13597_v54  ;;  %v11566_v54 = vrot.slane %v13631_v27, %v14369_v46 }
 0x2be   : > { %11084 = vmatprep.mubr.f32.mxu1 %v16370_v13 }
 0x38e   : > { %v10781_v29 = vpop.f32.mrb[0].mxu0 }
 0x38f   : > { %v10783_v2 = vpop.f32.mrb[1].mxu0  ;;  %v13701_v8 = vadd.f32 %v10781_v29, %v425_v61  ;;  %v10892_v29 = vld [vmem:[%s16276_s9] sm:$0xf] }
 0x390   : > { %v13702_v49 = vadd.f32 %v10783_v2, %v425_v61  ;;  %v10852_v51 = vpop.f32.mrb[0].mxu1 }
 0x391   : > { %v13703_v5 = vadd.f32 %v10852_v51, %v425_v61  ;;  %v10854_v62 = vpop.f32.mrb[1].mxu1  ;;  %v15927_v52 = vmax.f32 %v13701_v8, 0.0 }
 0x392   : > { %v15919_v33 = vmax.f32 %v13702_v49, 0.0  ;;  %v13704_v63 = vadd.f32 %v10854_v62, %v425_v61  ;;  %v13646_v61 = vld [vmem:[%s16271_s4 + $0x3] ss:$8 sm:$0xf] }
 0x393   : > { %v15921_v50 = vmax.f32 %v13703_v5, 0.0  ;;  %v10887_v10 = vmul.f32 %v10870_v30, %v15927_v52  ;;  %v11915_v51 = vrot.slane %v13646_v61, %v14350_v38 }
 0x394   : > { %10895 = vrot.lane.b32.xlu0 %v15919_v33, %s14095_s25  ;;  %v15929_v44 = vmax.f32 %v13704_v63, 0.0  ;;  %v10888_v25 = vmul.f32 %v10874_v53, %v15919_v33 }
 0x395   : > { %10897 = vrot.lane.b32.xlu1 %v15921_v50, %s14095_s25  ;;  %v10889_v4 = vmul.f32 %v10878_v43, %v15921_v50 }
 0x396   : > { %v10890_v35 = vmul.f32 %v10882_v56, %v15929_v44  ;;  %v13669_v56 = vld [vmem:[%s16271_s4 + $0x5] ss:$8 sm:$0xf] }
 0x398   : > { %10893 = vrot.lane.b32.xlu0 %v15927_v52, %s14095_s25 }
 0x399   : > { %10899 = vrot.lane.b32.xlu1 %v15929_v44, %s14095_s25 }
 0x39c   : > { %11542 = vrot.lane.b32.xlu0 %v15919_v33, %s14101_s21 }
 0x39d   : > { %11544 = vrot.lane.b32.xlu1 %v15921_v50, %s14101_s21 }
 0x3a0   : > { %11540 = vrot.lane.b32.xlu0 %v15927_v52, %s14101_s21 }
 0x3a1   : > { %11546 = vrot.lane.b32.xlu1 %v15929_v44, %s14101_s21  ;;  %s14033_s21 = sshll.u32 %s14104_s28, 4  ;;  %s14034_s21 = int_to_ptr.vmem [resolvable:$false] %s14033_s21 }
 0x3a2   : > { %s14035_s29 = scalar_lea.vmem %s14034_s21, 1024 }
 0x3a4   : > { %11895 = vrot.lane.b32.xlu0 %v15919_v33, %s14102_s30 }
 0x3a5   : > { %11897 = vrot.lane.b32.xlu1 %v15921_v50, %s14102_s30 }
 0x3a8   : > { %11893 = vrot.lane.b32.xlu0 %v15927_v52, %s14102_s30 }
 0x3a9   : > { %11899 = vrot.lane.b32.xlu1 %v15929_v44, %s14102_s30  ;;  %s361_s30 = sand.u32 1, %s14083_s14  }
 0x3aa   : > { %s13169_s22 = sshll.u32 %s361_s30, 5  ;;  %s16226_s17 = scalar_lea.sflag [#allocation3], %s361_s30 }
 0x3ab   : > { %s363_s12 = scalar_lea.vmem [#allocation2], %s13169_s22 }
 0x3ac   : > { %s13091_s18 = sshll.u32 %s363_s12, 4  ;;  %s16224_s18 = int_to_ptr.vmem [resolvable:$true] %s13091_s18 }
 0x3ad   : > { %s14029_s25 = scalar_lea.vmem %s16224_s18, 512  ;;  %p14036_p0 = scmp.lt.s32.totalorder %s16224_s18, %s14034_s21 }
 0x3ae   : > { %p14030_p11 = scmp.ne.s32.totalorder %s16224_s18, %s14029_s25  ;;  %p14037_p1 = scmp.lt.s32.totalorder %s14035_s29, %s14029_s25 }
 0x3b0   : > { %p14031_p12 = pnand %p14030_p11, %p14200_p5  ;;  %p14038_p2 = por %p14037_p1, %p14036_p0 }
 0x3b2   : > { %p14032_p13 = pneg %p14031_p12 }
 0x3b4   : > { %p14039_p3 = pnand %p14038_p2, %p14032_p13 }
 0x406   : > { %v10896_v42 = vpop.permute.xlu0 %10895 }
 0x407   : > { %v10898_v12 = vpop.permute.xlu1 %10897 }
 0x408   : > { %v15960_v45 = vsel %vm2439_vm6, %v10896_v42, %v10898_v12 }
 0x409   : > { %v10929_v6 = vmul.f32 %v10915_v59, %v15960_v45  ;;  %v11923_v59 = vrot.slane %v13646_v61, %v14371_v47 }
 0x40a   : > { %v10894_v31 = vpop.permute.xlu0 %10893 }
 0x40b   : > { %v10900_v17 = vpop.permute.xlu1 %10899  ;;  %13606 = vmatprep.subr.msk.mxu0 %vm511_vm1, %v10929_v6  ;;  %v15970_v28 = vsel %vm2439_vm6, %v10894_v31, %v10896_v42  ;;  %v11911_v42 = vrot.slane %v13646_v61, %v14353_v39 }
 0x40c   : > { %v15975_v22 = vsel %vm2439_vm6, %v10898_v12, %v10900_v17  ;;  %v15979_v60 = vsel %vm2439_vm6, %v10900_v17, %v10894_v31  ;;  %v10928_v58 = vmul.f32 %v10911_v7, %v15970_v28 }
 0x40d   : > { %v10930_v32 = vmul.f32 %v10919_v18, %v15975_v22  ;;  %v10931_v14 = vmul.f32 %v10923_v11, %v15979_v60  ;;  %v13639_v18 = vld [vmem:[%s16276_s9 + $0x8] sm:$0xf]  ;;  %v13661_v11 = vld [vmem:[%s16271_s4 + $0x4] ss:$8 sm:$0xf] }
 0x40e   : > { %13607 = vmatpush1.msk.msra.mxu0 %vm511_vm1, %v10928_v58  ;;  %v11543_v48 = vpop.permute.xlu0 %11542  ;;  %v12256_v20 = vrot.slane %v13661_v11, %v14350_v38 }
 0x40f   : > { %13609 = vmatprep.subr.msk.mxu1 %vm511_vm1, %v10931_v14  ;;  %13608 = vmatmul.mubr.msk.f32.vlgmr.msra.gmra.mrb[2].mxu0 %vm507_vm2, %v13605_v40  ;;  %v11545_v34 = vpop.permute.xlu1 %11544 }
 0x410   : > { %13610 = vmatpush1.msk.msra.mxu1 %vm511_vm1, %v10930_v32  ;;  %13612 = vmatprep.subr.msk.mxu0 %vm511_vm1, %v10888_v25  ;;  %v16021_v15 = vsel %vm3247_vm8, %v11543_v48, %v11545_v34  ;;  %v12270_v43 = vmul.f32 %v12256_v20, %v15921_v50 }
 0x411   : > { %13611 = vmatmul.mubr.msk.f32.vlgmr.msra.gmra.mrb[2].mxu1 %vm507_vm2, %v13605_v40  ;;  %13613 = vmatpush1.msk.msra.mxu0 %vm511_vm1, %v10887_v10  ;;  %v11576_v55 = vmul.f32 %v11562_v36, %v16021_v15  ;;  %v12264_v40 = vrot.slane %v13661_v11, %v14371_v47 }
 0x412   : > { %13615 = vmatprep.subr.msk.mxu1 %vm511_vm1, %v10890_v35  ;;  %13619 = vmatprep.subr.msk.mxu0 %vm511_vm1, %v10929_v6  ;;  %v11541_v9 = vpop.permute.xlu0 %11540  ;;  %v11919_v6 = vrot.slane %v13646_v61, %v14369_v46 }
 0x413   : > { %13616 = vmatpush1.msk.msra.mxu1 %vm511_vm1, %v10889_v4  ;;  %11170 = vmatprep.mubr.f32.mxu0 %v16370_v13  ;;  %v11547_v37 = vpop.permute.xlu1 %11546  ;;  %v16043_v41 = vsel %vm3247_vm8, %v11541_v9, %v11543_v48 }
 0x414   : > { %13622 = vmatprep.subr.msk.mxu1 %vm511_vm1, %v10931_v14  ;;  %11241 = vmatprep.mubr.f32.mxu1 %v16370_v13  ;;  %v16028_v1 = vsel %vm3247_vm8, %v11547_v37, %v11541_v9  ;;  %v16057_v2 = vsel %vm3247_vm8, %v11545_v34, %v11547_v37  ;;  %v11575_v49 = vmul.f32 %v11558_v24, %v16043_v41 }
 0x415   : > { %v11578_v57 = vmul.f32 %v11570_v26, %v16028_v1  ;;  %v11577_v8 = vmul.f32 %v11566_v54, %v16057_v2  ;;  %v12446_v14 = vrot.slane %v13669_v56, %v14350_v38  ;;  %v12272_v34 = vmul.f32 %v12264_v40, %v15927_v52 }
 0x416   : > { %v11896_v21 = vpop.permute.xlu0 %11895 }
 0x417   : > { %13614 = vmatmul.mubr.msk.f32.vlgmr.msra.gmra.mrb[2].mxu0 %vm507_vm2, %v10891_v19  ;;  %v11898_v16 = vpop.permute.xlu1 %11897  ;;  %v12460_v48 = vmul.f32 %v12446_v14, %v15975_v22  ;;  %v13677_v22 = vld [vmem:[%s16271_s4 + $0x6] ss:$8 sm:$0xf] }
 0x418   : > { %13620 = vmatpush1.msk.msra.mxu0 %vm511_vm1, %v10928_v58  ;;  %11317 = vmatprep.mubr.f32.mxu0 %v16370_v13  ;;  %v16065_v63 = vsel %vm3651_vm9, %v11896_v21, %v11898_v16  ;;  %v13647_v58 = vld [vmem:[%s16275_s8 + $0xc] sm:$0xf]  ;;  %v12644_v27 = vrot.slane %v13677_v22, %v14371_v47  ;;  %v12632_v26 = vrot.slane %v13677_v22, %v14353_v39 }
 0x419   : > { %13617 = vmatmul.mubr.msk.f32.vlgmr.msra.gmra.mrb[2].mxu1 %vm507_vm2, %v10891_v19  ;;  %13625 = vmatprep.subr.msk.mxu0 %vm511_vm1, %v10888_v25  ;;  %v11929_v3 = vmul.f32 %v11915_v51, %v16065_v63  ;;  %v13654_v25 = vld [vmem:[%s16276_s9 + $0xc] sm:$0xf]  ;;  %v13662_v19 = vld [vmem:[%s16276_s9 + $0x10] sm:$0xf] }
 0x41a   : > { %13623 = vmatpush1.msk.msra.mxu1 %vm511_vm1, %v10930_v32  ;;  %11388 = vmatprep.mubr.f32.mxu1 %v16370_v13  ;;  %v11894_v62 = vpop.permute.xlu0 %11893  ;;  %v12252_v32 = vrot.slane %v13661_v11, %v14353_v39 }
 0x41b   : > { %13628 = vmatprep.subr.msk.mxu1 %vm511_vm1, %v10890_v35  ;;  %13621 = vmatmul.mubr.msk.f32.vlgmr.msra.gmra.mrb[4].mxu0 %vm507_vm2, %v13618_v23  ;;  %v11900_v5 = vpop.permute.xlu1 %11899  ;;  %v16085_v7 = vsel %vm3651_vm9, %v11894_v62, %v11896_v21  ;;  %v12454_v35 = vrot.slane %v13669_v56, %v14371_v47  ;;  %v12649_v21 = vmul.f32 %v12632_v26, %v16021_v15 }
 0x41c   : > { %13626 = vmatpush1.msk.msra.mxu0 %vm511_vm1, %v10887_v10  ;;  %11462 = vmatprep.mubr.f32.mxu0 %v16370_v13  ;;  %v16078_v12 = vsel %vm3651_vm9, %v11900_v5, %v11894_v62  ;;  %v16100_v31 = vsel %vm3651_vm9, %v11898_v16, %v11900_v5  ;;  %v11928_v17 = vmul.f32 %v11911_v42, %v16085_v7 }
 0x41d   : > { %13624 = vmatmul.mubr.msk.f32.vlgmr.msra.gmra.mrb[4].mxu1 %vm507_vm2, %v13618_v23  ;;  %13633 = vmatprep.subr.msk.mxu0 %vm511_vm1, %v11576_v55  ;;  %v11931_v53 = vmul.f32 %v11923_v59, %v16078_v12  ;;  %v11930_v30 = vmul.f32 %v11919_v6, %v16100_v31  ;;  %v12260_v10 = vrot.slane %v13661_v11, %v14369_v46 }
 0x41e   : > { %13629 = vmatpush1.msk.msra.mxu1 %vm511_vm1, %v10889_v4  ;;  %11533 = vmatprep.mubr.f32.mxu1 %v16370_v13  ;;  %v12269_v50 = vmul.f32 %v12252_v32, %v15919_v33  ;;  %v12462_v52 = vmul.f32 %v12454_v35, %v15970_v28  ;;  %v12442_v33 = vrot.slane %v13669_v56, %v14353_v39 }
 0x41f   : > { %13636 = vmatprep.subr.msk.mxu1 %vm511_vm1, %v11578_v57  ;;  %v12271_v4 = vmul.f32 %v12260_v10, %v15929_v44  ;;  %v12636_v44 = vrot.slane %v13677_v22, %v14350_v38  ;;  %v12450_v28 = vrot.slane %v13669_v56, %v14369_v46  ;;  %v12652_v23 = vmul.f32 %v12644_v27, %v16043_v41 }
 0x420   : > { %v12459_v37 = vmul.f32 %v12442_v33, %v15960_v45  ;;  %v13685_v45 = vld [vmem:[%s16271_s4 + $0x7] ss:$8 sm:$0xf] }
 0x421   : > { %v12650_v9 = vmul.f32 %v12636_v44, %v16057_v2  ;;  %v12461_v36 = vmul.f32 %v12450_v28, %v15979_v60  ;;  %v12826_v60 = vrot.slane %v13685_v45, %v14350_v38  ;;  %v12834_v16 = vrot.slane %v13685_v45, %v14371_v47 }
 0x422   : > { %v12822_v47 = vrot.slane %v13685_v45, %v14353_v39  ;;  %v12830_v15 = vrot.slane %v13685_v45, %v14369_v46  ;;  %v13686_v39 = vld [vmem:[%s16276_s9 + $0x1c] sm:$0xf] }
 0x423   : > { %13627 = vmatmul.mubr.msk.f32.vlgmr.msra.gmra.mrb[4].mxu0 %vm507_vm2, %v10892_v29  ;;  %v12840_v24 = vmul.f32 %v12826_v60, %v16100_v31  ;;  %v12842_v38 = vmul.f32 %v12834_v16, %v16085_v7 }
 0x424   : > { %13634 = vmatpush1.msk.msra.mxu0 %vm511_vm1, %v11575_v49  ;;  %11660 = vmatprep.mubr.f32.mxu0 %v16370_v13  ;;  %v12839_v54 = vmul.f32 %v12822_v47, %v16065_v63  ;;  %v12841_v61 = vmul.f32 %v12830_v15, %v16078_v12 }
 0x425   : > { %13630 = vmatmul.mubr.msk.f32.vlgmr.msra.gmra.mrb[4].mxu1 %vm507_vm2, %v10892_v29  ;;  %13640 = vmatprep.subr.msk.mxu0 %vm511_vm1, %v11576_v55  ;;  %v12640_v55 = vrot.slane %v13677_v22, %v14369_v46 }
 0x426   : > { %13637 = vmatpush1.msk.msra.mxu1 %vm511_vm1, %v11577_v8  ;;  %11731 = vmatprep.mubr.f32.mxu1 %v16370_v13 }
 0x427   : > { %13643 = vmatprep.subr.msk.mxu1 %vm511_vm1, %v11578_v57  ;;  %13635 = vmatmul.mubr.msk.f32.vlgmr.msra.gmra.mrb[2].mxu0 %vm507_vm2, %v13632_v0  ;;  %v13670_v57 = vld [vmem:[%s16276_s9 + $0x14] sm:$0xf]  ;;  %v12651_v41 = vmul.f32 %v12640_v55, %v16028_v1  ;;  %v13678_v1 = vld [vmem:[%s16276_s9 + $0x18] sm:$0xf] }
 0x428   : > { %13641 = vmatpush1.msk.msra.mxu0 %vm511_vm1, %v11575_v49  ;;  %11811 = vmatprep.mubr.f32.mxu0 %v16370_v13 }
 0x429   : > { %13638 = vmatmul.mubr.msk.f32.vlgmr.msra.gmra.mrb[2].mxu1 %vm507_vm2, %v13632_v0  ;;  %13648 = vmatprep.subr.msk.mxu0 %vm511_vm1, %v11929_v3 }
 0x42a   : > { %13644 = vmatpush1.msk.msra.mxu1 %vm511_vm1, %v11577_v8  ;;  %11882 = vmatprep.mubr.f32.mxu1 %v16370_v13 }
 0x42b   : > { %13651 = vmatprep.subr.msk.mxu1 %vm511_vm1, %v11931_v53  ;;  %13642 = vmatmul.mubr.msk.f32.vlgmr.msra.gmra.mrb[4].mxu0 %vm507_vm2, %v13639_v18 }
 0x42c   : > { %13649 = vmatpush1.msk.msra.mxu0 %vm511_vm1, %v11928_v17  ;;  %12013 = vmatprep.mubr.f32.mxu0 %v16370_v13 }
 0x42d   : > { %13645 = vmatmul.mubr.msk.f32.vlgmr.msra.gmra.mrb[4].mxu1 %vm507_vm2, %v13639_v18  ;;  %13655 = vmatprep.subr.msk.mxu0 %vm511_vm1, %v11929_v3 }
 0x42e   : > { %13652 = vmatpush1.msk.msra.mxu1 %vm511_vm1, %v11930_v30  ;;  %12084 = vmatprep.mubr.f32.mxu1 %v16370_v13 }
 0x42f   : > { %13658 = vmatprep.subr.msk.mxu1 %vm511_vm1, %v11931_v53  ;;  %13650 = vmatmul.mubr.msk.f32.vlgmr.msra.gmra.mrb[2].mxu0 %vm507_vm2, %v13647_v58 }
 0x430   : > { %13656 = vmatpush1.msk.msra.mxu0 %vm511_vm1, %v11928_v17  ;;  %12164 = vmatprep.mubr.f32.mxu0 %v16370_v13 }
 0x431   : > { %13653 = vmatmul.mubr.msk.f32.vlgmr.msra.gmra.mrb[2].mxu1 %vm507_vm2, %v13647_v58  ;;  %13663 = vmatprep.subr.msk.mxu0 %vm511_vm1, %v12270_v43 }
 0x432   : > { %13659 = vmatpush1.msk.msra.mxu1 %vm511_vm1, %v11930_v30  ;;  %12235 = vmatprep.mubr.f32.mxu1 %v16370_v13 }
 0x433   : > { %13666 = vmatprep.subr.msk.mxu1 %vm511_vm1, %v12272_v34  ;;  %13657 = vmatmul.mubr.msk.f32.vlgmr.msra.gmra.mrb[4].mxu0 %vm507_vm2, %v13654_v25 }
 0x434   : > { %13664 = vmatpush1.msk.msra.mxu0 %vm511_vm1, %v12269_v50  ;;  %12354 = vmatprep.mubr.f32.mxu0 %v16370_v13 }
 0x435   : > { %13660 = vmatmul.mubr.msk.f32.vlgmr.msra.gmra.mrb[4].mxu1 %vm507_vm2, %v13654_v25  ;;  %13671 = vmatprep.subr.msk.mxu0 %vm511_vm1, %v12460_v48 }
 0x436   : > { %13667 = vmatpush1.msk.msra.mxu1 %vm511_vm1, %v12271_v4  ;;  %12425 = vmatprep.mubr.f32.mxu1 %v16370_v13 }
 0x437   : > { %13674 = vmatprep.subr.msk.mxu1 %vm511_vm1, %v12462_v52 }
 0x43b   : > { %13665 = vmatmul.mubr.msk.f32.vlgmr.msra.gmra.mrb[4].mxu0 %vm507_vm2, %v13662_v19 }
 0x43c   : > { %13672 = vmatpush1.msk.msra.mxu0 %vm511_vm1, %v12459_v37  ;;  %12544 = vmatprep.mubr.f32.mxu0 %v16370_v13 }
 0x43d   : > { %13668 = vmatmul.mubr.msk.f32.vlgmr.msra.gmra.mrb[4].mxu1 %vm507_vm2, %v13662_v19  ;;  %13679 = vmatprep.subr.msk.mxu0 %vm511_vm1, %v12650_v9 }
 0x43e   : > { %13675 = vmatpush1.msk.msra.mxu1 %vm511_vm1, %v12461_v36  ;;  %12615 = vmatprep.mubr.f32.mxu1 %v16370_v13 }
 0x43f   : > { %13682 = vmatprep.subr.msk.mxu1 %vm511_vm1, %v12652_v23 }
 0x443   : > { %13673 = vmatmul.mubr.msk.f32.vlgmr.msra.gmra.mrb[4].mxu0 %vm507_vm2, %v13670_v57 }
 0x444   : > { %13680 = vmatpush1.msk.msra.mxu0 %vm511_vm1, %v12649_v21  ;;  %12734 = vmatprep.mubr.f32.mxu0 %v16370_v13 }
 0x445   : > { %13676 = vmatmul.mubr.msk.f32.vlgmr.msra.gmra.mrb[4].mxu1 %vm507_vm2, %v13670_v57  ;;  %13687 = vmatprep.subr.msk.mxu0 %vm511_vm1, %v12840_v24 }
 0x446   : > { %13683 = vmatpush1.msk.msra.mxu1 %vm511_vm1, %v12651_v41  ;;  %12805 = vmatprep.mubr.f32.mxu1 %v16370_v13 }
 0x447   : > { %13690 = vmatprep.subr.msk.mxu1 %vm511_vm1, %v12842_v38 }
 0x44b   : > { %13681 = vmatmul.mubr.msk.f32.vlgmr.msra.gmra.mrb[4].mxu0 %vm507_vm2, %v13678_v1 }
 0x44c   : > { %13688 = vmatpush1.msk.msra.mxu0 %vm511_vm1, %v12839_v54  ;;  %12924 = vmatprep.mubr.f32.mxu0 %v16370_v13 }
 0x44d   : > { %13684 = vmatmul.mubr.msk.f32.vlgmr.msra.gmra.mrb[4].mxu1 %vm507_vm2, %v13678_v1 }
 0x44e   : > { %13691 = vmatpush1.msk.msra.mxu1 %vm511_vm1, %v12841_v61  ;;  %12995 = vmatprep.mubr.f32.mxu1 %v16370_v13 }
 0x453   : > { %13689 = vmatmul.mubr.msk.f32.vlgmr.msra.gmra.mrb[4].mxu0 %vm507_vm2, %v13686_v39 }
 0x455   : > { %13692 = vmatmul.mubr.msk.f32.vlgmr.msra.gmra.mrb[4].mxu1 %vm507_vm2, %v13686_v39 }
 0x502   : > { %v12015_v46 = vpop.f32.mrb[2].mxu0 }
 0x503   : > { %v12017_v29 = vpop.f32.mrb[3].mxu0 }
 0x504   : > { %v12086_v2 = vpop.f32.mrb[2].mxu1 }
 0x505   : > { %v12088_v49 = vpop.f32.mrb[3].mxu1 }
 0x526   : > { %v12926_v51 = vpop.f32.mrb[4].mxu0 }
 0x527   : > { %v13006_v5 = vmax.f32 %v12015_v46, %v12926_v51  ;;  %v12928_v62 = vpop.f32.mrb[5].mxu0 }
 0x528   : > { %v13007_v8 = vmax.f32 %v12017_v29, %v12928_v62  ;;  %v12997_v63 = vpop.f32.mrb[4].mxu1 }
 0x529   : > { %v13009_v0 = vmax.f32 %v12086_v2, %v12997_v63  ;;  %v12999_v59 = vpop.f32.mrb[5].mxu1 }
 0x52a   : > { %v13008_v13 = vmax.f32 %v13006_v5, %v13007_v8  ;;  %v13011_v42 = vmax.f32 %v12088_v49, %v12999_v59 }
 0x52c   : > { %v13010_v12 = vmax.f32 %v13008_v13, %v13009_v0 }
 0x52e   : > { %v13012_v3 = vmax.f32 %v13010_v12, %v13011_v42 }
 0x530   : > { %v13013_v7 = vsub.f32 %v12015_v46, %v13012_v3  ;;  %v13014_v6 = vsub.f32 %v12017_v29, %v13012_v3  ;;  %v13015_v18 = vsub.f32 %v12086_v2, %v13012_v3  ;;  %v13016_v11 = vsub.f32 %v12088_v49, %v13012_v3 }
 0x531   : > { %v13025_v31 = vsub.f32 %v12926_v51, %v13012_v3  ;;  %v13026_v53 = vsub.f32 %v12928_v62, %v13012_v3  ;;  %v13027_v17 = vsub.f32 %v12997_v63, %v13012_v3  ;;  %v13028_v20 = vsub.f32 %v12999_v59, %v13012_v3 }
 0x532   : > { %v13017_v30 = vmul.f32 1.442695, %v13013_v7  ;;  %v13019_v40 = vmul.f32 1.442695, %v13014_v6  ;;  %v13021_v32 = vmul.f32 1.442695, %v13015_v18 }
 0x533   : > { %v13029_v58 = vmul.f32 1.442695, %v13025_v31  ;;  %v13031_v56 = vmul.f32 1.442695, %v13026_v53  ;;  %v13033_v14 = vmul.f32 1.442695, %v13027_v17 }
 0x534   : > { %14011 = vpow2.f32 %v13017_v30  ;;  %v13023_v43 = vmul.f32 1.442695, %v13016_v11  ;;  %v13035_v10 = vmul.f32 1.442695, %v13028_v20 }
 0x535   : > { %14013 = vpow2.f32 %v13029_v58 }
 0x536   : > { %14015 = vpow2.f32 %v13019_v40 }
 0x537   : > { %14017 = vpow2.f32 %v13031_v56 }
 0x538   : > { %14019 = vpow2.f32 %v13021_v32 }
 0x539   : > { %14021 = vpow2.f32 %v13033_v14 }
 0x53a   : > { %14023 = vpow2.f32 %v13023_v43 }
 0x53b   : > { %14025 = vpow2.f32 %v13035_v10 }
 0x53e   : > { %v14012_v25 = vpop.eup %14011 }
 0x53f   : > { %v14014_v35 = vpop.eup %14013 }
 0x540   : > { %v13037_v34 = vadd.f32 %v14014_v35, %v14012_v25  ;;  %v14016_v50 = vpop.eup %14015 }
 0x541   : > { %v14018_v4 = vpop.eup %14017 }
 0x542   : > { %v13038_v48 = vadd.f32 %v14016_v50, %v13037_v34  ;;  %v14020_v33 = vpop.eup %14019 }
 0x543   : > { %v14022_v44 = vpop.eup %14021 }
 0x544   : > { %v13039_v52 = vadd.f32 %v14018_v4, %v13038_v48  ;;  %v14024_v19 = vpop.eup %14023 }
 0x545   : > { %v14026_v37 = vpop.eup %14025 }
 0x546   : > { %v13040_v22 = vadd.f32 %v14020_v33, %v13039_v52 }
 0x548   : > { %v13041_v28 = vadd.f32 %v14022_v44, %v13040_v22 }
 0x54a   : > { %v13042_v27 = vadd.f32 %v14024_v19, %v13041_v28 }
 0x54c   : > { %v13043_v9 = vadd.f32 %v14026_v37, %v13042_v27 }
 0x54e   : > { %14027 = vrcp.f32 %v13043_v9 }
 0x558   : > { %v14028_v36 = vpop.eup %14027 }
 0x559   : > { %v13045_v23 = vmul.f32 %v14028_v36, %v13043_v9 }
 0x55b   : > { %v13046_v26 = vsub.f32 2.0, %v13045_v23 }
 0x55d   : > { %v13047_v45 = vmul.f32 %v14028_v36, %v13046_v26 }
 0x55f   : > { %v13064_v60 = vmul.f32 %v14022_v44, %v13047_v45  ;;  %v13065_v55 = vmul.f32 %v14026_v37, %v13047_v45  ;;  %v13048_v57 = vmul.f32 %v14012_v25, %v13047_v45  ;;  %v13049_v16 = vmul.f32 %v14016_v50, %v13047_v45 }
 0x560   : > { %v13050_v21 = vmul.f32 %v14020_v33, %v13047_v45  ;;  %v13051_v24 = vmul.f32 %v14024_v19, %v13047_v45  ;;  %v13062_v41 = vmul.f32 %v14014_v35, %v13047_v45  ;;  %v13063_v38 = vmul.f32 %v14018_v4, %v13047_v45 }
 0x561   : > { %v13071_v47 = vcombine.low %v13064_v60, %v13065_v55  ;;  %v13056_v15 = vcombine.low %v13048_v57, %v13049_v16 }
 0x562   : > { %v13057_v1 = vcombine.low %v13050_v21, %v13051_v24  ;;  %v13070_v54 = vcombine.low %v13062_v41, %v13063_v38 }
 0x563   : > { %13694 = vst [vmem:[%s363_s12 + $0x18] sm:$0xff] %v13071_v47  ;;  %13060 = vst [vmem:[%s363_s12] sm:$0xff] %v13056_v15 }
 0x564   : > { %13061 = vst [vmem:[%s363_s12 + $0x8] sm:$0xff] %v13057_v1  ;;  %13693 = vst [vmem:[%s363_s12 + $0x10] sm:$0xff] %v13070_v54 }
 0x565   : > { %14042 = shalt.err (!%p14039_p3)
}
 0x566   : > { %s14043_s30 = scalar_lea.hbm %s16222_s26, 512  ;;  %s14047_s12 = scalar_lea.hbm %s16277_s10, 1024 }
 0x567   : > { %p14044_p4 = scmp.ne.s32.totalorder %s16222_s26, %s14043_s30  ;;  %p14048_p9 = scmp.lt.u32.totalorder %s16222_s26, %s16277_s10 }
 0x568   : > { %p14049_p10 = scmp.lt.u32.totalorder %s14047_s12, %s14043_s30  ;;  %p14051_p12 = scmp.lt.u32.totalorder %s14043_s30, %s16222_s26 }
 0x569   : > { %p14045_p7 = pnand %p14044_p4, %p14200_p5 }
 0x56a   : > { %p14050_p11 = por %p14049_p10, %p14048_p9 }
 0x56b   : > { %p14046_p8 = pneg %p14045_p7 }
 0x56c   : > { %p14052_p13 = por %p14051_p12, %p14050_p11 }
 0x56e   : > { %p14053_p0 = pnand %p14052_p13, %p14046_p8 }
 0x570   : > { %14056 = shalt.err (!%p14053_p0)
}
 0x571   : > { %s14105_s25 = smov 256   ;;  %s14106_s28 = smov 16  }
 0x572   : > { %13957 = dma.vmem_to_hbm [thread:$0]  (%p14200_p5), %s16224_s18, 512, %s16222_s26, %s16226_s17, %s14105_s25, %s14105_s25, %s14106_s28  }
 0x573 PF: > { %p13963_p1 = scmp.ge.s32.totalorder %s14091_s16, 2  ;;  %s13106_s21 = sand.u32 1, %s14079_s13  }
 0x574   : > { %s13107_s29 = scalar_lea.sflag [#allocation3], %s13106_s21 }
 0x575   : > { %p13960_p2 = pnand %p13963_p1, %p14204_p6 }
 0x577   : > { %14074 = dma.done.wait (!%p13960_p2), %s13107_s29, 512  }
 0x578   : > { %14076 = vsyncadd (!%p13960_p2), %s13107_s29, 4294966784  ;;  %s16465_s30 = sld [smem:[#allocation5_spill]]  ;;  %p20_p3 = scmp.ge.s32.totalorder %s14187_s19, 4  }
 0x579   : > { %s16466_s13 = smov %s14083_s14  ;;  %s16467_s14 = smov %s14087_s15 }
 0x57a   : > { %s16469_s16 = smov %s14187_s19  ;;  %22 = sbr.rel (!%p20_p3) target bundleno = 3 (0x3), region = 194 }
 0x57e   : > { %s16468_s15 = smov %s16465_s30 }
 0x581   :  { %13112 = vsyncpa [#allocation3], 1 }
 0x582   :  { %13114 = vsyncpa [#allocation3 + $0x1], 1 }

</bundles_post_ra>
